<compile_context>
chip_gen: v5e
topology: v5e:2x2
jax: 0.10.0
libtpu: 0.0.40
codegen_flags: <defaults>
</compile_context>

<pallas_src>
import functools

import jax
import jax.numpy as jnp
from jax.experimental import pallas as pl
from jax.experimental.pallas import tpu as pltpu


def _round_up(n: int, m: int) -> int:
    return ((n + m - 1) // m) * m


def mlp_kernel(x_ref, w1_ref, b1_ref, w2_ref, b2_ref, o_ref):
    # ReLU first (as in the PyTorch forward). x is already bf16; ReLU commutes with
    # the monotone bf16 rounding, so this matches relu-then-cast semantics.
    x = jnp.maximum(x_ref[...], 0.0)

    # fc1: (TB, F_pad) @ (F_pad, H_pad) -> f32 accumulate, bias add in f32.
    h = jnp.dot(x, w1_ref[...], preferred_element_type=jnp.float32) + b1_ref[...]

    # fc2: (TB, H_pad) @ (H_pad, O_pad) -> f32 accumulate, bias add in f32.
    # Padded output lanes get logit ~ -1e30 via the bias (mask baked into b2).
    logits = (
        jnp.dot(h.astype(jnp.bfloat16), w2_ref[...],
                preferred_element_type=jnp.float32)
        + b2_ref[...]
    )

    # Numerically-stable softmax over the feature axis (dim=1).
    # exp(-1e30 - m) underflows to exactly 0, so padded lanes drop out of the sum.
    m = jnp.max(logits, axis=1, keepdims=True)
    e = jnp.exp(logits - m)
    denom = jnp.sum(e, axis=1, keepdims=True)
    o_ref[...] = e / denom  # exact divide: rows sum to 1 within float rounding


def make_nnprac1_forward(w1, b1, w2, b2, *, tb_max: int = 1024):
    """Preprocess parameters ONCE and return a jitted forward(x) closure.

    PyTorch layout: w1: (H, F), b1: (H,), w2: (O, H), b2: (O,).
    """
    H, F = w1.shape
    O, H2 = w2.shape
    assert H2 == H and b1.shape == (H,) and b2.shape == (O,)

    F_pad = _round_up(F, 128)
    H_pad = _round_up(H, 128)
    O_pad = _round_up(O, 128)

    # One-time parameter prep (hoisted out of the per-call path).
    # Padded W1 rows/cols and b1 entries are zero -> padded h columns are exactly 0.
    w1_t = jnp.zeros((F_pad, H_pad), jnp.bfloat16).at[:F, :H].set(
        jnp.transpose(w1).astype(jnp.bfloat16))
    b1_p = jnp.zeros((1, H_pad), jnp.float32).at[:, :H].set(
        b1.astype(jnp.float32).reshape(1, H))
    w2_t = jnp.zeros((H_pad, O_pad), jnp.bfloat16).at[:H, :O].set(
        jnp.transpose(w2).astype(jnp.bfloat16))
    # Bake the padded-class mask into b2: padded W2 columns are zero, so padded
    # logits become exactly -1e30 via the bias add (no in-kernel masking needed).
    b2_p = jnp.full((1, O_pad), -1e30, jnp.float32).at[:, :O].set(
        b2.astype(jnp.float32).reshape(1, O))

    def _forward(x):
        B, Fx = x.shape
        assert Fx == F

        # Tile selection: one big tile for small B (no grid overhead on the
        # single-TC v5e/v6e); for large B, split into the fewest tiles that keep
        # batch padding small.
        if B <= tb_max:
            TB = _round_up(B, 8)
        else:
            n_tiles = -(-B // tb_max)
            TB = _round_up(-(-B // n_tiles), 16)
        B_pad = _round_up(B, TB)

        # bf16 x, zero-padded to (B_pad, F_pad): halves the x DMA and gives
        # lane-dense (…,896) vregs for the fc1 K dim.
        x_p = jnp.zeros((B_pad, F_pad), jnp.bfloat16).at[:B, :F].set(
            x.astype(jnp.bfloat16))

        grid = (B_pad // TB,)

        cost = pl.CostEstimate(
            flops=2 * B_pad * F_pad * H_pad + 2 * B_pad * H_pad * O_pad,
            transcendentals=B_pad * O_pad,
            bytes_accessed=(F_pad * H_pad * 2 + H_pad * O_pad * 2   # bf16 weights
                            + H_pad * 4 + O_pad * 4                 # f32 biases
                            + B_pad * F_pad * 2                     # bf16 x
                            + B_pad * O_pad * 4),                   # f32 out
        )

        out = pl.pallas_call(
            mlp_kernel,
            out_shape=jax.ShapeDtypeStruct((B_pad, O_pad), jnp.float32),
            grid_spec=pltpu.PrefetchScalarGridSpec(
                num_scalar_prefetch=0,
                grid=grid,
                in_specs=[
                    # Batch-tiled bf16 activations.
                    pl.BlockSpec((TB, F_pad), lambda b: (b, 0)),
                    # Constant block indices -> weights/biases stay resident in
                    # VMEM across batch tiles (weight DMA paid once).
                    pl.BlockSpec((F_pad, H_pad), lambda b: (0, 0)),
                    pl.BlockSpec((1, H_pad), lambda b: (0, 0)),
                    pl.BlockSpec((H_pad, O_pad), lambda b: (0, 0)),
                    pl.BlockSpec((1, O_pad), lambda b: (0, 0)),
                ],
                out_specs=pl.BlockSpec((TB, O_pad), lambda b: (b, 0)),
            ),
            compiler_params=pltpu.CompilerParams(
                # Batch tiles are independent -> shard across cores on v7x.
                dimension_semantics=("parallel",),
            ),
            cost_estimate=cost,
        )(x_p, w1_t, b1_p, w2_t, b2_p)

        return out[:B, :O]

    return jax.jit(_forward)


if __name__ == "__main__":
    INPUTS = 28 * 28   # 784 (fixed by the module)
    HIDDEN = 1000      # fixed by the module
    OUTPUTS = 10       # fixed by the module
    BATCH = 16         # small batch; single tile, grid=(1,)

    key = jax.random.PRNGKey(0)
    kx, kw1, kb1, kw2, kb2 = jax.random.split(key, 5)

    # Deterministic parameter init (PyTorch nn.Linear-like uniform bounds).
    bound1 = 1.0 / (INPUTS ** 0.5)
    w1 = jax.random.uniform(kw1, (HIDDEN, INPUTS), jnp.float32, -bound1, bound1)
    b1 = jax.random.uniform(kb1, (HIDDEN,), jnp.float32, -bound1, bound1)
    bound2 = 1.0 / (HIDDEN ** 0.5)
    w2 = jax.random.uniform(kw2, (OUTPUTS, HIDDEN), jnp.float32, -bound2, bound2)
    b2 = jax.random.uniform(kb2, (OUTPUTS,), jnp.float32, -bound2, bound2)

    x = jax.random.normal(kx, (BATCH, INPUTS), jnp.float32)

    # Parameter preprocessing happens ONCE here, outside the per-call path.
    fwd = make_nnprac1_forward(w1, b1, w2, b2)
    out = fwd(x)
    jax.block_until_ready(out)

    # Reference 1: mirrors the kernel's bf16 weight/activation quantization.
    xr = jnp.maximum(x, 0.0)
    h_q = jnp.dot(xr.astype(jnp.bfloat16), jnp.transpose(w1).astype(jnp.bfloat16),
                  preferred_element_type=jnp.float32) + b1
    logits_q = jnp.dot(h_q.astype(jnp.bfloat16), jnp.transpose(w2).astype(jnp.bfloat16),
                       preferred_element_type=jnp.float32) + b2
    ref_q = jax.nn.softmax(logits_q, axis=1)

    # Reference 2: pure-f32 semantics of the original PyTorch module.
    ref_f32 = jax.nn.softmax((xr @ w1.T + b1) @ w2.T + b2, axis=1)

    assert out.shape == (BATCH, OUTPUTS)
    assert jnp.allclose(out, ref_q, atol=2e-3), "mismatch vs bf16 reference"
    assert jnp.allclose(out, ref_f32, atol=2e-2), "mismatch vs f32 reference"
    assert jnp.allclose(jnp.sum(out, axis=1), 1.0, atol=1e-3), "rows must sum to 1"

    print("KERNEL_OK")
</pallas_src>

<mosaic_0001>
module attributes {stable_mosaic.version = 11 : i64} {
  func.func @mlp_kernel(%arg0: i32, %arg1: memref<16x896xbf16, #tpu.memory_space<vmem>>, %arg2: memref<896x1024xbf16, #tpu.memory_space<vmem>>, %arg3: memref<1x1024xf32, #tpu.memory_space<vmem>>, %arg4: memref<1024x128xbf16, #tpu.memory_space<vmem>>, %arg5: memref<1x128xf32, #tpu.memory_space<vmem>>, %arg6: memref<16x128xf32, #tpu.memory_space<vmem>>) attributes {dimension_semantics = [#tpu.dimension_semantics<parallel>], iteration_bounds = array<i64: 1>, scalar_prefetch = 0 : i64, scratch_operands = 0 : i64, tpu.core_type = #tpu.core_type<tc>, window_params = [{transform_indices = @transform_0, window_bounds = array<i64: 16, 896>}, {pipeline_mode = #tpu.pipeline_mode<synchronous>, transform_indices = @transform_1, window_bounds = array<i64: 896, 1024>}, {pipeline_mode = #tpu.pipeline_mode<synchronous>, transform_indices = @transform_2, window_bounds = array<i64: 1, 1024>}, {pipeline_mode = #tpu.pipeline_mode<synchronous>, transform_indices = @transform_3, window_bounds = array<i64: 1024, 128>}, {pipeline_mode = #tpu.pipeline_mode<synchronous>, transform_indices = @transform_4, window_bounds = array<i64: 1, 128>}, {transform_indices = @transform_5, window_bounds = array<i64: 16, 128>}]} {
    %c0 = arith.constant 0 : index
    %c0_0 = arith.constant 0 : index
    %0 = vector.load %arg1[%c0, %c0_0] : memref<16x896xbf16, #tpu.memory_space<vmem>>, vector<16x896xbf16>
    %cst = arith.constant 0.000000e+00 : bf16
    %1 = vector.broadcast %cst : bf16 to vector<16x896xbf16>
    %2 = arith.maximumf %0, %1 : vector<16x896xbf16>
    %c0_1 = arith.constant 0 : index
    %c0_2 = arith.constant 0 : index
    %3 = vector.load %arg2[%c0_1, %c0_2] : memref<896x1024xbf16, #tpu.memory_space<vmem>>, vector<896x1024xbf16>
    %cst_3 = arith.constant dense<0.000000e+00> : vector<16x1024xf32>
    %4 = tpu.matmul %2, %3, %cst_3 {dimension_numbers = #tpu.dot_dimension_numbers<[1], [0], [0], [1], [0, 0, 1, 1], [], []>} : vector<16x896xbf16>, vector<896x1024xbf16>, vector<16x1024xf32> -> vector<16x1024xf32>
    %c0_4 = arith.constant 0 : index
    %c0_5 = arith.constant 0 : index
    %5 = vector.load %arg3[%c0_4, %c0_5] : memref<1x1024xf32, #tpu.memory_space<vmem>>, vector<1x1024xf32>
    %6 = vector.broadcast %5 : vector<1x1024xf32> to vector<16x1024xf32>
    %7 = arith.addf %4, %6 : vector<16x1024xf32>
    %8 = arith.truncf %7 : vector<16x1024xf32> to vector<16x1024xbf16>
    %c0_6 = arith.constant 0 : index
    %c0_7 = arith.constant 0 : index
    %9 = vector.load %arg4[%c0_6, %c0_7] : memref<1024x128xbf16, #tpu.memory_space<vmem>>, vector<1024x128xbf16>
    %cst_8 = arith.constant dense<0.000000e+00> : vector<16x128xf32>
    %10 = tpu.matmul %8, %9, %cst_8 {dimension_numbers = #tpu.dot_dimension_numbers<[1], [0], [0], [1], [0, 0, 1, 1], [], []>} : vector<16x1024xbf16>, vector<1024x128xbf16>, vector<16x128xf32> -> vector<16x128xf32>
    %c0_9 = arith.constant 0 : index
    %c0_10 = arith.constant 0 : index
    %11 = vector.load %arg5[%c0_9, %c0_10] : memref<1x128xf32, #tpu.memory_space<vmem>>, vector<1x128xf32>
    %12 = vector.broadcast %11 : vector<1x128xf32> to vector<16x128xf32>
    %13 = arith.addf %10, %12 : vector<16x128xf32>
    %cst_11 = arith.constant dense<0xFF800000> : vector<16xf32>
    %14 = vector.multi_reduction <maximumf>, %13, %cst_11 [1] : vector<16x128xf32> to vector<16xf32>
    %15 = vector.shape_cast %14 : vector<16xf32> to vector<16x1xf32>
    %16 = vector.broadcast %15 : vector<16x1xf32> to vector<16x128xf32>
    %17 = arith.subf %13, %16 : vector<16x128xf32>
    %18 = math.exp %17 : vector<16x128xf32>
    %cst_12 = arith.constant dense<0.000000e+00> : vector<16xf32>
    %19 = vector.multi_reduction <add>, %18, %cst_12 [1] : vector<16x128xf32> to vector<16xf32>
    %20 = vector.shape_cast %19 : vector<16xf32> to vector<16x1xf32>
    %21 = vector.broadcast %20 : vector<16x1xf32> to vector<16x128xf32>
    %22 = arith.divf %18, %21 : vector<16x128xf32>
    %c0_13 = arith.constant 0 : index
    %c0_14 = arith.constant 0 : index
    %23 = vector.load %arg6[%c0_13, %c0_14] : memref<16x128xf32, #tpu.memory_space<vmem>>, vector<16x128xf32>
    tpu.vector_store %arg6[%c0_13, %c0_14], %22 {strides = array<i32>} : memref<16x128xf32, #tpu.memory_space<vmem>>, vector<16x128xf32>,
    return
  }
  func.func @transform_0(%arg0: i32) -> (i32, i32) {
    %c0_i32 = arith.constant 0 : i32
    %c0_i32_0 = arith.constant 0 : i32
    return %arg0, %c0_i32 : i32, i32
  }
  func.func @transform_1(%arg0: i32) -> (i32, i32) {
    %c0_i32 = arith.constant 0 : i32
    %c0_i32_0 = arith.constant 0 : i32
    %c0_i32_1 = arith.constant 0 : i32
    return %c0_i32, %c0_i32_0 : i32, i32
  }
  func.func @transform_2(%arg0: i32) -> (i32, i32) {
    %c0_i32 = arith.constant 0 : i32
    %c0_i32_0 = arith.constant 0 : i32
    %c0_i32_1 = arith.constant 0 : i32
    return %c0_i32, %c0_i32_0 : i32, i32
  }
  func.func @transform_3(%arg0: i32) -> (i32, i32) {
    %c0_i32 = arith.constant 0 : i32
    %c0_i32_0 = arith.constant 0 : i32
    %c0_i32_1 = arith.constant 0 : i32
    return %c0_i32, %c0_i32_0 : i32, i32
  }
  func.func @transform_4(%arg0: i32) -> (i32, i32) {
    %c0_i32 = arith.constant 0 : i32
    %c0_i32_0 = arith.constant 0 : i32
    %c0_i32_1 = arith.constant 0 : i32
    return %c0_i32, %c0_i32_0 : i32, i32
  }
  func.func @transform_5(%arg0: i32) -> (i32, i32) {
    %c0_i32 = arith.constant 0 : i32
    %c0_i32_0 = arith.constant 0 : i32
    return %arg0, %c0_i32 : i32, i32
  }
}

</mosaic_0001>

<bundles_post_ra>
// kernel: _forward.1
= control target key start
LH: loop header
LB: loop body
LE: loop exit
PB: predicated region body
PF: predicated region fallthrough
CT: control target
= control target key end

     0   :  { %10 = vsyncpa [#allocation3], 0  ;;  %s7382_s0 = inlined_call_operand.vmem [shape: bf16[16,896], index: 0, kind: input, shape index: {}]   ;;  %s7383_s1 = inlined_call_operand.hbm [shape: bf16[896,1024], index: 1, kind: input, shape index: {}]   ;;  %s7384_s2 = inlined_call_operand.hbm [shape: f32[1,1024], index: 2, kind: input, shape index: {}]   ;;  %s7385_s3 = inlined_call_operand.hbm [shape: bf16[1024,128], index: 3, kind: input, shape index: {}]   ;;  %s7386_s4 = inlined_call_operand.hbm [shape: f32[1,128], index: 4, kind: input, shape index: {}]   ;;  %s7387_s5 = inlined_call_operand.hbm [shape: f32[16,128], index: 5, kind: output, shape index: {}]  }
   0x1   :  { %11 = vsyncpa [#allocation6], 0 }
   0x2   :  { %12 = vsyncpa [#allocation9], 0  ;;  %s34_s20 = sshll.u32 %s7384_s2, 4  ;;  %s35_s20 = int_to_ptr.hbm [resolvable:$true] %s34_s20 }
   0x3   :  { %13 = vsyncpa [#allocation4], 0  ;;  %s7025_s21 = smov [#allocation5]   ;;  %s20_s25 = sshll.u32 %s7383_s1, 4  ;;  %s21_s25 = int_to_ptr.hbm [resolvable:$true] %s20_s25 }
   0x4   :  { %s36_s22 = sshll.u32 %s7025_s21, 4  ;;  %s7026_s26 = smov [#allocation2]   ;;  %s37_s22 = int_to_ptr.vmem [resolvable:$true] %s36_s22 }
   0x5   :  { %39 = dma.hbm_to_vmem [thread:$0]  %s35_s20, 128, %s37_s22, [#allocation6]  }
   0x6   :  { %s22_s27 = sshll.u32 %s7026_s26, 4  ;;  %s7027_s28 = smov 512   ;;  %s23_s27 = int_to_ptr.vmem [resolvable:$true] %s22_s27 }
   0x7   :  { %s7028_s29 = smov 32   ;;  %s44_s2 = sshll.u32 %s7385_s3, 4  ;;  %s45_s2 = int_to_ptr.hbm [resolvable:$true] %s44_s2 }
   0x8   :  { %28 = dma.hbm_to_vmem [thread:$0]  %s21_s25, 57344, %s23_s27, [#allocation3], %s7027_s28, %s7027_s28, %s7028_s29  }
   0x9   :  { %s7029_s7 = smov [#allocation7]   ;;  %s58_s1 = sshll.u32 %s7386_s4, 4  ;;  %s59_s1 = int_to_ptr.hbm [resolvable:$true] %s58_s1 }
   0xa   :  { %s46_s8 = sshll.u32 %s7029_s7, 4  ;;  %s7030_s11 = smov 64   ;;  %s47_s8 = int_to_ptr.vmem [resolvable:$true] %s46_s8 }
   0xb   :  { %s7031_s12 = smov 4   ;;  %s7032_s13 = smov [#allocation8]  }
   0xc   :  { %52 = dma.hbm_to_vmem [thread:$0]  %s45_s2, 8192, %s47_s8, [#allocation6], %s7030_s11, %s7030_s11, %s7031_s12  }
   0xd   :  { %s60_s14 = sshll.u32 %s7032_s13, 4  ;;  %s61_s14 = int_to_ptr.vmem [resolvable:$true] %s60_s14 }
   0xe   :  { %63 = dma.hbm_to_vmem [thread:$0]  %s59_s1, 16, %s61_s14, [#allocation9]  }
   0xf   :  { %7017 = dma.done.wait [#allocation3], 57344  }
  0x10   :  { %7018 = vsyncadd [#allocation3], 4294909952 }
  0x11   :  { %7019 = dma.done.wait [#allocation6], 8320  }
  0x12   :  { %7020 = vsyncadd [#allocation6], 4294958976 }
  0x13   :  { %7021 = dma.done.wait [#allocation9], 16  }
  0x14   :  { %7022 = vsyncadd [#allocation9], 4294967280  ;;  %v4542_v0 = vld [vmem:[#allocation2 + $0x1c0] sm:$0xf]  ;;  %s4301_s2 = sshll.u32 %s7387_s5, 4  ;;  %s7034_s7 = smov 128   ;;  %s4302_s2 = int_to_ptr.hbm [resolvable:$true] %s4301_s2 }
  0x15   :  { %v6424_v1 = vld [vmem:[#allocation2 + $0x1dc] sm:$0xf0]  ;;  %s7035_s8 = smov 8  }
  0x16   :  { %v4798_v2 = vld [vmem:[#allocation2 + $0x3c0] sm:$0xf]  ;;  %v4543_v3 = vor.u32 %v6424_v1, %v4542_v0 }
  0x17   :  { %v6488_v4 = vld [vmem:[#allocation2 + $0x3dc] sm:$0xf0] }
  0x18   :  { %v5054_v5 = vld [vmem:[#allocation2 + $0x5c0] sm:$0xf]  ;;  %v4799_v7 = vor.u32 %v6488_v4, %v4798_v2  ;;  %2829 = vmatpush.bf16.msra.mxu0 %v4543_v3 }
  0x19   :  { %v6552_v6 = vld [vmem:[#allocation2 + $0x5dc] sm:$0xf0] }
  0x1a   :  { %v5055_v8 = vor.u32 %v6552_v6, %v5054_v5  ;;  %v5310_v9 = vld [vmem:[#allocation2 + $0x7c0] sm:$0xf]  ;;  %2843 = vmatpush.bf16.msra.mxu1 %v4799_v7 }
  0x1b   :  { %v6616_v10 = vld [vmem:[#allocation2 + $0x7dc] sm:$0xf0] }
  0x1c   :  { %v4510_v11 = vld [vmem:[#allocation2 + $0x180] sm:$0xf]  ;;  %v5311_v12 = vor.u32 %v6616_v10, %v5310_v9  ;;  %2857 = vmatpush.bf16.msra.mxu2 %v5055_v8 }
  0x1d   :  { %v6416_v13 = vld [vmem:[#allocation2 + $0x19c] sm:$0xf0] }
  0x1e   :  { %v4766_v14 = vld [vmem:[#allocation2 + $0x380] sm:$0xf]  ;;  %v4511_v16 = vor.u32 %v6416_v13, %v4510_v11  ;;  %2871 = vmatpush.bf16.msra.mxu3 %v5311_v12 }
  0x1f   :  { %v6480_v15 = vld [vmem:[#allocation2 + $0x39c] sm:$0xf0] }
  0x20   :  { %v4767_v17 = vor.u32 %v6480_v15, %v4766_v14  ;;  %v5022_v18 = vld [vmem:[#allocation2 + $0x580] sm:$0xf]  ;;  %2830 = vmatpush.bf16.msra.mxu0 %v4511_v16 }
  0x21   :  { %v6544_v19 = vld [vmem:[#allocation2 + $0x59c] sm:$0xf0] }
  0x22   :  { %v5278_v20 = vld [vmem:[#allocation2 + $0x780] sm:$0xf]  ;;  %v5023_v21 = vor.u32 %v6544_v19, %v5022_v18  ;;  %2844 = vmatpush.bf16.msra.mxu1 %v4767_v17 }
  0x23   :  { %v6608_v22 = vld [vmem:[#allocation2 + $0x79c] sm:$0xf0] }
  0x24   :  { %v4478_v23 = vld [vmem:[#allocation2 + $0x140] sm:$0xf]  ;;  %v5279_v25 = vor.u32 %v6608_v22, %v5278_v20  ;;  %2858 = vmatpush.bf16.msra.mxu2 %v5023_v21 }
  0x25   :  { %v6408_v24 = vld [vmem:[#allocation2 + $0x15c] sm:$0xf0] }
  0x26   :  { %v4734_v26 = vld [vmem:[#allocation2 + $0x340] sm:$0xf]  ;;  %v4479_v29 = vor.u32 %v6408_v24, %v4478_v23  ;;  %2872 = vmatpush.bf16.msra.mxu3 %v5279_v25 }
  0x27   :  { %v6472_v27 = vld [vmem:[#allocation2 + $0x35c] sm:$0xf0] }
  0x28   :  { %v4990_v28 = vld [vmem:[#allocation2 + $0x540] sm:$0xf]  ;;  %v4735_v33 = vor.u32 %v6472_v27, %v4734_v26  ;;  %2831 = vmatpush.bf16.msra.mxu0 %v4479_v29 }
  0x29   :  { %v6536_v30 = vld [vmem:[#allocation2 + $0x55c] sm:$0xf0] }
  0x2a   :  { %v5246_v31 = vld [vmem:[#allocation2 + $0x740] sm:$0xf]  ;;  %v4991_v34 = vor.u32 %v6536_v30, %v4990_v28  ;;  %2845 = vmatpush.bf16.msra.mxu1 %v4735_v33 }
  0x2b   :  { %v6600_v32 = vld [vmem:[#allocation2 + $0x75c] sm:$0xf0] }
  0x2c   :  { %v4446_v35 = vld [vmem:[#allocation2 + $0x100] sm:$0xf]  ;;  %v5247_v38 = vor.u32 %v6600_v32, %v5246_v31  ;;  %2859 = vmatpush.bf16.msra.mxu2 %v4991_v34 }
  0x2d   :  { %v6400_v36 = vld [vmem:[#allocation2 + $0x11c] sm:$0xf0] }
  0x2e   :  { %v4702_v37 = vld [vmem:[#allocation2 + $0x300] sm:$0xf]  ;;  %v4447_v44 = vor.u32 %v6400_v36, %v4446_v35  ;;  %2873 = vmatpush.bf16.msra.mxu3 %v5247_v38  ;;  %v4544_v38 = vld [vmem:[#allocation2 + $0x1e0] sm:$0xf0] }
  0x2f   :  { %v6464_v39 = vld [vmem:[#allocation2 + $0x31c] sm:$0xf0] }
  0x30   :  { %v4958_v40 = vld [vmem:[#allocation2 + $0x500] sm:$0xf]  ;;  %v4703_v45 = vor.u32 %v6464_v39, %v4702_v37  ;;  %2832 = vmatpush.bf16.msra.mxu0 %v4447_v44  ;;  %v6420_v37 = vld [vmem:[#allocation2 + $0x1c4] sm:$0xf] }
  0x31   :  { %v6528_v41 = vld [vmem:[#allocation2 + $0x51c] sm:$0xf0] }
  0x32   :  { %v5214_v42 = vld [vmem:[#allocation2 + $0x700] sm:$0xf]  ;;  %v4959_v46 = vor.u32 %v6528_v41, %v4958_v40  ;;  %2846 = vmatpush.bf16.msra.mxu1 %v4703_v45 }
  0x33   :  { %v6592_v43 = vld [vmem:[#allocation2 + $0x71c] sm:$0xf0] }
  0x34   :  { %v4414_v47 = vld [vmem:[#allocation2 + $0xc0] sm:$0xf]  ;;  %v5215_v50 = vor.u32 %v6592_v43, %v5214_v42  ;;  %2860 = vmatpush.bf16.msra.mxu2 %v4959_v46 }
  0x35   :  { %v6392_v48 = vld [vmem:[#allocation2 + $0xdc] sm:$0xf0] }
  0x36   :  { %v4670_v49 = vld [vmem:[#allocation2 + $0x2c0] sm:$0xf]  ;;  %v4415_v56 = vor.u32 %v6392_v48, %v4414_v47  ;;  %2874 = vmatpush.bf16.msra.mxu3 %v5215_v50  ;;  %v4547_v48 = vor.u32 %v6420_v37, %v4544_v38  ;;  %v6412_v50 = vld [vmem:[#allocation2 + $0x184] sm:$0xf] }
  0x37   :  { %v6456_v51 = vld [vmem:[#allocation2 + $0x2dc] sm:$0xf0] }
  0x38   :  { %v4926_v52 = vld [vmem:[#allocation2 + $0x4c0] sm:$0xf]  ;;  %v4671_v57 = vor.u32 %v6456_v51, %v4670_v49  ;;  %2833 = vmatpush.bf16.msra.mxu0 %v4415_v56  ;;  %v4512_v51 = vld [vmem:[#allocation2 + $0x1a0] sm:$0xf0]  ;;  %v81_v56 = vld [vmem:[%s7382_s0 + $0x8] sm:$0xff] }
  0x39   :  { %v6520_v53 = vld [vmem:[#allocation2 + $0x4dc] sm:$0xf0] }
  0x3a   :  { %v5182_v54 = vld [vmem:[#allocation2 + $0x6c0] sm:$0xf]  ;;  %v4927_v58 = vor.u32 %v6520_v53, %v4926_v52  ;;  %2847 = vmatpush.bf16.msra.mxu1 %v4671_v57 }
  0x3b   :  { %v6584_v55 = vld [vmem:[#allocation2 + $0x6dc] sm:$0xf0] }
  0x3c   :  { %v4382_v59 = vld [vmem:[#allocation2 + $0x80] sm:$0xf]  ;;  %v5183_v62 = vor.u32 %v6584_v55, %v5182_v54  ;;  %2861 = vmatpush.bf16.msra.mxu2 %v4927_v58 }
  0x3d   :  { %v6384_v60 = vld [vmem:[#allocation2 + $0x9c] sm:$0xf0] }
  0x3e   :  { %v4638_v61 = vld [vmem:[#allocation2 + $0x280] sm:$0xf]  ;;  %v4383_v4 = vor.u32 %v6384_v60, %v4382_v59  ;;  %2875 = vmatpush.bf16.msra.mxu3 %v5183_v62  ;;  %v90_v62 = vunpack.c.l.bf16 %v81_v56 }
  0x3f   :  { %v6448_v63 = vld [vmem:[#allocation2 + $0x29c] sm:$0xf0] }
  0x40   :  { %v4894_v0 = vld [vmem:[#allocation2 + $0x480] sm:$0xf]  ;;  %v4639_v5 = vor.u32 %v6448_v63, %v4638_v61  ;;  %2834 = vmatpush.bf16.msra.mxu0 %v4383_v4  ;;  %v85_v61 = vld [vmem:[%s7382_s0 + $0x24] sm:$0xff] }
  0x41   :  { %v6512_v1 = vld [vmem:[#allocation2 + $0x49c] sm:$0xf0]  ;;  %v97_v4 = vunpack.c.l.bf16 %v85_v61 }
  0x42   :  { %v5150_v2 = vld [vmem:[#allocation2 + $0x680] sm:$0xf]  ;;  %v4895_v6 = vor.u32 %v6512_v1, %v4894_v0  ;;  %2848 = vmatpush.bf16.msra.mxu1 %v4639_v5 }
  0x43   :  { %v6576_v3 = vld [vmem:[#allocation2 + $0x69c] sm:$0xf0] }
  0x44   :  { %v4350_v7 = vld [vmem:[#allocation2 + $0x40] sm:$0xf]  ;;  %v5151_v10 = vor.u32 %v6576_v3, %v5150_v2  ;;  %2862 = vmatpush.bf16.msra.mxu2 %v4895_v6  ;;  %v91_v6 = vunpack.c.h.bf16 %v81_v56 }
  0x45   :  { %v6376_v8 = vld [vmem:[#allocation2 + $0x5c] sm:$0xf0] }
  0x46   :  { %v4606_v9 = vld [vmem:[#allocation2 + $0x240] sm:$0xf]  ;;  %v4351_v16 = vor.u32 %v6376_v8, %v4350_v7  ;;  %2876 = vmatpush.bf16.msra.mxu3 %v5151_v10  ;;  %v4515_v7 = vor.u32 %v6412_v50, %v4512_v51 }
  0x47   :  { %v6440_v11 = vld [vmem:[#allocation2 + $0x25c] sm:$0xf0] }
  0x48   :  { %v4862_v12 = vld [vmem:[#allocation2 + $0x440] sm:$0xf]  ;;  %v4607_v19 = vor.u32 %v6440_v11, %v4606_v9  ;;  %2835 = vmatpush.bf16.msra.mxu0 %v4351_v16  ;;  %v104_v11 = vmax.f32 %v90_v62, 0.0  ;;  %v98_v16 = vunpack.c.h.bf16 %v85_v61 }
  0x49   :  { %v6504_v13 = vld [vmem:[#allocation2 + $0x45c] sm:$0xf0] }
  0x4a   :  { %v5118_v14 = vld [vmem:[#allocation2 + $0x640] sm:$0xf]  ;;  %v4863_v20 = vor.u32 %v6504_v13, %v4862_v12  ;;  %2849 = vmatpush.bf16.msra.mxu1 %v4607_v19  ;;  %v6404_v12 = vld [vmem:[#allocation2 + $0x144] sm:$0xf] }
  0x4b   :  { %v6568_v15 = vld [vmem:[#allocation2 + $0x65c] sm:$0xf0]  ;;  %v4480_v13 = vld [vmem:[#allocation2 + $0x160] sm:$0xf0] }
  0x4c   :  { %v4318_v17 = vld [vmem:[#allocation2] sm:$0xf]  ;;  %v5119_v24 = vor.u32 %v6568_v15, %v5118_v14  ;;  %2863 = vmatpush.bf16.msra.mxu2 %v4863_v20  ;;  %v111_v14 = vmax.f32 %v97_v4, 0.0 }
  0x4d   :  { %v6368_v18 = vld [vmem:[#allocation2 + $0x1c] sm:$0xf0] }
  0x4e   :  { %v4574_v21 = vld [vmem:[#allocation2 + $0x200] sm:$0xf]  ;;  %v4319_v31 = vor.u32 %v6368_v18, %v4318_v17  ;;  %2877 = vmatpush.bf16.msra.mxu3 %v5119_v24 }
  0x4f   :  { %v6432_v22 = vld [vmem:[#allocation2 + $0x21c] sm:$0xf0] }
  0x50   :  { %v4830_v23 = vld [vmem:[#allocation2 + $0x400] sm:$0xf]  ;;  %v4575_v35 = vor.u32 %v6432_v22, %v4574_v21  ;;  %2836 = vmatpush.bf16.msra.mxu0 %v4319_v31 }
  0x51   :  { %v6496_v25 = vld [vmem:[#allocation2 + $0x41c] sm:$0xf0] }
  0x52   :  { %v5086_v26 = vld [vmem:[#allocation2 + $0x600] sm:$0xf]  ;;  %v4831_v36 = vor.u32 %v6496_v25, %v4830_v23  ;;  %2850 = vmatpush.bf16.msra.mxu1 %v4575_v35  ;;  %v7092_v25 = vpack.c.bf16 %v111_v14, %v104_v11  ;;  %v4352_v11 = vld [vmem:[#allocation2 + $0x60] sm:$0xf0] }
  0x53   :  { %v6560_v27 = vld [vmem:[#allocation2 + $0x61c] sm:$0xf0] }
  0x54   :  { %v5566_v28 = vld [vmem:[#allocation2 + $0x9c0] sm:$0xf]  ;;  %v5087_v40 = vor.u32 %v6560_v27, %v5086_v26  ;;  %2864 = vmatpush.bf16.msra.mxu2 %v4831_v36  ;;  %v105_v26 = vmax.f32 %v91_v6, 0.0  ;;  %v4483_v27 = vor.u32 %v6404_v12, %v4480_v13 }
  0x55   :  { %v6680_v29 = vld [vmem:[#allocation2 + $0x9dc] sm:$0xf0] }
  0x56   :  { %v5822_v30 = vld [vmem:[#allocation2 + $0xbc0] sm:$0xf]  ;;  %v5567_v41 = vor.u32 %v6680_v29, %v5566_v28  ;;  %2878 = vmatpush.bf16.msra.mxu3 %v5087_v40 }
  0x57   :  { %v6744_v32 = vld [vmem:[#allocation2 + $0xbdc] sm:$0xf0]  ;;  %2865 = vmatmul.bf16.vlgmr.msra.gmra.mxu2 %v7092_v25 }
  0x58   :  { %v6078_v33 = vld [vmem:[#allocation2 + $0xdc0] sm:$0xf]  ;;  %v5823_v45 = vor.u32 %v6744_v32, %v5822_v30  ;;  %2885 = vmatpush.bf16.msrb.mxu0 %v5567_v41  ;;  %v6396_v32 = vld [vmem:[#allocation2 + $0x104] sm:$0xf] }
  0x59   :  { %v6808_v34 = vld [vmem:[#allocation2 + $0xddc] sm:$0xf0] }
  0x5a   :  { %v5534_v39 = vld [vmem:[#allocation2 + $0x980] sm:$0xf]  ;;  %v6079_v46 = vor.u32 %v6808_v34, %v6078_v33  ;;  %2899 = vmatpush.bf16.msrb.mxu1 %v5823_v45  ;;  %2927 = vmatpush.bf16.msrb.mxu3 %v4547_v48  ;;  %v4448_v33 = vld [vmem:[#allocation2 + $0x120] sm:$0xf0]  ;;  %v112_v34 = vmax.f32 %v98_v16, 0.0 }
  0x5b   :  { %v6672_v42 = vld [vmem:[#allocation2 + $0x99c] sm:$0xf0] }
  0x5c   :  { %v5790_v43 = vld [vmem:[#allocation2 + $0xb80] sm:$0xf]  ;;  %v5535_v52 = vor.u32 %v6672_v42, %v5534_v39  ;;  %2913 = vmatpush.bf16.msrb.mxu2 %v6079_v46  ;;  %v7099_v41 = vpack.c.bf16 %v112_v34, %v105_v26  ;;  %v4451_v42 = vor.u32 %v6396_v32, %v4448_v33  ;;  %v6388_v46 = vld [vmem:[#allocation2 + $0xc4] sm:$0xf] }
  0x5d   :  { %v6736_v44 = vld [vmem:[#allocation2 + $0xb9c] sm:$0xf0]  ;;  %v4320_v32 = vld [vmem:[#allocation2 + $0x20] sm:$0xf0] }
  0x5e   :  { %v6046_v47 = vld [vmem:[#allocation2 + $0xd80] sm:$0xf]  ;;  %v5791_v53 = vor.u32 %v6736_v44, %v5790_v43  ;;  %2886 = vmatpush.bf16.msrb.mxu0 %v5535_v52  ;;  %2928 = vmatpush.bf16.msrb.mxu3 %v4515_v7  ;;  %v6484_v33 = vld [vmem:[#allocation2 + $0x3c4] sm:$0xf] }
  0x5f   :  { %v6800_v49 = vld [vmem:[#allocation2 + $0xd9c] sm:$0xf0]  ;;  %2879 = vmatmul.bf16.vlgmr.msra.gmra.mxu3 %v7099_v41  ;;  %v4800_v34 = vld [vmem:[#allocation2 + $0x3e0] sm:$0xf0] }
  0x60   :  { %v80_v54 = vld [vmem:[%s7382_s0] sm:$0xff]  ;;  %v6047_v0 = vor.u32 %v6800_v49, %v6046_v47  ;;  %2900 = vmatpush.bf16.msrb.mxu1 %v5791_v53 }
  0x61   :  { %v84_v55 = vld [vmem:[%s7382_s0 + $0x1c] sm:$0xff]  ;;  %v88_v59 = vunpack.c.l.bf16 %v80_v54  ;;  %v89_v63 = vunpack.c.h.bf16 %v80_v54  ;;  %v4416_v47 = vld [vmem:[#allocation2 + $0xe0] sm:$0xf0] }
  0x62   :  { %v5502_v57 = vld [vmem:[#allocation2 + $0x940] sm:$0xf]  ;;  %v95_v60 = vunpack.c.l.bf16 %v84_v55  ;;  %v96_v5 = vunpack.c.h.bf16 %v84_v55  ;;  %2914 = vmatpush.bf16.msrb.mxu2 %v6047_v0  ;;  %2929 = vmatpush.bf16.msrb.mxu3 %v4483_v27  ;;  %v4419_v54 = vor.u32 %v6388_v46, %v4416_v47  ;;  %v86_v0 = vld [vmem:[%s7382_s0 + $0x2c] sm:$0xff]  ;;  %v6364_v27 = vld [vmem:[#allocation2 + $0x4] sm:$0xf] }
  0x63   :  { %v6664_v58 = vld [vmem:[#allocation2 + $0x95c] sm:$0xf0]  ;;  %v102_v9 = vmax.f32 %v88_v59, 0.0  ;;  %v103_v15 = vmax.f32 %v89_v63, 0.0  ;;  %v4384_v59 = vld [vmem:[#allocation2 + $0xa0] sm:$0xf0] }
  0x64   :  { %v5758_v1 = vld [vmem:[#allocation2 + $0xb40] sm:$0xf]  ;;  %v109_v10 = vmax.f32 %v95_v60, 0.0  ;;  %v5503_v17 = vor.u32 %v6664_v58, %v5502_v57  ;;  %v110_v20 = vmax.f32 %v96_v5, 0.0  ;;  %v6380_v58 = vld [vmem:[#allocation2 + $0x84] sm:$0xf] }
  0x65   :  { %v6728_v2 = vld [vmem:[#allocation2 + $0xb5c] sm:$0xf0]  ;;  %v82_v60 = vld [vmem:[%s7382_s0 + $0x10] sm:$0xff]  ;;  %v4387_v6 = vor.u32 %v6380_v58, %v4384_v59  ;;  %v5568_v46 = vld [vmem:[#allocation2 + $0x9e0] sm:$0xf0] }
  0x66   :  { %v6014_v3 = vld [vmem:[#allocation2 + $0xd40] sm:$0xf]  ;;  %v7090_v19 = vpack.c.bf16 %v109_v10, %v102_v9  ;;  %v5759_v21 = vor.u32 %v6728_v2, %v5758_v1  ;;  %v7095_v31 = vpack.c.bf16 %v110_v20, %v103_v15  ;;  %2887 = vmatpush.bf16.msrb.mxu0 %v5503_v17  ;;  %2930 = vmatpush.bf16.msrb.mxu3 %v4451_v42  ;;  %v87_v9 = vld [vmem:[%s7382_s0 + $0x34] sm:$0xf]  ;;  %v6372_v10 = vld [vmem:[#allocation2 + $0x44] sm:$0xf]  ;;  %v92_v13 = vunpack.c.l.bf16 %v82_v60 }
  0x67   :  { %v6792_v8 = vld [vmem:[#allocation2 + $0xd5c] sm:$0xf0]  ;;  %v93_v20 = vunpack.c.h.bf16 %v82_v60  ;;  %v5312_v42 = vld [vmem:[#allocation2 + $0x7e0] sm:$0xf0] }
  0x68   :  { %v5470_v18 = vld [vmem:[#allocation2 + $0x900] sm:$0xf]  ;;  %v6015_v22 = vor.u32 %v6792_v8, %v6014_v3  ;;  %2837 = vmatmul.bf16.vlgmr.msra.gmra.mxu0 %v7090_v19  ;;  %2851 = vmatmul.bf16.vlgmr.msra.gmra.mxu1 %v7095_v31  ;;  %v83_v8 = vld [vmem:[%s7382_s0 + $0x18] sm:$0xf]  ;;  %v5024_v60 = vld [vmem:[#allocation2 + $0x5a0] sm:$0xf0] }
  0x69   :  { %v6656_v23 = vld [vmem:[#allocation2 + $0x91c] sm:$0xf0]  ;;  %2901 = vmatpush.bf16.msrb.mxu1 %v5759_v21  ;;  %v100_v21 = vunpack.c.h.bf16 %v86_v0  ;;  %s7033_s0 = smov [#allocation10]  }
  0x6a   :  { %v5726_v24 = vld [vmem:[#allocation2 + $0xb00] sm:$0xf]  ;;  %v5471_v35 = vor.u32 %v6656_v23, %v5470_v18  ;;  %2915 = vmatpush.bf16.msrb.mxu2 %v6015_v22  ;;  %2931 = vmatpush.bf16.msrb.mxu3 %v4419_v54  ;;  %v99_v18 = vunpack.c.l.bf16 %v86_v0  ;;  %s4299_s29 = sshll.u32 %s7033_s0, 4  ;;  %s4300_s29 = int_to_ptr.vmem [resolvable:$true] %s4299_s29 }
  0x6b   :  { %v6720_v28 = vld [vmem:[#allocation2 + $0xb1c] sm:$0xf0] }
  0x6c   :  { %v5982_v29 = vld [vmem:[#allocation2 + $0xd00] sm:$0xf]  ;;  %v5727_v36 = vor.u32 %v6720_v28, %v5726_v24  ;;  %2888 = vmatpush.bf16.msrb.mxu0 %v5471_v35  ;;  %v94_v28 = vunpack.c.l.bf16 %v83_v8  ;;  %v6532_v8 = vld [vmem:[#allocation2 + $0x544] sm:$0xf] }
  0x6d   :  { %v6784_v30 = vld [vmem:[#allocation2 + $0xd1c] sm:$0xf0] }
  0x6e   :  { %v5983_v37 = vor.u32 %v6784_v30, %v5982_v29  ;;  %v5438_v38 = vld [vmem:[#allocation2 + $0x8c0] sm:$0xf]  ;;  %2902 = vmatpush.bf16.msrb.mxu1 %v5727_v36  ;;  %v101_v29 = vunpack.c.l.bf16 %v87_v9  ;;  %2932 = vmatpush.bf16.msrb.mxu3 %v4387_v6  ;;  %v4355_v30 = vor.u32 %v6372_v10, %v4352_v11  ;;  %v6548_v36 = vld [vmem:[#allocation2 + $0x5c4] sm:$0xf]  ;;  %v108_v47 = vmax.f32 %v94_v28, 0.0 }
  0x6f   :  { %v6648_v39 = vld [vmem:[#allocation2 + $0x8dc] sm:$0xf0]  ;;  %v6468_v6 = vld [vmem:[#allocation2 + $0x344] sm:$0xf] }
  0x70   :  { %v5694_v40 = vld [vmem:[#allocation2 + $0xac0] sm:$0xf]  ;;  %v5439_v48 = vor.u32 %v6648_v39, %v5438_v38  ;;  %2916 = vmatpush.bf16.msrb.mxu2 %v5983_v37  ;;  %v5056_v37 = vld [vmem:[#allocation2 + $0x5e0] sm:$0xf0] }
  0x71   :  { %v6712_v43 = vld [vmem:[#allocation2 + $0xadc] sm:$0xf0]  ;;  %v6612_v38 = vld [vmem:[#allocation2 + $0x7c4] sm:$0xf] }
  0x72   :  { %v5950_v44 = vld [vmem:[#allocation2 + $0xcc0] sm:$0xf]  ;;  %v5695_v49 = vor.u32 %v6712_v43, %v5694_v40  ;;  %2889 = vmatpush.bf16.msrb.mxu0 %v5439_v48  ;;  %v6676_v43 = vld [vmem:[#allocation2 + $0x9c4] sm:$0xf]  ;;  %v115_v48 = vmax.f32 %v101_v29, 0.0  ;;  %2933 = vmatpush.bf16.msrb.mxu3 %v4355_v30  ;;  %v5315_v54 = vor.u32 %v6612_v38, %v5312_v42 }
  0x73   :  { %v6776_v45 = vld [vmem:[#allocation2 + $0xcdc] sm:$0xf0]  ;;  %v5571_v58 = vor.u32 %v6676_v43, %v5568_v46  ;;  %v4992_v10 = vld [vmem:[#allocation2 + $0x560] sm:$0xf0] }
  0x74   :  { %v5951_v50 = vor.u32 %v6776_v45, %v5950_v44  ;;  %v5406_v51 = vld [vmem:[#allocation2 + $0x880] sm:$0xf]  ;;  %2903 = vmatpush.bf16.msrb.mxu1 %v5695_v49  ;;  %v106_v44 = vmax.f32 %v92_v13, 0.0  ;;  %v113_v45 = vmax.f32 %v99_v18, 0.0  ;;  %v107_v49 = vmax.f32 %v93_v20, 0.0 }
  0x75   :  { %v6640_v52 = vld [vmem:[#allocation2 + $0x89c] sm:$0xf0]  ;;  %v6596_v11 = vld [vmem:[#allocation2 + $0x744] sm:$0xf] }
  0x76   :  { %v5662_v53 = vld [vmem:[#allocation2 + $0xa80] sm:$0xf]  ;;  %v5407_v61 = vor.u32 %v6640_v52, %v5406_v51  ;;  %2917 = vmatpush.bf16.msrb.mxu2 %v5951_v50  ;;  %v114_v50 = vmax.f32 %v100_v21, 0.0  ;;  %v4323_v51 = vor.u32 %v6364_v27, %v4320_v32  ;;  %v4803_v52 = vor.u32 %v6484_v33, %v4800_v34  ;;  %v6660_v13 = vld [vmem:[#allocation2 + $0x944] sm:$0xf] }
  0x77   :  { %v6704_v55 = vld [vmem:[#allocation2 + $0xa9c] sm:$0xf0]  ;;  %v7114_v59 = vpack.c.bf16 %v113_v45, %v106_v44  ;;  %v6460_v18 = vld [vmem:[#allocation2 + $0x304] sm:$0xf] }
  0x78   :  { %v5918_v56 = vld [vmem:[#allocation2 + $0xc80] sm:$0xf]  ;;  %v5663_v1 = vor.u32 %v6704_v55, %v5662_v53  ;;  %2890 = vmatpush.bf16.msrb.mxu0 %v5407_v61  ;;  %v5059_v53 = vor.u32 %v6548_v36, %v5056_v37  ;;  %v6476_v55 = vld [vmem:[#allocation2 + $0x384] sm:$0xf]  ;;  %v7118_v0 = vpack.c.bf16 %v114_v50, %v107_v49  ;;  %2934 = vmatpush.bf16.msrb.mxu3 %v4323_v51 }
  0x79   :  { %v6768_v57 = vld [vmem:[#allocation2 + $0xc9c] sm:$0xf0]  ;;  %v6604_v61 = vld [vmem:[#allocation2 + $0x784] sm:$0xf] }
  0x7a   :  { %v5374_v62 = vld [vmem:[#allocation2 + $0x840] sm:$0xf]  ;;  %v5919_v2 = vor.u32 %v6768_v57, %v5918_v56  ;;  %2904 = vmatpush.bf16.msrb.mxu1 %v5663_v1  ;;  %v4768_v56 = vld [vmem:[#allocation2 + $0x3a0] sm:$0xf0] }
  0x7b   :  { %v6632_v63 = vld [vmem:[#allocation2 + $0x85c] sm:$0xf0]  ;;  %v6540_v57 = vld [vmem:[#allocation2 + $0x584] sm:$0xf]  ;;  %2935 = vmatmul.bf16.vlgmr.msrb.gmra.mxu3 %v7090_v19 }
  0x7c   :  { %v5630_v3 = vld [vmem:[#allocation2 + $0xa40] sm:$0xf]  ;;  %v5375_v14 = vor.u32 %v6632_v63, %v5374_v62  ;;  %2918 = vmatpush.bf16.msrb.mxu2 %v5919_v2  ;;  %v5280_v62 = vld [vmem:[#allocation2 + $0x7a0] sm:$0xf0]  ;;  %v7116_v63 = vpack.c.bf16 %v115_v48, %v108_v47  ;;  %2983 = vmatpush.bf16.msra.mxu3 %v5571_v58 }
  0x7d   :  { %v6696_v4 = vld [vmem:[#allocation2 + $0xa5c] sm:$0xf0]  ;;  %v6668_v1 = vld [vmem:[#allocation2 + $0x984] sm:$0xf] }
  0x7e   :  { %v5886_v5 = vld [vmem:[#allocation2 + $0xc40] sm:$0xf]  ;;  %v5631_v22 = vor.u32 %v6696_v4, %v5630_v3  ;;  %2891 = vmatpush.bf16.msrb.mxu0 %v5375_v14  ;;  %v5536_v2 = vld [vmem:[#allocation2 + $0x9a0] sm:$0xf0]  ;;  %v4771_v3 = vor.u32 %v6476_v55, %v4768_v56  ;;  %v5027_v4 = vor.u32 %v6540_v57, %v5024_v60 }
  0x7f   :  { %v6760_v7 = vld [vmem:[#allocation2 + $0xc5c] sm:$0xf0]  ;;  %v5539_v9 = vor.u32 %v6668_v1, %v5536_v2  ;;  %v5504_v14 = vld [vmem:[#allocation2 + $0x960] sm:$0xf0] }
  0x80   :  { %v5342_v12 = vld [vmem:[#allocation2 + $0x800] sm:$0xf]  ;;  %v5887_v23 = vor.u32 %v6760_v7, %v5886_v5  ;;  %2905 = vmatpush.bf16.msrb.mxu1 %v5631_v22  ;;  %v5283_v5 = vor.u32 %v6604_v61, %v5280_v62  ;;  %v4736_v7 = vld [vmem:[#allocation2 + $0x360] sm:$0xf0]  ;;  %v5507_v22 = vor.u32 %v6660_v13, %v5504_v14 }
  0x81   :  { %v6624_v15 = vld [vmem:[#allocation2 + $0x81c] sm:$0xf0]  ;;  %v4704_v20 = vld [vmem:[#allocation2 + $0x320] sm:$0xf0]  ;;  %2984 = vmatpush.bf16.msra.mxu3 %v5539_v9 }
  0x82   :  { %v5598_v16 = vld [vmem:[#allocation2 + $0xa00] sm:$0xf]  ;;  %v5343_v35 = vor.u32 %v6624_v15, %v5342_v12  ;;  %2919 = vmatpush.bf16.msrb.mxu2 %v5887_v23  ;;  %v5248_v12 = vld [vmem:[#allocation2 + $0x760] sm:$0xf0]  ;;  %v4739_v15 = vor.u32 %v6468_v6, %v4736_v7  ;;  %v4707_v29 = vor.u32 %v6460_v18, %v4704_v20 }
  0x83   :  { %v6688_v17 = vld [vmem:[#allocation2 + $0xa1c] sm:$0xf0]  ;;  %v6524_v21 = vld [vmem:[#allocation2 + $0x504] sm:$0xf] }
  0x84   :  { %v5854_v24 = vld [vmem:[#allocation2 + $0xc00] sm:$0xf]  ;;  %v5599_v39 = vor.u32 %v6688_v17, %v5598_v16  ;;  %2892 = vmatpush.bf16.msrb.mxu0 %v5343_v35  ;;  %v4995_v16 = vor.u32 %v6532_v8, %v4992_v10  ;;  %v5251_v17 = vor.u32 %v6596_v11, %v5248_v12  ;;  %v4960_v23 = vld [vmem:[#allocation2 + $0x520] sm:$0xf0] }
  0x85   :  { %v6752_v26 = vld [vmem:[#allocation2 + $0xc1c] sm:$0xf0]  ;;  %v6652_v27 = vld [vmem:[#allocation2 + $0x904] sm:$0xf]  ;;  %v4963_v30 = vor.u32 %v6524_v21, %v4960_v23  ;;  %2985 = vmatpush.bf16.msra.mxu3 %v5507_v22 }
  0x86   :  { %v5855_v40 = vor.u32 %v6752_v26, %v5854_v24  ;;  %2906 = vmatpush.bf16.msrb.mxu1 %v5599_v39  ;;  %v6588_v24 = vld [vmem:[#allocation2 + $0x704] sm:$0xf] }
  0x87   :  { %2893 = vmatmul.bf16.vlgmr.msrb.gmra.mxu0 %v7114_v59  ;;  %v5216_v26 = vld [vmem:[#allocation2 + $0x720] sm:$0xf0] }
  0x88   :  { %2920 = vmatpush.bf16.msrb.mxu2 %v5855_v40  ;;  %2941 = vmatpush.bf16.msra.mxu0 %v4803_v52  ;;  %v5472_v28 = vld [vmem:[#allocation2 + $0x920] sm:$0xf0]  ;;  %v5219_v32 = vor.u32 %v6588_v24, %v5216_v26  ;;  %v4550_v24 = vld [vmem:[#allocation2 + $0x1c8] sm:$0xf] }
  0x89   :  { %2907 = vmatmul.bf16.vlgmr.msrb.gmra.mxu1 %v7118_v0  ;;  %v6452_v33 = vld [vmem:[#allocation2 + $0x2c4] sm:$0xf]  ;;  %v5475_v36 = vor.u32 %v6652_v27, %v5472_v28  ;;  %v6425_v26 = vld [vmem:[#allocation2 + $0x1e4] sm:$0xf0] }
  0x8a   :  { %2955 = vmatpush.bf16.msra.mxu1 %v5059_v53  ;;  %v4672_v34 = vld [vmem:[#allocation2 + $0x2e0] sm:$0xf0] }
  0x8b   :  { %2921 = vmatmul.bf16.vlgmr.msrb.gmra.mxu2 %v7116_v63  ;;  %v6516_v35 = vld [vmem:[#allocation2 + $0x4c4] sm:$0xf]  ;;  %v4675_v43 = vor.u32 %v6452_v33, %v4672_v34  ;;  %2986 = vmatpush.bf16.msra.mxu3 %v5475_v36 }
  0x8c   :  { %2969 = vmatpush.bf16.msra.mxu2 %v5315_v54  ;;  %2942 = vmatpush.bf16.msra.mxu0 %v4771_v3  ;;  %v4928_v37 = vld [vmem:[#allocation2 + $0x4e0] sm:$0xf0] }
  0x8d   :  { %v6580_v38 = vld [vmem:[#allocation2 + $0x6c4] sm:$0xf]  ;;  %v4931_v44 = vor.u32 %v6516_v35, %v4928_v37  ;;  %v4551_v35 = vor.u32 %v6425_v26, %v4550_v24 }
  0x8e   :  { %2956 = vmatpush.bf16.msra.mxu1 %v5027_v4  ;;  %v5184_v39 = vld [vmem:[#allocation2 + $0x6e0] sm:$0xf0] }
  0x8f   :  { %v6644_v40 = vld [vmem:[#allocation2 + $0x8c4] sm:$0xf]  ;;  %v5187_v45 = vor.u32 %v6580_v38, %v5184_v39 }
  0x90   :  { %2970 = vmatpush.bf16.msra.mxu2 %v5283_v5  ;;  %2943 = vmatpush.bf16.msra.mxu0 %v4739_v15  ;;  %v5440_v42 = vld [vmem:[#allocation2 + $0x8e0] sm:$0xf0] }
  0x91   :  { %v6444_v46 = vld [vmem:[#allocation2 + $0x284] sm:$0xf]  ;;  %v5443_v49 = vor.u32 %v6644_v40, %v5440_v42  ;;  %v4518_v42 = vld [vmem:[#allocation2 + $0x188] sm:$0xf] }
  0x92   :  { %2957 = vmatpush.bf16.msra.mxu1 %v4995_v16  ;;  %v4640_v47 = vld [vmem:[#allocation2 + $0x2a0] sm:$0xf0] }
  0x93   :  { %v6508_v48 = vld [vmem:[#allocation2 + $0x484] sm:$0xf]  ;;  %v4643_v55 = vor.u32 %v6444_v46, %v4640_v47  ;;  %2987 = vmatpush.bf16.msra.mxu3 %v5443_v49 }
  0x94   :  { %2971 = vmatpush.bf16.msra.mxu2 %v5251_v17  ;;  %2944 = vmatpush.bf16.msra.mxu0 %v4707_v29  ;;  %v4896_v50 = vld [vmem:[#allocation2 + $0x4a0] sm:$0xf0]  ;;  %v4806_v29 = vld [vmem:[#allocation2 + $0x3c8] sm:$0xf] }
  0x95   :  { %v6572_v51 = vld [vmem:[#allocation2 + $0x684] sm:$0xf]  ;;  %v4899_v56 = vor.u32 %v6508_v48, %v4896_v50 }
  0x96   :  { %2958 = vmatpush.bf16.msra.mxu1 %v4963_v30  ;;  %v5152_v52 = vld [vmem:[#allocation2 + $0x6a0] sm:$0xf0]  ;;  %v6489_v30 = vld [vmem:[#allocation2 + $0x3e4] sm:$0xf0] }
  0x97   :  { %v6636_v53 = vld [vmem:[#allocation2 + $0x884] sm:$0xf]  ;;  %v5155_v57 = vor.u32 %v6572_v51, %v5152_v52  ;;  %v4807_v39 = vor.u32 %v6489_v30, %v4806_v29 }
  0x98   :  { %2972 = vmatpush.bf16.msra.mxu2 %v5219_v32  ;;  %v5408_v54 = vld [vmem:[#allocation2 + $0x8a0] sm:$0xf0]  ;;  %2945 = vmatpush.bf16.msra.mxu0 %v4675_v43  ;;  %v6417_v43 = vld [vmem:[#allocation2 + $0x1a4] sm:$0xf0] }
  0x99   :  { %v6436_v58 = vld [vmem:[#allocation2 + $0x244] sm:$0xf]  ;;  %v5411_v62 = vor.u32 %v6636_v53, %v5408_v54  ;;  %v4519_v48 = vor.u32 %v6417_v43, %v4518_v42  ;;  %v4486_v54 = vld [vmem:[#allocation2 + $0x148] sm:$0xf] }
  0x9a   :  { %2959 = vmatpush.bf16.msra.mxu1 %v4931_v44  ;;  %v4608_v60 = vld [vmem:[#allocation2 + $0x260] sm:$0xf0]  ;;  %v4774_v44 = vld [vmem:[#allocation2 + $0x388] sm:$0xf] }
  0x9b   :  { %v6500_v61 = vld [vmem:[#allocation2 + $0x444] sm:$0xf]  ;;  %v4611_v6 = vor.u32 %v6436_v58, %v4608_v60  ;;  %2988 = vmatpush.bf16.msra.mxu3 %v5411_v62 }
  0x9c   :  { %2973 = vmatpush.bf16.msra.mxu2 %v5187_v45  ;;  %v4864_v1 = vld [vmem:[#allocation2 + $0x460] sm:$0xf0]  ;;  %2946 = vmatpush.bf16.msra.mxu0 %v4643_v55  ;;  %v6481_v45 = vld [vmem:[#allocation2 + $0x3a4] sm:$0xf0] }
  0x9d   :  { %v6564_v2 = vld [vmem:[#allocation2 + $0x644] sm:$0xf]  ;;  %v4867_v9 = vor.u32 %v6500_v61, %v4864_v1  ;;  %v4775_v52 = vor.u32 %v6481_v45, %v4774_v44  ;;  %v6409_v55 = vld [vmem:[#allocation2 + $0x164] sm:$0xf0] }
  0x9e   :  { %v5120_v3 = vld [vmem:[#allocation2 + $0x660] sm:$0xf0]  ;;  %2960 = vmatpush.bf16.msra.mxu1 %v4899_v56  ;;  %v4742_v56 = vld [vmem:[#allocation2 + $0x348] sm:$0xf]  ;;  %v4487_v61 = vor.u32 %v6409_v55, %v4486_v54 }
  0x9f   :  { %v6628_v4 = vld [vmem:[#allocation2 + $0x844] sm:$0xf]  ;;  %v5123_v10 = vor.u32 %v6564_v2, %v5120_v3  ;;  %v4358_v45 = vld [vmem:[#allocation2 + $0x48] sm:$0xf] }
  0xa0   :  { %v5376_v5 = vld [vmem:[#allocation2 + $0x860] sm:$0xf0]  ;;  %2974 = vmatpush.bf16.msra.mxu2 %v5155_v57  ;;  %2947 = vmatpush.bf16.msra.mxu0 %v4611_v6  ;;  %v6473_v57 = vld [vmem:[#allocation2 + $0x364] sm:$0xf0] }
  0xa1   :  { %v6428_v7 = vld [vmem:[#allocation2 + $0x204] sm:$0xf]  ;;  %v5379_v14 = vor.u32 %v6628_v4, %v5376_v5  ;;  %v4743_v3 = vor.u32 %v6473_v57, %v4742_v56  ;;  %v4454_v5 = vld [vmem:[#allocation2 + $0x108] sm:$0xf] }
  0xa2   :  { %v4576_v8 = vld [vmem:[#allocation2 + $0x220] sm:$0xf0]  ;;  %2961 = vmatpush.bf16.msra.mxu1 %v4867_v9  ;;  %v6401_v6 = vld [vmem:[#allocation2 + $0x124] sm:$0xf0] }
  0xa3   :  { %v6492_v11 = vld [vmem:[#allocation2 + $0x404] sm:$0xf]  ;;  %v4579_v22 = vor.u32 %v6428_v7, %v4576_v8  ;;  %2989 = vmatpush.bf16.msra.mxu3 %v5379_v14  ;;  %v4710_v7 = vld [vmem:[#allocation2 + $0x308] sm:$0xf] }
  0xa4   :  { %v4832_v12 = vld [vmem:[#allocation2 + $0x420] sm:$0xf0]  ;;  %2975 = vmatpush.bf16.msra.mxu2 %v5123_v10  ;;  %v6465_v8 = vld [vmem:[#allocation2 + $0x324] sm:$0xf0] }
  0xa5   :  { %v6556_v13 = vld [vmem:[#allocation2 + $0x604] sm:$0xf]  ;;  %v4835_v27 = vor.u32 %v6492_v11, %v4832_v12  ;;  %2948 = vmatpush.bf16.msra.mxu0 %v4579_v22  ;;  %v4455_v11 = vor.u32 %v6401_v6, %v4454_v5  ;;  %v4326_v56 = vld [vmem:[#allocation2 + $0x8] sm:$0xf] }
  0xa6   :  { %v5088_v15 = vld [vmem:[#allocation2 + $0x620] sm:$0xf0]  ;;  %v5574_v5 = vld [vmem:[#allocation2 + $0x9c8] sm:$0xf] }
  0xa7   :  { %v6620_v16 = vld [vmem:[#allocation2 + $0x804] sm:$0xf]  ;;  %v5091_v28 = vor.u32 %v6556_v13, %v5088_v15  ;;  %2962 = vmatpush.bf16.msra.mxu1 %v4835_v27  ;;  %v4711_v15 = vor.u32 %v6465_v8, %v4710_v7  ;;  %v6681_v6 = vld [vmem:[#allocation2 + $0x9e4] sm:$0xf0] }
  0xa8   :  { %v5344_v17 = vld [vmem:[#allocation2 + $0x820] sm:$0xf0]  ;;  %2949 = vmatmul.bf16.vlgmr.msra.gmra.mxu0 %v7095_v31 }
  0xa9   :  { %v6740_v18 = vld [vmem:[#allocation2 + $0xbc4] sm:$0xf]  ;;  %v5347_v32 = vor.u32 %v6620_v16, %v5344_v17  ;;  %2976 = vmatpush.bf16.msra.mxu2 %v5091_v28  ;;  %v4422_v17 = vld [vmem:[#allocation2 + $0xc8] sm:$0xf] }
  0xaa   :  { %v5824_v20 = vld [vmem:[#allocation2 + $0xbe0] sm:$0xf0]  ;;  %2963 = vmatmul.bf16.vlgmr.msra.gmra.mxu1 %v7092_v25 }
  0xab   :  { %v6804_v21 = vld [vmem:[#allocation2 + $0xdc4] sm:$0xf]  ;;  %v5827_v33 = vor.u32 %v6740_v18, %v5824_v20  ;;  %2990 = vmatpush.bf16.msra.mxu3 %v5347_v32  ;;  %v6393_v18 = vld [vmem:[#allocation2 + $0xe4] sm:$0xf0] }
  0xac   :  { %v6080_v23 = vld [vmem:[#allocation2 + $0xde0] sm:$0xf0]  ;;  %2977 = vmatmul.bf16.vlgmr.msra.gmra.mxu2 %v7099_v41  ;;  %v4678_v20 = vld [vmem:[#allocation2 + $0x2c8] sm:$0xf]  ;;  %v4423_v24 = vor.u32 %v6393_v18, %v4422_v17 }
  0xad   :  { %v6083_v34 = vor.u32 %v6804_v21, %v6080_v23  ;;  %v6732_v36 = vld [vmem:[#allocation2 + $0xb84] sm:$0xf]  ;;  %2997 = vmatpush.bf16.msrb.mxu0 %v5827_v33  ;;  %3025 = vmatpush.bf16.msrb.mxu2 %v4551_v35  ;;  %v6457_v21 = vld [vmem:[#allocation2 + $0x2e4] sm:$0xf0] }
  0xae   :  { %v5792_v37 = vld [vmem:[#allocation2 + $0xba0] sm:$0xf0]  ;;  %2991 = vmatmul.bf16.vlgmr.msra.gmra.mxu3 %v7114_v59  ;;  %v4679_v29 = vor.u32 %v6457_v21, %v4678_v20  ;;  %v4390_v32 = vld [vmem:[#allocation2 + $0x88] sm:$0xf] }
  0xaf   :  { %v6796_v38 = vld [vmem:[#allocation2 + $0xd84] sm:$0xf]  ;;  %v5795_v46 = vor.u32 %v6732_v36, %v5792_v37  ;;  %3011 = vmatpush.bf16.msrb.mxu1 %v6083_v34  ;;  %3039 = vmatpush.bf16.msrb.mxu3 %v4807_v39  ;;  %v6385_v33 = vld [vmem:[#allocation2 + $0xa4] sm:$0xf0] }
  0xb0   :  { %v6048_v40 = vld [vmem:[#allocation2 + $0xda0] sm:$0xf0]  ;;  %v4646_v34 = vld [vmem:[#allocation2 + $0x288] sm:$0xf] }
  0xb1   :  { %v6051_v47 = vor.u32 %v6796_v38, %v6048_v40  ;;  %v6724_v49 = vld [vmem:[#allocation2 + $0xb44] sm:$0xf]  ;;  %2998 = vmatpush.bf16.msrb.mxu0 %v5795_v46  ;;  %3026 = vmatpush.bf16.msrb.mxu2 %v4519_v48  ;;  %v6449_v35 = vld [vmem:[#allocation2 + $0x2a4] sm:$0xf0]  ;;  %v4391_v38 = vor.u32 %v6385_v33, %v4390_v32 }
  0xb2   :  { %v5760_v50 = vld [vmem:[#allocation2 + $0xb60] sm:$0xf0]  ;;  %v4647_v43 = vor.u32 %v6449_v35, %v4646_v34  ;;  %v6377_v46 = vld [vmem:[#allocation2 + $0x64] sm:$0xf0] }
  0xb3   :  { %v6788_v51 = vld [vmem:[#allocation2 + $0xd44] sm:$0xf]  ;;  %v5763_v58 = vor.u32 %v6724_v49, %v5760_v50  ;;  %3012 = vmatpush.bf16.msrb.mxu1 %v6051_v47  ;;  %3040 = vmatpush.bf16.msrb.mxu3 %v4775_v52  ;;  %v4614_v47 = vld [vmem:[#allocation2 + $0x248] sm:$0xf] }
  0xb4   :  { %v6016_v53 = vld [vmem:[#allocation2 + $0xd60] sm:$0xf0]  ;;  %v6441_v48 = vld [vmem:[#allocation2 + $0x264] sm:$0xf0] }
  0xb5   :  { %v6019_v60 = vor.u32 %v6788_v51, %v6016_v53  ;;  %v6716_v62 = vld [vmem:[#allocation2 + $0xb04] sm:$0xf]  ;;  %2999 = vmatpush.bf16.msrb.mxu0 %v5763_v58  ;;  %3027 = vmatpush.bf16.msrb.mxu2 %v4487_v61  ;;  %v4359_v53 = vor.u32 %v6377_v46, %v4358_v45  ;;  %v4615_v57 = vor.u32 %v6441_v48, %v4614_v47  ;;  %v6369_v58 = vld [vmem:[#allocation2 + $0x24] sm:$0xf0] }
  0xb6   :  { %v5728_v1 = vld [vmem:[#allocation2 + $0xb20] sm:$0xf0]  ;;  %v6433_v61 = vld [vmem:[#allocation2 + $0x224] sm:$0xf0]  ;;  %v4327_v8 = vor.u32 %v6369_v58, %v4326_v56 }
  0xb7   :  { %v6780_v2 = vld [vmem:[#allocation2 + $0xd04] sm:$0xf]  ;;  %v5731_v9 = vor.u32 %v6716_v62, %v5728_v1  ;;  %3013 = vmatpush.bf16.msrb.mxu1 %v6019_v60  ;;  %3041 = vmatpush.bf16.msrb.mxu3 %v4743_v3  ;;  %v4582_v60 = vld [vmem:[#allocation2 + $0x208] sm:$0xf] }
  0xb8   :  { %v5984_v4 = vld [vmem:[#allocation2 + $0xd20] sm:$0xf0]  ;;  %v5062_v62 = vld [vmem:[#allocation2 + $0x5c8] sm:$0xf] }
  0xb9   :  { %v5987_v10 = vor.u32 %v6780_v2, %v5984_v4  ;;  %v6708_v12 = vld [vmem:[#allocation2 + $0xac4] sm:$0xf]  ;;  %3000 = vmatpush.bf16.msrb.mxu0 %v5731_v9  ;;  %3028 = vmatpush.bf16.msrb.mxu2 %v4455_v11  ;;  %v6553_v1 = vld [vmem:[#allocation2 + $0x5e4] sm:$0xf0]  ;;  %v4583_v11 = vor.u32 %v6433_v61, %v4582_v60 }
  0xba   :  { %v5696_v13 = vld [vmem:[#allocation2 + $0xae0] sm:$0xf0]  ;;  %v5318_v2 = vld [vmem:[#allocation2 + $0x7c8] sm:$0xf] }
  0xbb   :  { %v6772_v14 = vld [vmem:[#allocation2 + $0xcc4] sm:$0xf]  ;;  %v5699_v22 = vor.u32 %v6708_v12, %v5696_v13  ;;  %3014 = vmatpush.bf16.msrb.mxu1 %v5987_v10  ;;  %3042 = vmatpush.bf16.msrb.mxu3 %v4711_v15  ;;  %v6617_v4 = vld [vmem:[#allocation2 + $0x7e4] sm:$0xf0]  ;;  %v5063_v12 = vor.u32 %v6553_v1, %v5062_v62 }
  0xbc   :  { %v5952_v16 = vld [vmem:[#allocation2 + $0xce0] sm:$0xf0]  ;;  %v5830_v9 = vld [vmem:[#allocation2 + $0xbc8] sm:$0xf]  ;;  %v5319_v13 = vor.u32 %v6617_v4, %v5318_v2 }
  0xbd   :  { %v5955_v23 = vor.u32 %v6772_v14, %v5952_v16  ;;  %v6700_v26 = vld [vmem:[#allocation2 + $0xa84] sm:$0xf]  ;;  %3001 = vmatpush.bf16.msrb.mxu0 %v5699_v22  ;;  %3029 = vmatpush.bf16.msrb.mxu2 %v4423_v24  ;;  %v6745_v10 = vld [vmem:[#allocation2 + $0xbe4] sm:$0xf0]  ;;  %v5575_v14 = vor.u32 %v6681_v6, %v5574_v5 }
  0xbe   :  { %v5664_v27 = vld [vmem:[#allocation2 + $0xaa0] sm:$0xf0]  ;;  %v5030_v15 = vld [vmem:[#allocation2 + $0x588] sm:$0xf]  ;;  %v5831_v18 = vor.u32 %v6745_v10, %v5830_v9 }
  0xbf   :  { %v6764_v28 = vld [vmem:[#allocation2 + $0xc84] sm:$0xf]  ;;  %v5667_v36 = vor.u32 %v6700_v26, %v5664_v27  ;;  %3015 = vmatpush.bf16.msrb.mxu1 %v5955_v23  ;;  %3043 = vmatpush.bf16.msrb.mxu3 %v4679_v29  ;;  %v6545_v16 = vld [vmem:[#allocation2 + $0x5a4] sm:$0xf0] }
  0xc0   :  { %v5920_v30 = vld [vmem:[#allocation2 + $0xca0] sm:$0xf0]  ;;  %v5286_v17 = vld [vmem:[#allocation2 + $0x788] sm:$0xf]  ;;  %v5031_v26 = vor.u32 %v6545_v16, %v5030_v15 }
  0xc1   :  { %v5923_v37 = vor.u32 %v6764_v28, %v5920_v30  ;;  %v6692_v39 = vld [vmem:[#allocation2 + $0xa44] sm:$0xf]  ;;  %3002 = vmatpush.bf16.msrb.mxu0 %v5667_v36  ;;  %3030 = vmatpush.bf16.msrb.mxu2 %v4391_v38  ;;  %v6609_v20 = vld [vmem:[#allocation2 + $0x7a4] sm:$0xf0] }
  0xc2   :  { %v5632_v40 = vld [vmem:[#allocation2 + $0xa60] sm:$0xf0]  ;;  %v5542_v21 = vld [vmem:[#allocation2 + $0x988] sm:$0xf]  ;;  %v5287_v27 = vor.u32 %v6609_v20, %v5286_v17 }
  0xc3   :  { %v6756_v42 = vld [vmem:[#allocation2 + $0xc44] sm:$0xf]  ;;  %v5635_v49 = vor.u32 %v6692_v39, %v5632_v40  ;;  %3016 = vmatpush.bf16.msrb.mxu1 %v5923_v37  ;;  %3044 = vmatpush.bf16.msrb.mxu3 %v4647_v43  ;;  %v6673_v22 = vld [vmem:[#allocation2 + $0x9a4] sm:$0xf0] }
  0xc4   :  { %v5888_v44 = vld [vmem:[#allocation2 + $0xc60] sm:$0xf0]  ;;  %v5798_v23 = vld [vmem:[#allocation2 + $0xb88] sm:$0xf]  ;;  %v5543_v28 = vor.u32 %v6673_v22, %v5542_v21 }
  0xc5   :  { %v6684_v50 = vld [vmem:[#allocation2 + $0xa04] sm:$0xf]  ;;  %v5891_v52 = vor.u32 %v6756_v42, %v5888_v44  ;;  %3003 = vmatpush.bf16.msrb.mxu0 %v5635_v49  ;;  %3031 = vmatpush.bf16.msrb.mxu2 %v4359_v53  ;;  %v6737_v24 = vld [vmem:[#allocation2 + $0xba4] sm:$0xf0] }
  0xc6   :  { %v5600_v51 = vld [vmem:[#allocation2 + $0xa20] sm:$0xf0]  ;;  %v4998_v29 = vld [vmem:[#allocation2 + $0x548] sm:$0xf]  ;;  %v5799_v33 = vor.u32 %v6737_v24, %v5798_v23 }
  0xc7   :  { %v6748_v54 = vld [vmem:[#allocation2 + $0xc04] sm:$0xf]  ;;  %v5603_v3 = vor.u32 %v6684_v50, %v5600_v51  ;;  %3017 = vmatpush.bf16.msrb.mxu1 %v5891_v52  ;;  %3045 = vmatpush.bf16.msrb.mxu3 %v4615_v57  ;;  %v6537_v30 = vld [vmem:[#allocation2 + $0x564] sm:$0xf0] }
  0xc8   :  { %v5856_v55 = vld [vmem:[#allocation2 + $0xc20] sm:$0xf0]  ;;  %v5254_v32 = vld [vmem:[#allocation2 + $0x748] sm:$0xf]  ;;  %v4999_v39 = vor.u32 %v6537_v30, %v4998_v29 }
  0xc9   :  { %v5859_v7 = vor.u32 %v6748_v54, %v5856_v55  ;;  %3004 = vmatpush.bf16.msrb.mxu0 %v5603_v3  ;;  %3032 = vmatpush.bf16.msrb.mxu2 %v4327_v8  ;;  %v6601_v34 = vld [vmem:[#allocation2 + $0x764] sm:$0xf0] }
  0xca   :  { %v5510_v35 = vld [vmem:[#allocation2 + $0x948] sm:$0xf]  ;;  %v5255_v40 = vor.u32 %v6601_v34, %v5254_v32 }
  0xcb   :  { %3018 = vmatpush.bf16.msrb.mxu1 %v5859_v7  ;;  %3046 = vmatpush.bf16.msrb.mxu3 %v4583_v11  ;;  %v6665_v36 = vld [vmem:[#allocation2 + $0x964] sm:$0xf0] }
  0xcc   :  { %3005 = vmatmul.bf16.vlgmr.msrb.gmra.mxu0 %v7118_v0  ;;  %v5766_v37 = vld [vmem:[#allocation2 + $0xb48] sm:$0xf]  ;;  %3033 = vmatmul.bf16.vlgmr.msrb.gmra.mxu2 %v7090_v19  ;;  %v5511_v42 = vor.u32 %v6665_v36, %v5510_v35 }
  0xcd   :  { %3053 = vmatpush.bf16.msra.mxu0 %v5063_v12  ;;  %3081 = vmatpush.bf16.msra.mxu2 %v5575_v14  ;;  %v6729_v38 = vld [vmem:[#allocation2 + $0xb64] sm:$0xf0] }
  0xce   :  { %3019 = vmatmul.bf16.vlgmr.msrb.gmra.mxu1 %v7116_v63  ;;  %3047 = vmatmul.bf16.vlgmr.msrb.gmra.mxu3 %v7095_v31  ;;  %v4966_v43 = vld [vmem:[#allocation2 + $0x508] sm:$0xf]  ;;  %v5767_v46 = vor.u32 %v6729_v38, %v5766_v37 }
  0xcf   :  { %3067 = vmatpush.bf16.msra.mxu1 %v5319_v13  ;;  %3095 = vmatpush.bf16.msra.mxu3 %v5831_v18  ;;  %v6529_v44 = vld [vmem:[#allocation2 + $0x524] sm:$0xf0] }
  0xd0   :  { %v5222_v45 = vld [vmem:[#allocation2 + $0x708] sm:$0xf]  ;;  %v4967_v52 = vor.u32 %v6529_v44, %v4966_v43 }
  0xd1   :  { %3054 = vmatpush.bf16.msra.mxu0 %v5031_v26  ;;  %3082 = vmatpush.bf16.msra.mxu2 %v5543_v28  ;;  %v6593_v47 = vld [vmem:[#allocation2 + $0x724] sm:$0xf0] }
  0xd2   :  { %v5478_v48 = vld [vmem:[#allocation2 + $0x908] sm:$0xf]  ;;  %v5223_v53 = vor.u32 %v6593_v47, %v5222_v45  ;;  %v6421_v45 = vld [vmem:[#allocation2 + $0x1cc] sm:$0xf] }
  0xd3   :  { %3068 = vmatpush.bf16.msra.mxu1 %v5287_v27  ;;  %3096 = vmatpush.bf16.msra.mxu3 %v5799_v33  ;;  %v6657_v49 = vld [vmem:[#allocation2 + $0x924] sm:$0xf0]  ;;  %v4552_v47 = vld [vmem:[#allocation2 + $0x1e8] sm:$0xf0] }
  0xd4   :  { %v5734_v50 = vld [vmem:[#allocation2 + $0xb08] sm:$0xf]  ;;  %v5479_v54 = vor.u32 %v6657_v49, %v5478_v48  ;;  %v6485_v48 = vld [vmem:[#allocation2 + $0x3cc] sm:$0xf] }
  0xd5   :  { %v6721_v51 = vld [vmem:[#allocation2 + $0xb24] sm:$0xf0]  ;;  %3055 = vmatpush.bf16.msra.mxu0 %v4999_v39  ;;  %3083 = vmatpush.bf16.msra.mxu2 %v5511_v42  ;;  %v4808_v49 = vld [vmem:[#allocation2 + $0x3e8] sm:$0xf0] }
  0xd6   :  { %v4934_v55 = vld [vmem:[#allocation2 + $0x4c8] sm:$0xf]  ;;  %v5735_v58 = vor.u32 %v6721_v51, %v5734_v50 }
  0xd7   :  { %3069 = vmatpush.bf16.msra.mxu1 %v5255_v40  ;;  %v6521_v56 = vld [vmem:[#allocation2 + $0x4e4] sm:$0xf0]  ;;  %3097 = vmatpush.bf16.msra.mxu3 %v5767_v46 }
  0xd8   :  { %v5190_v57 = vld [vmem:[#allocation2 + $0x6c8] sm:$0xf]  ;;  %v4935_v3 = vor.u32 %v6521_v56, %v4934_v55  ;;  %v4555_v56 = vor.u32 %v6421_v45, %v4552_v47  ;;  %v4680_v45 = vld [vmem:[#allocation2 + $0x2e8] sm:$0xf0] }
  0xd9   :  { %v6585_v60 = vld [vmem:[#allocation2 + $0x6e4] sm:$0xf0]  ;;  %3056 = vmatpush.bf16.msra.mxu0 %v4967_v52  ;;  %3084 = vmatpush.bf16.msra.mxu2 %v5479_v54  ;;  %v6549_v52 = vld [vmem:[#allocation2 + $0x5cc] sm:$0xf] }
  0xda   :  { %v5446_v61 = vld [vmem:[#allocation2 + $0x8c8] sm:$0xf]  ;;  %v5191_v4 = vor.u32 %v6585_v60, %v5190_v57  ;;  %v4811_v57 = vor.u32 %v6485_v48, %v4808_v49  ;;  %v4936_v47 = vld [vmem:[#allocation2 + $0x4e8] sm:$0xf0] }
  0xdb   :  { %v6649_v62 = vld [vmem:[#allocation2 + $0x8e4] sm:$0xf0]  ;;  %3070 = vmatpush.bf16.msra.mxu1 %v5223_v53  ;;  %3098 = vmatpush.bf16.msra.mxu3 %v5735_v58  ;;  %v5064_v53 = vld [vmem:[#allocation2 + $0x5e8] sm:$0xf0] }
  0xdc   :  { %v5702_v1 = vld [vmem:[#allocation2 + $0xac8] sm:$0xf]  ;;  %v5447_v5 = vor.u32 %v6649_v62, %v5446_v61  ;;  %v6413_v61 = vld [vmem:[#allocation2 + $0x18c] sm:$0xf]  ;;  %v5067_v62 = vor.u32 %v6549_v52, %v5064_v53 }
  0xdd   :  { %v6713_v2 = vld [vmem:[#allocation2 + $0xae4] sm:$0xf0]  ;;  %3057 = vmatpush.bf16.msra.mxu0 %v4935_v3  ;;  %v4776_v3 = vld [vmem:[#allocation2 + $0x3a8] sm:$0xf0] }
  0xde   :  { %v4902_v6 = vld [vmem:[#allocation2 + $0x488] sm:$0xf]  ;;  %v5703_v9 = vor.u32 %v6713_v2, %v5702_v1  ;;  %3085 = vmatpush.bf16.msra.mxu2 %v5447_v5  ;;  %v4520_v1 = vld [vmem:[#allocation2 + $0x1a8] sm:$0xf0] }
  0xdf   :  { %v6513_v7 = vld [vmem:[#allocation2 + $0x4a4] sm:$0xf0]  ;;  %3071 = vmatpush.bf16.msra.mxu1 %v5191_v4  ;;  %v6477_v2 = vld [vmem:[#allocation2 + $0x38c] sm:$0xf] }
  0xe0   :  { %v5158_v8 = vld [vmem:[#allocation2 + $0x688] sm:$0xf]  ;;  %v4903_v15 = vor.u32 %v6513_v7, %v4902_v6  ;;  %3099 = vmatpush.bf16.msra.mxu3 %v5703_v9  ;;  %v6541_v4 = vld [vmem:[#allocation2 + $0x58c] sm:$0xf]  ;;  %v4523_v7 = vor.u32 %v6413_v61, %v4520_v1 }
  0xe1   :  { %v6577_v10 = vld [vmem:[#allocation2 + $0x6a4] sm:$0xf0]  ;;  %v5032_v5 = vld [vmem:[#allocation2 + $0x5a8] sm:$0xf0] }
  0xe2   :  { %v5414_v11 = vld [vmem:[#allocation2 + $0x888] sm:$0xf]  ;;  %v5159_v16 = vor.u32 %v6577_v10, %v5158_v8  ;;  %3058 = vmatpush.bf16.msra.mxu0 %v4903_v15  ;;  %v4779_v8 = vor.u32 %v6477_v2, %v4776_v3  ;;  %v4744_v15 = vld [vmem:[#allocation2 + $0x368] sm:$0xf0] }
  0xe3   :  { %v6641_v12 = vld [vmem:[#allocation2 + $0x8a4] sm:$0xf0]  ;;  %v4648_v61 = vld [vmem:[#allocation2 + $0x2a8] sm:$0xf0] }
  0xe4   :  { %v5670_v13 = vld [vmem:[#allocation2 + $0xa88] sm:$0xf]  ;;  %v5415_v17 = vor.u32 %v6641_v12, %v5414_v11  ;;  %3072 = vmatpush.bf16.msra.mxu1 %v5159_v16  ;;  %v6405_v11 = vld [vmem:[#allocation2 + $0x14c] sm:$0xf]  ;;  %v5035_v12 = vor.u32 %v6541_v4, %v5032_v5 }
  0xe5   :  { %v6705_v14 = vld [vmem:[#allocation2 + $0xaa4] sm:$0xf0]  ;;  %v6533_v16 = vld [vmem:[#allocation2 + $0x54c] sm:$0xf]  ;;  %v2838_v48 = vpop.f32.mrf.mxu0 }
  0xe6   :  { %v4870_v18 = vld [vmem:[#allocation2 + $0x448] sm:$0xf]  ;;  %v5671_v22 = vor.u32 %v6705_v14, %v5670_v13  ;;  %3086 = vmatpush.bf16.msra.mxu2 %v5415_v17  ;;  %v4488_v13 = vld [vmem:[#allocation2 + $0x168] sm:$0xf0] }
  0xe7   :  { %v6505_v20 = vld [vmem:[#allocation2 + $0x464] sm:$0xf0]  ;;  %v6469_v14 = vld [vmem:[#allocation2 + $0x34c] sm:$0xf] }
  0xe8   :  { %v5126_v21 = vld [vmem:[#allocation2 + $0x648] sm:$0xf]  ;;  %v4871_v29 = vor.u32 %v6505_v20, %v4870_v18  ;;  %3100 = vmatpush.bf16.msra.mxu3 %v5671_v22  ;;  %v5000_v17 = vld [vmem:[#allocation2 + $0x568] sm:$0xf0]  ;;  %v4747_v22 = vor.u32 %v6469_v14, %v4744_v15 }
  0xe9   :  { %v6569_v23 = vld [vmem:[#allocation2 + $0x664] sm:$0xf0]  ;;  %v6509_v1 = vld [vmem:[#allocation2 + $0x48c] sm:$0xf] }
  0xea   :  { %v5382_v24 = vld [vmem:[#allocation2 + $0x848] sm:$0xf]  ;;  %v5127_v33 = vor.u32 %v6569_v23, %v5126_v21  ;;  %3059 = vmatpush.bf16.msra.mxu0 %v4871_v29  ;;  %v4491_v21 = vor.u32 %v6405_v11, %v4488_v13  ;;  %v6461_v29 = vld [vmem:[#allocation2 + $0x30c] sm:$0xf]  ;;  %v2866_v13 = vpop.f32.mrf.mxu2 }
  0xeb   :  { %v6633_v26 = vld [vmem:[#allocation2 + $0x864] sm:$0xf0]  ;;  %v4904_v2 = vld [vmem:[#allocation2 + $0x4a8] sm:$0xf0] }
  0xec   :  { %v5638_v27 = vld [vmem:[#allocation2 + $0xa48] sm:$0xf]  ;;  %v5383_v34 = vor.u32 %v6633_v26, %v5382_v24  ;;  %3073 = vmatpush.bf16.msra.mxu1 %v5127_v33  ;;  %v6397_v24 = vld [vmem:[#allocation2 + $0x10c] sm:$0xf]  ;;  %v7136_v26 = vld [vmem:[#allocation5] sm:$0xff] }
  0xed   :  { %v6697_v28 = vld [vmem:[#allocation2 + $0xa64] sm:$0xf0]  ;;  %v4968_v33 = vld [vmem:[#allocation2 + $0x528] sm:$0xf0] }
  0xee   :  { %v4838_v30 = vld [vmem:[#allocation2 + $0x408] sm:$0xf]  ;;  %v5639_v38 = vor.u32 %v6697_v28, %v5638_v27  ;;  %3087 = vmatpush.bf16.msra.mxu2 %v5383_v34  ;;  %v5003_v27 = vor.u32 %v6533_v16, %v5000_v17  ;;  %v4456_v28 = vld [vmem:[#allocation2 + $0x128] sm:$0xf0] }
  0xef   :  { %v6497_v32 = vld [vmem:[#allocation2 + $0x424] sm:$0xf0]  ;;  %v6437_v11 = vld [vmem:[#allocation2 + $0x24c] sm:$0xf] }
  0xf0   :  { %v5094_v35 = vld [vmem:[#allocation2 + $0x608] sm:$0xf]  ;;  %v4839_v46 = vor.u32 %v6497_v32, %v4838_v30  ;;  %3101 = vmatpush.bf16.msra.mxu3 %v5639_v38  ;;  %v4712_v30 = vld [vmem:[#allocation2 + $0x328] sm:$0xf0] }
  0xf1   :  { %v6561_v36 = vld [vmem:[#allocation2 + $0x624] sm:$0xf0]  ;;  %v6525_v32 = vld [vmem:[#allocation2 + $0x50c] sm:$0xf] }
  0xf2   :  { %v5350_v37 = vld [vmem:[#allocation2 + $0x808] sm:$0xf]  ;;  %v5095_v50 = vor.u32 %v6561_v36, %v5094_v35  ;;  %3060 = vmatpush.bf16.msra.mxu0 %v4839_v46  ;;  %v7390_v35 = vperm.slane %v7136_v26, 0  ;;  %v4459_v36 = vor.u32 %v6397_v24, %v4456_v28  ;;  %v6517_v46 = vld [vmem:[#allocation2 + $0x4cc] sm:$0xf] }
  0xf3   :  { %v6625_v39 = vld [vmem:[#allocation2 + $0x824] sm:$0xf0]  ;;  %v6501_v14 = vld [vmem:[#allocation2 + $0x44c] sm:$0xf] }
  0xf4   :  { %v5606_v40 = vld [vmem:[#allocation2 + $0xa08] sm:$0xf]  ;;  %v5351_v51 = vor.u32 %v6625_v39, %v5350_v37  ;;  %3074 = vmatpush.bf16.msra.mxu1 %v5095_v50  ;;  %v4715_v37 = vor.u32 %v6461_v29, %v4712_v30  ;;  %v2839_v50 = vadd.f32 %v2838_v48, %v7390_v35  ;;  %v4872_v15 = vld [vmem:[#allocation2 + $0x468] sm:$0xf0]  ;;  %v6615_v35 = vld [vmem:[#allocation2 + $0x7dc] sm:$0xf] }
  0xf5   :  { %v6689_v42 = vld [vmem:[#allocation2 + $0xa24] sm:$0xf0]  ;;  %3061 = vmatmul.bf16.vlgmr.msra.gmra.mxu0 %v7092_v25  ;;  %v4328_v24 = vld [vmem:[#allocation2 + $0x28] sm:$0xf0]  ;;  %v4875_v28 = vor.u32 %v6501_v14, %v4872_v15  ;;  %v7150_v15 = vpop.f32.mrf.mxu2 }
  0xf6   :  { %v6086_v43 = vld [vmem:[#allocation2 + $0xdc8] sm:$0xf]  ;;  %v5607_v54 = vor.u32 %v6689_v42, %v5606_v40  ;;  %3088 = vmatpush.bf16.msra.mxu2 %v5351_v51  ;;  %v6389_v40 = vld [vmem:[#allocation2 + $0xcc] sm:$0xf]  ;;  %v4971_v42 = vor.u32 %v6525_v32, %v4968_v33  ;;  %v2880_v33 = vpop.f32.mrf.mxu3 }
  0xf7   :  { %v6809_v44 = vld [vmem:[#allocation2 + $0xde4] sm:$0xf0]  ;;  %3075 = vmatmul.bf16.vlgmr.msra.gmra.mxu1 %v7099_v41  ;;  %v4584_v29 = vld [vmem:[#allocation2 + $0x228] sm:$0xf0] }
  0xf8   :  { %v6087_v55 = vor.u32 %v6809_v44, %v6086_v43  ;;  %v6054_v58 = vld [vmem:[#allocation2 + $0xd88] sm:$0xf]  ;;  %3102 = vmatpush.bf16.msra.mxu3 %v5607_v54  ;;  %3123 = vmatpush.bf16.msrb.mxu1 %v4555_v56  ;;  %v4424_v43 = vld [vmem:[#allocation2 + $0xe8] sm:$0xf0]  ;;  %v2852_v56 = vpop.f32.mrf.mxu1 }
  0xf9   :  { %v6801_v60 = vld [vmem:[#allocation2 + $0xda4] sm:$0xf0]  ;;  %3089 = vmatmul.bf16.vlgmr.msra.gmra.mxu2 %v7114_v59  ;;  %v6453_v44 = vld [vmem:[#allocation2 + $0x2cc] sm:$0xf]  ;;  %v4427_v51 = vor.u32 %v6389_v40, %v4424_v43 }
  0xfa   :  { %3109 = vmatpush.bf16.msrb.mxu0 %v6087_v55  ;;  %v6055_v6 = vor.u32 %v6801_v60, %v6054_v58  ;;  %3137 = vmatpush.bf16.msrb.mxu2 %v4811_v57  ;;  %v6022_v9 = vld [vmem:[#allocation2 + $0xd48] sm:$0xf]  ;;  %v4683_v52 = vor.u32 %v6453_v44, %v4680_v45  ;;  %v6381_v55 = vld [vmem:[#allocation2 + $0x8c] sm:$0xf]  ;;  %v4939_v57 = vor.u32 %v6517_v46, %v4936_v47 }
  0xfb   :  { %v6793_v10 = vld [vmem:[#allocation2 + $0xd64] sm:$0xf0]  ;;  %3103 = vmatmul.bf16.vlgmr.msra.gmra.mxu3 %v7118_v0  ;;  %v4392_v58 = vld [vmem:[#allocation2 + $0xa8] sm:$0xf0] }
  0xfc   :  { %3151 = vmatpush.bf16.msrb.mxu3 %v5067_v62  ;;  %v6023_v18 = vor.u32 %v6793_v10, %v6022_v9  ;;  %v5990_v20 = vld [vmem:[#allocation2 + $0xd08] sm:$0xf]  ;;  %3124 = vmatpush.bf16.msrb.mxu1 %v4523_v7  ;;  %v6445_v60 = vld [vmem:[#allocation2 + $0x28c] sm:$0xf]  ;;  %v2853_v62 = vadd.f32 %v2852_v56, %v2839_v50  ;;  %v4395_v4 = vor.u32 %v6381_v55, %v4392_v58 }
  0xfd   :  { %v6785_v23 = vld [vmem:[#allocation2 + $0xd24] sm:$0xf0]  ;;  %v4651_v5 = vor.u32 %v6445_v60, %v4648_v61  ;;  %v4907_v9 = vor.u32 %v6509_v1, %v4904_v2  ;;  %v4360_v10 = vld [vmem:[#allocation2 + $0x68] sm:$0xf0] }
  0xfe   :  { %3110 = vmatpush.bf16.msrb.mxu0 %v6055_v6  ;;  %3138 = vmatpush.bf16.msrb.mxu2 %v4779_v8  ;;  %v5991_v34 = vor.u32 %v6785_v23, %v5990_v20  ;;  %v5958_v38 = vld [vmem:[#allocation2 + $0xcc8] sm:$0xf]  ;;  %v6373_v8 = vld [vmem:[#allocation2 + $0x4c] sm:$0xf]  ;;  %v2867_v16 = vadd.f32 %v2866_v13, %v2853_v62 }
  0xff   :  { %v6777_v39 = vld [vmem:[#allocation2 + $0xce4] sm:$0xf0]  ;;  %v6365_v23 = vld [vmem:[#allocation2 + $0xc] sm:$0xf] }
 0x100   :  { %3152 = vmatpush.bf16.msrb.mxu3 %v5035_v12  ;;  %3125 = vmatpush.bf16.msrb.mxu1 %v4491_v21  ;;  %v5959_v49 = vor.u32 %v6777_v39, %v5958_v38  ;;  %v5926_v53 = vld [vmem:[#allocation2 + $0xc88] sm:$0xf]  ;;  %v4616_v12 = vld [vmem:[#allocation2 + $0x268] sm:$0xf0]  ;;  %v4363_v21 = vor.u32 %v6373_v8, %v4360_v10  ;;  %v7141_v38 = vadd.f32 %v2880_v33, %v2867_v16  ;;  %v7145_v1 = vpop.f32.mrf.mxu1 }
 0x101   :  { %v6769_v54 = vld [vmem:[#allocation2 + $0xca4] sm:$0xf0]  ;;  %v6493_v30 = vld [vmem:[#allocation2 + $0x40c] sm:$0xf]  ;;  %v4331_v44 = vor.u32 %v6365_v23, %v4328_v24 }
 0x102   :  { %3111 = vmatpush.bf16.msrb.mxu0 %v6023_v18  ;;  %3139 = vmatpush.bf16.msrb.mxu2 %v4747_v22  ;;  %v5927_v3 = vor.u32 %v6769_v54, %v5926_v53  ;;  %v5894_v6 = vld [vmem:[#allocation2 + $0xc48] sm:$0xf]  ;;  %v4619_v22 = vor.u32 %v6437_v11, %v4616_v12  ;;  %v4840_v32 = vld [vmem:[#allocation2 + $0x428] sm:$0xf0] }
 0x103   :  { %v6761_v7 = vld [vmem:[#allocation2 + $0xc64] sm:$0xf0]  ;;  %v5576_v40 = vld [vmem:[#allocation2 + $0x9e8] sm:$0xf0]  ;;  %v4843_v48 = vor.u32 %v6493_v30, %v4840_v32 }
 0x104   :  { %3153 = vmatpush.bf16.msrb.mxu3 %v5003_v27  ;;  %3126 = vmatpush.bf16.msrb.mxu1 %v4459_v36  ;;  %v5895_v17 = vor.u32 %v6761_v7, %v5894_v6  ;;  %v5862_v18 = vld [vmem:[#allocation2 + $0xc08] sm:$0xf]  ;;  %v6429_v27 = vld [vmem:[#allocation2 + $0x20c] sm:$0xf] }
 0x105   :  { %v6753_v20 = vld [vmem:[#allocation2 + $0xc24] sm:$0xf0]  ;;  %v5320_v36 = vld [vmem:[#allocation2 + $0x7e8] sm:$0xf0]  ;;  %v4587_v45 = vor.u32 %v6429_v27, %v4584_v29 }
 0x106   :  { %3112 = vmatpush.bf16.msrb.mxu0 %v5991_v34  ;;  %3140 = vmatpush.bf16.msrb.mxu2 %v4715_v37  ;;  %v6613_v34 = vld [vmem:[#allocation2 + $0x7cc] sm:$0xf]  ;;  %v5863_v39 = vor.u32 %v6753_v20, %v5862_v18 }
 0x107   :  { %v6677_v37 = vld [vmem:[#allocation2 + $0x9cc] sm:$0xf] }
 0x108   :  { %3154 = vmatpush.bf16.msrb.mxu3 %v4971_v42  ;;  %3127 = vmatpush.bf16.msrb.mxu1 %v4427_v51  ;;  %v6741_v42 = vld [vmem:[#allocation2 + $0xbcc] sm:$0xf]  ;;  %v5579_v50 = vor.u32 %v6677_v37, %v5576_v40  ;;  %v2908_v37 = vpop.f32.mrf.mxu1 }
 0x109   :  { %v5832_v43 = vld [vmem:[#allocation2 + $0xbe8] sm:$0xf0] }
 0x10a   :  { %3113 = vmatpush.bf16.msrb.mxu0 %v5959_v49  ;;  %3141 = vmatpush.bf16.msrb.mxu2 %v4683_v52  ;;  %v6805_v46 = vld [vmem:[#allocation2 + $0xdcc] sm:$0xf]  ;;  %v5323_v49 = vor.u32 %v6613_v34, %v5320_v36  ;;  %v5835_v51 = vor.u32 %v6741_v42, %v5832_v43  ;;  %v7143_v52 = vpop.f32.mrf.mxu0 }
 0x10b   :  { %v6088_v47 = vld [vmem:[#allocation2 + $0xde8] sm:$0xf0] }
 0x10c   :  { %3155 = vmatpush.bf16.msrb.mxu3 %v4939_v57  ;;  %3128 = vmatpush.bf16.msrb.mxu1 %v4395_v4  ;;  %v6605_v53 = vld [vmem:[#allocation2 + $0x78c] sm:$0xf]  ;;  %v6091_v56 = vor.u32 %v6805_v46, %v6088_v47 }
 0x10d   :  { %v5288_v54 = vld [vmem:[#allocation2 + $0x7a8] sm:$0xf0] }
 0x10e   :  { %3114 = vmatpush.bf16.msrb.mxu0 %v5927_v3  ;;  %3142 = vmatpush.bf16.msrb.mxu2 %v4651_v5  ;;  %v6669_v55 = vld [vmem:[#allocation2 + $0x98c] sm:$0xf]  ;;  %v5291_v2 = vor.u32 %v6605_v53, %v5288_v54 }
 0x10f   :  { %v5544_v57 = vld [vmem:[#allocation2 + $0x9a8] sm:$0xf0] }
 0x110   :  { %3156 = vmatpush.bf16.msrb.mxu3 %v4907_v9  ;;  %3129 = vmatpush.bf16.msrb.mxu1 %v4363_v21  ;;  %v6733_v58 = vld [vmem:[#allocation2 + $0xb8c] sm:$0xf]  ;;  %v5547_v3 = vor.u32 %v6669_v55, %v5544_v57  ;;  %v2922_v57 = vpop.f32.mrf.mxu2 }
 0x111   :  { %v5800_v60 = vld [vmem:[#allocation2 + $0xba8] sm:$0xf0] }
 0x112   :  { %3115 = vmatpush.bf16.msrb.mxu0 %v5895_v17  ;;  %3143 = vmatpush.bf16.msrb.mxu2 %v4619_v22  ;;  %v6797_v61 = vld [vmem:[#allocation2 + $0xd8c] sm:$0xf]  ;;  %v5803_v4 = vor.u32 %v6733_v58, %v5800_v60 }
 0x113   :  { %v6056_v62 = vld [vmem:[#allocation2 + $0xda8] sm:$0xf0] }
 0x114   :  { %3157 = vmatpush.bf16.msrb.mxu3 %v4875_v28  ;;  %3130 = vmatpush.bf16.msrb.mxu1 %v4331_v44  ;;  %v6597_v5 = vld [vmem:[#allocation2 + $0x74c] sm:$0xf]  ;;  %v6059_v8 = vor.u32 %v6797_v61, %v6056_v62  ;;  %v2894_v28 = vpop.f32.mrf.mxu0 }
 0x115   :  { %v5256_v6 = vld [vmem:[#allocation2 + $0x768] sm:$0xf0]  ;;  %v2895_v32 = vadd.f32 %v2894_v28, %v7141_v38 }
 0x116   :  { %3116 = vmatpush.bf16.msrb.mxu0 %v5863_v39  ;;  %3144 = vmatpush.bf16.msrb.mxu2 %v4587_v45  ;;  %v6661_v7 = vld [vmem:[#allocation2 + $0x94c] sm:$0xf]  ;;  %v5259_v14 = vor.u32 %v6597_v5, %v5256_v6 }
 0x117   :  { %v5512_v9 = vld [vmem:[#allocation2 + $0x968] sm:$0xf0]  ;;  %3131 = vmatmul.bf16.vlgmr.msrb.gmra.mxu1 %v7090_v19  ;;  %v2909_v44 = vadd.f32 %v2908_v37, %v2895_v32  ;;  %v4814_v37 = vld [vmem:[#allocation2 + $0x3d0] sm:$0xf] }
 0x118   :  { %3158 = vmatpush.bf16.msrb.mxu3 %v4843_v48  ;;  %3179 = vmatpush.bf16.msra.mxu1 %v5579_v50  ;;  %v6725_v10 = vld [vmem:[#allocation2 + $0xb4c] sm:$0xf]  ;;  %v5515_v16 = vor.u32 %v6661_v7, %v5512_v9 }
 0x119   :  { %3117 = vmatmul.bf16.vlgmr.msrb.gmra.mxu0 %v7116_v63  ;;  %v5768_v11 = vld [vmem:[#allocation2 + $0xb68] sm:$0xf0]  ;;  %3145 = vmatmul.bf16.vlgmr.msrb.gmra.mxu2 %v7095_v31  ;;  %v7154_v62 = vadd.f32 %v2922_v57, %v2909_v44  ;;  %v6482_v57 = vld [vmem:[#allocation2 + $0x3ac] sm:$0xf0] }
 0x11a   :  { %3165 = vmatpush.bf16.msra.mxu0 %v5323_v49  ;;  %3193 = vmatpush.bf16.msra.mxu2 %v5835_v51  ;;  %v6789_v12 = vld [vmem:[#allocation2 + $0xd4c] sm:$0xf]  ;;  %v5771_v17 = vor.u32 %v6725_v10, %v5768_v11  ;;  %v7156_v10 = vpop.f32.mrf.mxu3 }
 0x11b   :  { %v6024_v13 = vld [vmem:[#allocation2 + $0xd68] sm:$0xf0]  ;;  %3159 = vmatmul.bf16.vlgmr.msrb.gmra.mxu3 %v7092_v25  ;;  %7391 = vst [vmem:[#allocation15_spill] sm:$0xff] %v7154_v62  ;;  %v6743_v62 = vld [vmem:[#allocation2 + $0xbdc] sm:$0xf] }
 0x11c   :  { %3207 = vmatpush.bf16.msra.mxu3 %v6091_v56  ;;  %3180 = vmatpush.bf16.msra.mxu1 %v5547_v3  ;;  %v6589_v18 = vld [vmem:[#allocation2 + $0x70c] sm:$0xf]  ;;  %v6027_v22 = vor.u32 %v6789_v12, %v6024_v13 }
 0x11d   :  { %v5224_v20 = vld [vmem:[#allocation2 + $0x728] sm:$0xf0] }
 0x11e   :  { %3166 = vmatpush.bf16.msra.mxu0 %v5291_v2  ;;  %3194 = vmatpush.bf16.msra.mxu2 %v5803_v4  ;;  %v6653_v21 = vld [vmem:[#allocation2 + $0x90c] sm:$0xf]  ;;  %v5227_v33 = vor.u32 %v6589_v18, %v5224_v20 }
 0x11f   :  { %v5480_v23 = vld [vmem:[#allocation2 + $0x928] sm:$0xf0] }
 0x120   :  { %3208 = vmatpush.bf16.msra.mxu3 %v6059_v8  ;;  %v6717_v24 = vld [vmem:[#allocation2 + $0xb0c] sm:$0xf]  ;;  %3181 = vmatpush.bf16.msra.mxu1 %v5515_v16  ;;  %v5483_v34 = vor.u32 %v6653_v21, %v5480_v23 }
 0x121   :  { %v5736_v27 = vld [vmem:[#allocation2 + $0xb28] sm:$0xf0] }
 0x122   :  { %v6781_v29 = vld [vmem:[#allocation2 + $0xd0c] sm:$0xf]  ;;  %3167 = vmatpush.bf16.msra.mxu0 %v5259_v14  ;;  %3195 = vmatpush.bf16.msra.mxu2 %v5771_v17  ;;  %v5739_v36 = vor.u32 %v6717_v24, %v5736_v27 }
 0x123   :  { %v5992_v30 = vld [vmem:[#allocation2 + $0xd28] sm:$0xf0] }
 0x124   :  { %v6581_v39 = vld [vmem:[#allocation2 + $0x6cc] sm:$0xf]  ;;  %3209 = vmatpush.bf16.msra.mxu3 %v6027_v22  ;;  %v5995_v43 = vor.u32 %v6781_v29, %v5992_v30  ;;  %3182 = vmatpush.bf16.msra.mxu1 %v5483_v34  ;;  %v4558_v34 = vld [vmem:[#allocation2 + $0x1d0] sm:$0xf] }
 0x125   :  { %v5192_v40 = vld [vmem:[#allocation2 + $0x6e8] sm:$0xf0] }
 0x126   :  { %v6645_v42 = vld [vmem:[#allocation2 + $0x8cc] sm:$0xf]  ;;  %3168 = vmatpush.bf16.msra.mxu0 %v5227_v33  ;;  %v5195_v50 = vor.u32 %v6581_v39, %v5192_v40  ;;  %3196 = vmatpush.bf16.msra.mxu2 %v5739_v36  ;;  %v6426_v36 = vld [vmem:[#allocation2 + $0x1ec] sm:$0xf0] }
 0x127   :  { %v5448_v45 = vld [vmem:[#allocation2 + $0x8e8] sm:$0xf0]  ;;  %v6490_v40 = vld [vmem:[#allocation2 + $0x3ec] sm:$0xf0] }
 0x128   :  { %v6709_v46 = vld [vmem:[#allocation2 + $0xacc] sm:$0xf]  ;;  %v5451_v38 = vor.u32 %v6645_v42, %v5448_v45  ;;  %3210 = vmatpush.bf16.msra.mxu3 %v5995_v43  ;;  %v5070_v42 = vld [vmem:[#allocation2 + $0x5d0] sm:$0xf] }
 0x129   :  { %v5704_v47 = vld [vmem:[#allocation2 + $0xae8] sm:$0xf0]  ;;  %v6554_v43 = vld [vmem:[#allocation2 + $0x5ec] sm:$0xf0] }
 0x12a   :  { %v6773_v48 = vld [vmem:[#allocation2 + $0xccc] sm:$0xf]  ;;  %v5707_v51 = vor.u32 %v6709_v46, %v5704_v47  ;;  %3169 = vmatpush.bf16.msra.mxu0 %v5195_v50  ;;  %3183 = vmatpush.bf16.msra.mxu1 %v5451_v38  ;;  %v5326_v46 = vld [vmem:[#allocation2 + $0x7d0] sm:$0xf]  ;;  %v2936_v50 = vpop.f32.mrf.mxu3  ;;  %v4815_v38 = vor.u32 %v6490_v40, %v4814_v37 }
 0x12b   :  { %v5960_v49 = vld [vmem:[#allocation2 + $0xce8] sm:$0xf0]  ;;  %v6618_v47 = vld [vmem:[#allocation2 + $0x7ec] sm:$0xf0] }
 0x12c   :  { %v6573_v53 = vld [vmem:[#allocation2 + $0x68c] sm:$0xf]  ;;  %v5963_v56 = vor.u32 %v6773_v48, %v5960_v49  ;;  %3197 = vmatpush.bf16.msra.mxu2 %v5707_v51  ;;  %v4559_v49 = vor.u32 %v6426_v36, %v4558_v34  ;;  %v5071_v51 = vor.u32 %v6554_v43, %v5070_v42  ;;  %v6466_v34 = vld [vmem:[#allocation2 + $0x32c] sm:$0xf0] }
 0x12d   :  { %v5160_v54 = vld [vmem:[#allocation2 + $0x6a8] sm:$0xf0]  ;;  %v4974_v36 = vld [vmem:[#allocation2 + $0x510] sm:$0xf] }
 0x12e   :  { %v6637_v55 = vld [vmem:[#allocation2 + $0x88c] sm:$0xf]  ;;  %v5163_v4 = vor.u32 %v6573_v53, %v5160_v54  ;;  %3211 = vmatpush.bf16.msra.mxu3 %v5963_v56  ;;  %v4526_v53 = vld [vmem:[#allocation2 + $0x190] sm:$0xf]  ;;  %v5327_v56 = vor.u32 %v6618_v47, %v5326_v46 }
 0x12f   :  { %v5416_v58 = vld [vmem:[#allocation2 + $0x8a8] sm:$0xf0]  ;;  %v6418_v54 = vld [vmem:[#allocation2 + $0x1ac] sm:$0xf0] }
 0x130   :  { %v6701_v60 = vld [vmem:[#allocation2 + $0xa8c] sm:$0xf]  ;;  %v5419_v5 = vor.u32 %v6637_v55, %v5416_v58  ;;  %3170 = vmatpush.bf16.msra.mxu0 %v5163_v4  ;;  %v4782_v55 = vld [vmem:[#allocation2 + $0x390] sm:$0xf]  ;;  %v7389_v4 = vperm.slane %v7136_v26, 1 }
 0x131   :  { %v5672_v61 = vld [vmem:[#allocation2 + $0xaa8] sm:$0xf0]  ;;  %v5038_v58 = vld [vmem:[#allocation2 + $0x590] sm:$0xf] }
 0x132   :  { %v6765_v2 = vld [vmem:[#allocation2 + $0xc8c] sm:$0xf]  ;;  %v5675_v6 = vor.u32 %v6701_v60, %v5672_v61  ;;  %3184 = vmatpush.bf16.msra.mxu1 %v5419_v5  ;;  %v6546_v60 = vld [vmem:[#allocation2 + $0x5ac] sm:$0xf0]  ;;  %v7158_v61 = vpop.f32.mrf.mxu0  ;;  %v4527_v5 = vor.u32 %v6418_v54, %v4526_v53 }
 0x133   :  { %v5928_v3 = vld [vmem:[#allocation2 + $0xca8] sm:$0xf0]  ;;  %v6530_v37 = vld [vmem:[#allocation2 + $0x52c] sm:$0xf0] }
 0x134   :  { %v6565_v7 = vld [vmem:[#allocation2 + $0x64c] sm:$0xf]  ;;  %v5931_v11 = vor.u32 %v6765_v2, %v5928_v3  ;;  %3198 = vmatpush.bf16.msra.mxu2 %v5675_v6  ;;  %v5294_v2 = vld [vmem:[#allocation2 + $0x790] sm:$0xf]  ;;  %v7161_v6 = vpop.f32.mrf.mxu1  ;;  %v4975_v46 = vor.u32 %v6530_v37, %v4974_v36 }
 0x135   :  { %v5128_v8 = vld [vmem:[#allocation2 + $0x668] sm:$0xf0]  ;;  %v6610_v3 = vld [vmem:[#allocation2 + $0x7ac] sm:$0xf0] }
 0x136   :  { %v6629_v9 = vld [vmem:[#allocation2 + $0x84c] sm:$0xf]  ;;  %v5131_v18 = vor.u32 %v6565_v7, %v5128_v8  ;;  %3212 = vmatpush.bf16.msra.mxu3 %v5931_v11  ;;  %v4783_v7 = vor.u32 %v6482_v57, %v4782_v55  ;;  %v5039_v8 = vor.u32 %v6546_v60, %v5038_v58  ;;  %v6410_v11 = vld [vmem:[#allocation2 + $0x16c] sm:$0xf0] }
 0x137   :  { %v5384_v12 = vld [vmem:[#allocation2 + $0x868] sm:$0xf0]  ;;  %v5230_v40 = vld [vmem:[#allocation2 + $0x710] sm:$0xf] }
 0x138   :  { %v6693_v13 = vld [vmem:[#allocation2 + $0xa4c] sm:$0xf]  ;;  %v5387_v22 = vor.u32 %v6629_v9, %v5384_v12  ;;  %3171 = vmatpush.bf16.msra.mxu0 %v5131_v18  ;;  %v4494_v9 = vld [vmem:[#allocation2 + $0x150] sm:$0xf] }
 0x139   :  { %v5640_v14 = vld [vmem:[#allocation2 + $0xa68] sm:$0xf0]  ;;  %v4750_v12 = vld [vmem:[#allocation2 + $0x350] sm:$0xf] }
 0x13a   :  { %v6757_v16 = vld [vmem:[#allocation2 + $0xc4c] sm:$0xf]  ;;  %v5643_v23 = vor.u32 %v6693_v13, %v5640_v14  ;;  %3185 = vmatpush.bf16.msra.mxu1 %v5387_v22  ;;  %v5295_v13 = vor.u32 %v6610_v3, %v5294_v2  ;;  %v6474_v14 = vld [vmem:[#allocation2 + $0x36c] sm:$0xf0]  ;;  %v4495_v22 = vor.u32 %v6410_v11, %v4494_v9 }
 0x13b   :  { %v5896_v17 = vld [vmem:[#allocation2 + $0xc68] sm:$0xf0]  ;;  %v5262_v18 = vld [vmem:[#allocation2 + $0x750] sm:$0xf] }
 0x13c   :  { %v6557_v20 = vld [vmem:[#allocation2 + $0x60c] sm:$0xf]  ;;  %v5899_v29 = vor.u32 %v6757_v16, %v5896_v17  ;;  %3199 = vmatpush.bf16.msra.mxu2 %v5643_v23  ;;  %v5006_v16 = vld [vmem:[#allocation2 + $0x550] sm:$0xf]  ;;  %v4751_v23 = vor.u32 %v6474_v14, %v4750_v12  ;;  %v2964_v47 = vpop.f32.mrf.mxu1 }
 0x13d   :  { %v5096_v21 = vld [vmem:[#allocation2 + $0x628] sm:$0xf0]  ;;  %v6538_v17 = vld [vmem:[#allocation2 + $0x56c] sm:$0xf0] }
 0x13e   :  { %v6621_v24 = vld [vmem:[#allocation2 + $0x80c] sm:$0xf]  ;;  %v5099_v39 = vor.u32 %v6557_v20, %v5096_v21  ;;  %3213 = vmatpush.bf16.msra.mxu3 %v5899_v29  ;;  %v6602_v20 = vld [vmem:[#allocation2 + $0x76c] sm:$0xf0]  ;;  %v2937_v21 = vadd.f32 %v2936_v50, %v7389_v4  ;;  %v4856_v4 = vld [vmem:[#allocation2 + $0x438] sm:$0xf0] }
 0x13f   :  { %v5352_v27 = vld [vmem:[#allocation2 + $0x828] sm:$0xf0]  ;;  %v4718_v29 = vld [vmem:[#allocation2 + $0x310] sm:$0xf] }
 0x140   :  { %v6685_v28 = vld [vmem:[#allocation2 + $0xa0c] sm:$0xf]  ;;  %v5355_v44 = vor.u32 %v6621_v24, %v5352_v27  ;;  %3172 = vmatpush.bf16.msra.mxu0 %v5099_v39  ;;  %v5007_v24 = vor.u32 %v6538_v17, %v5006_v16  ;;  %v4462_v27 = vld [vmem:[#allocation2 + $0x110] sm:$0xf]  ;;  %v2950_v39 = vpop.f32.mrf.mxu0 }
 0x141   :  { %v5608_v30 = vld [vmem:[#allocation2 + $0xa28] sm:$0xf0]  ;;  %v6594_v42 = vld [vmem:[#allocation2 + $0x72c] sm:$0xf0]  ;;  %v2951_v43 = vadd.f32 %v2950_v39, %v2937_v21 }
 0x142   :  { %v6749_v32 = vld [vmem:[#allocation2 + $0xc0c] sm:$0xf]  ;;  %v5611_v45 = vor.u32 %v6685_v28, %v5608_v30  ;;  %3186 = vmatpush.bf16.msra.mxu1 %v5355_v44  ;;  %v6402_v28 = vld [vmem:[#allocation2 + $0x12c] sm:$0xf0]  ;;  %v7169_v30 = vpop.f32.mrf.mxu2 }
 0x143   :  { %v5864_v33 = vld [vmem:[#allocation2 + $0xc28] sm:$0xf0]  ;;  %3173 = vmatmul.bf16.vlgmr.msra.gmra.mxu0 %v7099_v41  ;;  %7392 = vst [vmem:[#allocation16_spill] sm:$0xff] %v7169_v30  ;;  %v4463_v44 = vor.u32 %v6402_v28, %v4462_v27  ;;  %v4686_v50 = vld [vmem:[#allocation2 + $0x2d0] sm:$0xf] }
 0x144   :  { %v5867_v48 = vor.u32 %v6749_v32, %v5864_v33  ;;  %3200 = vmatpush.bf16.msra.mxu2 %v5611_v45  ;;  %3221 = vmatpush.bf16.msrb.mxu0 %v4559_v49  ;;  %v5263_v32 = vor.u32 %v6602_v20, %v5262_v18  ;;  %v7171_v33 = vpop.f32.mrf.mxu3  ;;  %v4719_v45 = vor.u32 %v6466_v34, %v4718_v29  ;;  %v6394_v49 = vld [vmem:[#allocation2 + $0xec] sm:$0xf0]  ;;  %v6735_v30 = vld [vmem:[#allocation2 + $0xb9c] sm:$0xf] }
 0x145   :  { %3187 = vmatmul.bf16.vlgmr.msra.gmra.mxu1 %v7114_v59  ;;  %v6458_v53 = vld [vmem:[#allocation2 + $0x2ec] sm:$0xf0] }
 0x146   :  { %3214 = vmatpush.bf16.msra.mxu3 %v5867_v48  ;;  %3235 = vmatpush.bf16.msrb.mxu1 %v4815_v38  ;;  %v4430_v48 = vld [vmem:[#allocation2 + $0xd0] sm:$0xf]  ;;  %v5231_v38 = vor.u32 %v6594_v42, %v5230_v40  ;;  %v4687_v60 = vor.u32 %v6458_v53, %v4686_v50 }
 0x147   :  { %3201 = vmatmul.bf16.vlgmr.msra.gmra.mxu2 %v7118_v0  ;;  %v4942_v54 = vld [vmem:[#allocation2 + $0x4d0] sm:$0xf]  ;;  %v4431_v58 = vor.u32 %v6394_v49, %v4430_v48 }
 0x148   :  { %3249 = vmatpush.bf16.msrb.mxu2 %v5071_v51  ;;  %3222 = vmatpush.bf16.msrb.mxu0 %v4527_v5  ;;  %v2965_v51 = vadd.f32 %v2964_v47, %v2951_v43  ;;  %v6522_v55 = vld [vmem:[#allocation2 + $0x4ec] sm:$0xf0] }
 0x149   :  { %3215 = vmatmul.bf16.vlgmr.msra.gmra.mxu3 %v7116_v63  ;;  %v6586_v57 = vld [vmem:[#allocation2 + $0x6ec] sm:$0xf0]  ;;  %v4943_v2 = vor.u32 %v6522_v55, %v4942_v54 }
 0x14a   :  { %3263 = vmatpush.bf16.msrb.mxu3 %v5327_v56  ;;  %3236 = vmatpush.bf16.msrb.mxu1 %v4783_v7  ;;  %v5198_v56 = vld [vmem:[#allocation2 + $0x6d0] sm:$0xf]  ;;  %v2978_v9 = vpop.f32.mrf.mxu2 }
 0x14b   :  { %v4398_v3 = vld [vmem:[#allocation2 + $0x90] sm:$0xf]  ;;  %v2979_v14 = vadd.f32 %v2978_v9, %v2965_v51 }
 0x14c   :  { %3250 = vmatpush.bf16.msrb.mxu2 %v5039_v8  ;;  %3223 = vmatpush.bf16.msrb.mxu0 %v4495_v22  ;;  %v6386_v5 = vld [vmem:[#allocation2 + $0xac] sm:$0xf0]  ;;  %v5199_v8 = vor.u32 %v6586_v57, %v5198_v56  ;;  %v2992_v18 = vpop.f32.mrf.mxu3 }
 0x14d   :  { %v4654_v7 = vld [vmem:[#allocation2 + $0x290] sm:$0xf]  ;;  %v4399_v20 = vor.u32 %v6386_v5, %v4398_v3  ;;  %v7173_v21 = vadd.f32 %v2992_v18, %v2979_v14  ;;  %v6422_v5 = vld [vmem:[#allocation2 + $0x1d4] sm:$0xf] }
 0x14e   :  { %3264 = vmatpush.bf16.msrb.mxu3 %v5295_v13  ;;  %3237 = vmatpush.bf16.msrb.mxu1 %v4751_v23  ;;  %v6450_v11 = vld [vmem:[#allocation2 + $0x2ac] sm:$0xf0] }
 0x14f   :  { %v4910_v12 = vld [vmem:[#allocation2 + $0x490] sm:$0xf]  ;;  %v4655_v22 = vor.u32 %v6450_v11, %v4654_v7  ;;  %v4560_v7 = vld [vmem:[#allocation2 + $0x1f0] sm:$0xf0] }
 0x150   :  { %3251 = vmatpush.bf16.msrb.mxu2 %v5007_v24  ;;  %3224 = vmatpush.bf16.msrb.mxu0 %v4463_v44  ;;  %v6514_v13 = vld [vmem:[#allocation2 + $0x4ac] sm:$0xf0] }
 0x151   :  { %v5166_v16 = vld [vmem:[#allocation2 + $0x690] sm:$0xf]  ;;  %v4911_v23 = vor.u32 %v6514_v13, %v4910_v12 }
 0x152   :  { %3265 = vmatpush.bf16.msrb.mxu3 %v5263_v32  ;;  %3238 = vmatpush.bf16.msrb.mxu1 %v4719_v45  ;;  %v6578_v17 = vld [vmem:[#allocation2 + $0x6ac] sm:$0xf0] }
 0x153   :  { %v4366_v24 = vld [vmem:[#allocation2 + $0x50] sm:$0xf]  ;;  %v5167_v29 = vor.u32 %v6578_v17, %v5166_v16  ;;  %v4563_v17 = vor.u32 %v6422_v5, %v4560_v7 }
 0x154   :  { %3252 = vmatpush.bf16.msrb.mxu2 %v4975_v46  ;;  %3225 = vmatpush.bf16.msrb.mxu0 %v4431_v58  ;;  %v6378_v27 = vld [vmem:[#allocation2 + $0x6c] sm:$0xf0] }
 0x155   :  { %v4622_v28 = vld [vmem:[#allocation2 + $0x250] sm:$0xf]  ;;  %v4367_v40 = vor.u32 %v6378_v27, %v4366_v24  ;;  %v6414_v24 = vld [vmem:[#allocation2 + $0x194] sm:$0xf] }
 0x156   :  { %3266 = vmatpush.bf16.msrb.mxu3 %v5231_v38  ;;  %3239 = vmatpush.bf16.msrb.mxu1 %v4687_v60  ;;  %v6442_v32 = vld [vmem:[#allocation2 + $0x26c] sm:$0xf0]  ;;  %v4528_v27 = vld [vmem:[#allocation2 + $0x1b0] sm:$0xf0] }
 0x157   :  { %v4878_v34 = vld [vmem:[#allocation2 + $0x450] sm:$0xf]  ;;  %v4623_v44 = vor.u32 %v6442_v32, %v4622_v28  ;;  %v7177_v28 = vpop.f32.mrf.mxu1 }
 0x158   :  { %3253 = vmatpush.bf16.msrb.mxu2 %v4943_v2  ;;  %v6506_v36 = vld [vmem:[#allocation2 + $0x46c] sm:$0xf0]  ;;  %3226 = vmatpush.bf16.msrb.mxu0 %v4399_v20 }
 0x159   :  { %v5134_v37 = vld [vmem:[#allocation2 + $0x650] sm:$0xf]  ;;  %v4879_v45 = vor.u32 %v6506_v36, %v4878_v34 }
 0x15a   :  { %3267 = vmatpush.bf16.msrb.mxu3 %v5199_v8  ;;  %v6570_v39 = vld [vmem:[#allocation2 + $0x66c] sm:$0xf0]  ;;  %3240 = vmatpush.bf16.msrb.mxu1 %v4655_v22 }
 0x15b   :  { %v4334_v42 = vld [vmem:[#allocation2 + $0x10] sm:$0xf]  ;;  %v5135_v49 = vor.u32 %v6570_v39, %v5134_v37 }
 0x15c   :  { %v6370_v43 = vld [vmem:[#allocation2 + $0x2c] sm:$0xf0]  ;;  %3254 = vmatpush.bf16.msrb.mxu2 %v4911_v23  ;;  %3227 = vmatpush.bf16.msrb.mxu0 %v4367_v40  ;;  %v7175_v23 = vpop.f32.mrf.mxu0  ;;  %v4531_v40 = vor.u32 %v6414_v24, %v4528_v27  ;;  %v6390_v24 = vld [vmem:[#allocation2 + $0xd4] sm:$0xf] }
 0x15d   :  { %v4590_v46 = vld [vmem:[#allocation2 + $0x210] sm:$0xf]  ;;  %v4335_v56 = vor.u32 %v6370_v43, %v4334_v42  ;;  %v4432_v27 = vld [vmem:[#allocation2 + $0xf0] sm:$0xf0] }
 0x15e   :  { %v6434_v47 = vld [vmem:[#allocation2 + $0x22c] sm:$0xf0]  ;;  %3268 = vmatpush.bf16.msrb.mxu3 %v5167_v29  ;;  %3241 = vmatpush.bf16.msrb.mxu1 %v4623_v44 }
 0x15f   :  { %v4846_v48 = vld [vmem:[#allocation2 + $0x410] sm:$0xf]  ;;  %v4591_v2 = vor.u32 %v6434_v47, %v4590_v46  ;;  %v4496_v46 = vld [vmem:[#allocation2 + $0x170] sm:$0xf0] }
 0x160   :  { %v6498_v50 = vld [vmem:[#allocation2 + $0x42c] sm:$0xf0]  ;;  %3255 = vmatpush.bf16.msrb.mxu2 %v4879_v45  ;;  %3228 = vmatpush.bf16.msrb.mxu0 %v4335_v56  ;;  %v6406_v45 = vld [vmem:[#allocation2 + $0x154] sm:$0xf] }
 0x161   :  { %v5102_v38 = vld [vmem:[#allocation2 + $0x610] sm:$0xf]  ;;  %v4847_v3 = vor.u32 %v6498_v50, %v4846_v48 }
 0x162   :  { %v6562_v51 = vld [vmem:[#allocation2 + $0x62c] sm:$0xf0]  ;;  %3269 = vmatpush.bf16.msrb.mxu3 %v5135_v49  ;;  %3242 = vmatpush.bf16.msrb.mxu1 %v4591_v2  ;;  %v4464_v2 = vld [vmem:[#allocation2 + $0x130] sm:$0xf0] }
 0x163   :  { %v5582_v53 = vld [vmem:[#allocation2 + $0x9d0] sm:$0xf]  ;;  %v5103_v8 = vor.u32 %v6562_v51, %v5102_v38  ;;  %3229 = vmatmul.bf16.vlgmr.msrb.gmra.mxu0 %v7090_v19 }
 0x164   :  { %v6682_v54 = vld [vmem:[#allocation2 + $0x9ec] sm:$0xf0]  ;;  %3256 = vmatpush.bf16.msrb.mxu2 %v4847_v3  ;;  %v7185_v3 = vpop.f32.mrf.mxu3 }
 0x165   :  { %v5838_v55 = vld [vmem:[#allocation2 + $0xbd0] sm:$0xf]  ;;  %v5583_v9 = vor.u32 %v6682_v54, %v5582_v53  ;;  %3243 = vmatmul.bf16.vlgmr.msrb.gmra.mxu1 %v7095_v31  ;;  %v7183_v53 = vpop.f32.mrf.mxu2  ;;  %v4499_v54 = vor.u32 %v6406_v45, %v4496_v46  ;;  %v6382_v46 = vld [vmem:[#allocation2 + $0x94] sm:$0xf] }
 0x166   :  { %v6746_v57 = vld [vmem:[#allocation2 + $0xbec] sm:$0xf0]  ;;  %3270 = vmatpush.bf16.msrb.mxu3 %v5103_v8  ;;  %v3020_v8 = vpop.f32.mrf.mxu1 }
 0x167   :  { %v6094_v58 = vld [vmem:[#allocation2 + $0xdd0] sm:$0xf]  ;;  %v5839_v11 = vor.u32 %v6746_v57, %v5838_v55  ;;  %3277 = vmatpush.bf16.msra.mxu0 %v5583_v9  ;;  %3257 = vmatmul.bf16.vlgmr.msrb.gmra.mxu2 %v7092_v25 }
 0x168   :  { %v6810_v60 = vld [vmem:[#allocation2 + $0xdec] sm:$0xf0] }
 0x169   :  { %v6095_v12 = vor.u32 %v6810_v60, %v6094_v58  ;;  %v5550_v13 = vld [vmem:[#allocation2 + $0x990] sm:$0xf]  ;;  %3291 = vmatpush.bf16.msra.mxu1 %v5839_v11  ;;  %3271 = vmatmul.bf16.vlgmr.msrb.gmra.mxu3 %v7099_v41  ;;  %v3006_v58 = vpop.f32.mrf.mxu0  ;;  %v6398_v60 = vld [vmem:[#allocation2 + $0x114] sm:$0xf] }
 0x16a   :  { %v6674_v14 = vld [vmem:[#allocation2 + $0x9ac] sm:$0xf0]  ;;  %3319 = vmatpush.bf16.msra.mxu3 %v4563_v17  ;;  %v3007_v5 = vadd.f32 %v3006_v58, %v7173_v21  ;;  %v7388_v21 = vperm.slane %v7136_v26, 2 }
 0x16b   :  { %v5806_v16 = vld [vmem:[#allocation2 + $0xb90] sm:$0xf]  ;;  %v5551_v29 = vor.u32 %v6674_v14, %v5550_v13  ;;  %3305 = vmatpush.bf16.msra.mxu2 %v6095_v12 }
 0x16c   :  { %v6738_v18 = vld [vmem:[#allocation2 + $0xbac] sm:$0xf0]  ;;  %v7188_v17 = vadd.f32 %v3020_v8, %v3007_v5  ;;  %v4368_v8 = vld [vmem:[#allocation2 + $0x70] sm:$0xf0] }
 0x16d   :  { %v6062_v20 = vld [vmem:[#allocation2 + $0xd90] sm:$0xf]  ;;  %v5807_v32 = vor.u32 %v6738_v18, %v5806_v16  ;;  %3278 = vmatpush.bf16.msra.mxu0 %v5551_v29  ;;  %v4467_v16 = vor.u32 %v6398_v60, %v4464_v2  ;;  %v3034_v45 = vpop.f32.mrf.mxu2 }
 0x16e   :  { %v6802_v22 = vld [vmem:[#allocation2 + $0xdac] sm:$0xf0]  ;;  %3320 = vmatpush.bf16.msra.mxu3 %v4531_v40  ;;  %7393 = vst [vmem:[#allocation17_spill] sm:$0xff] %v7188_v17  ;;  %v4435_v40 = vor.u32 %v6390_v24, %v4432_v27  ;;  %v6366_v27 = vld [vmem:[#allocation2 + $0x14] sm:$0xf] }
 0x16f   :  { %v6063_v34 = vor.u32 %v6802_v22, %v6062_v20  ;;  %v5518_v36 = vld [vmem:[#allocation2 + $0x950] sm:$0xf]  ;;  %3292 = vmatpush.bf16.msra.mxu1 %v5807_v32  ;;  %v5336_v17 = vld [vmem:[#allocation2 + $0x7f8] sm:$0xf0] }
 0x170   :  { %v6666_v37 = vld [vmem:[#allocation2 + $0x96c] sm:$0xf0] }
 0x171   :  { %v5774_v39 = vld [vmem:[#allocation2 + $0xb50] sm:$0xf]  ;;  %v5519_v47 = vor.u32 %v6666_v37, %v5518_v36  ;;  %3306 = vmatpush.bf16.msra.mxu2 %v6063_v34 }
 0x172   :  { %v6730_v42 = vld [vmem:[#allocation2 + $0xb6c] sm:$0xf0]  ;;  %3321 = vmatpush.bf16.msra.mxu3 %v4499_v54 }
 0x173   :  { %v6030_v43 = vld [vmem:[#allocation2 + $0xd50] sm:$0xf]  ;;  %v5775_v48 = vor.u32 %v6730_v42, %v5774_v39  ;;  %3279 = vmatpush.bf16.msra.mxu0 %v5519_v47  ;;  %v4400_v47 = vld [vmem:[#allocation2 + $0xb0] sm:$0xf0] }
 0x174   :  { %v6794_v44 = vld [vmem:[#allocation2 + $0xd6c] sm:$0xf0]  ;;  %v4403_v58 = vor.u32 %v6382_v46, %v4400_v47  ;;  %v5584_v46 = vld [vmem:[#allocation2 + $0x9f0] sm:$0xf0] }
 0x175   :  { %v6031_v49 = vor.u32 %v6794_v44, %v6030_v43  ;;  %v5486_v50 = vld [vmem:[#allocation2 + $0x910] sm:$0xf]  ;;  %3293 = vmatpush.bf16.msra.mxu1 %v5775_v48  ;;  %v3035_v48 = vadd.f32 %v3034_v45, %v7388_v21  ;;  %v6678_v45 = vld [vmem:[#allocation2 + $0x9d4] sm:$0xf]  ;;  %v6755_v21 = vld [vmem:[#allocation2 + $0xc34] sm:$0xf0] }
 0x176   :  { %v6658_v38 = vld [vmem:[#allocation2 + $0x92c] sm:$0xf0]  ;;  %3322 = vmatpush.bf16.msra.mxu3 %v4467_v16 }
 0x177   :  { %v5742_v51 = vld [vmem:[#allocation2 + $0xb10] sm:$0xf]  ;;  %v5487_v7 = vor.u32 %v6658_v38, %v5486_v50  ;;  %3307 = vmatpush.bf16.msra.mxu2 %v6031_v49  ;;  %v3048_v50 = vpop.f32.mrf.mxu3 }
 0x178   :  { %v6722_v55 = vld [vmem:[#allocation2 + $0xb2c] sm:$0xf0] }
 0x179   :  { %v5998_v56 = vld [vmem:[#allocation2 + $0xd10] sm:$0xf]  ;;  %v5743_v9 = vor.u32 %v6722_v55, %v5742_v51  ;;  %3280 = vmatpush.bf16.msra.mxu0 %v5487_v7  ;;  %v6374_v7 = vld [vmem:[#allocation2 + $0x54] sm:$0xf] }
 0x17a   :  { %v6786_v57 = vld [vmem:[#allocation2 + $0xd2c] sm:$0xf0]  ;;  %3323 = vmatpush.bf16.msra.mxu3 %v4435_v40  ;;  %v6614_v40 = vld [vmem:[#allocation2 + $0x7d4] sm:$0xf] }
 0x17b   :  { %v5999_v11 = vor.u32 %v6786_v57, %v5998_v56  ;;  %v5454_v12 = vld [vmem:[#allocation2 + $0x8d0] sm:$0xf]  ;;  %3294 = vmatpush.bf16.msra.mxu1 %v5743_v9  ;;  %v7193_v57 = vadd.f32 %v3048_v50, %v3035_v48 }
 0x17c   :  { %v6650_v13 = vld [vmem:[#allocation2 + $0x8ec] sm:$0xf0] }
 0x17d   :  { %v5710_v14 = vld [vmem:[#allocation2 + $0xad0] sm:$0xf]  ;;  %v5455_v29 = vor.u32 %v6650_v13, %v5454_v12  ;;  %3308 = vmatpush.bf16.msra.mxu2 %v5999_v11 }
 0x17e   :  { %v6714_v18 = vld [vmem:[#allocation2 + $0xaec] sm:$0xf0]  ;;  %3324 = vmatpush.bf16.msra.mxu3 %v4403_v58  ;;  %v6606_v58 = vld [vmem:[#allocation2 + $0x794] sm:$0xf] }
 0x17f   :  { %v5966_v20 = vld [vmem:[#allocation2 + $0xcd0] sm:$0xf]  ;;  %v5711_v32 = vor.u32 %v6714_v18, %v5710_v14  ;;  %3281 = vmatpush.bf16.msra.mxu0 %v5455_v29  ;;  %v4336_v29 = vld [vmem:[#allocation2 + $0x30] sm:$0xf0] }
 0x180   :  { %v6778_v22 = vld [vmem:[#allocation2 + $0xcec] sm:$0xf0]  ;;  %v4339_v47 = vor.u32 %v6366_v27, %v4336_v29  ;;  %v6662_v27 = vld [vmem:[#allocation2 + $0x954] sm:$0xf] }
 0x181   :  { %v5967_v34 = vor.u32 %v6778_v22, %v5966_v20  ;;  %v5422_v36 = vld [vmem:[#allocation2 + $0x890] sm:$0xf]  ;;  %3295 = vmatpush.bf16.msra.mxu1 %v5711_v32  ;;  %v4371_v22 = vor.u32 %v6374_v7, %v4368_v8  ;;  %v6486_v32 = vld [vmem:[#allocation2 + $0x3d4] sm:$0xf] }
 0x182   :  { %v6642_v37 = vld [vmem:[#allocation2 + $0x8ac] sm:$0xf0]  ;;  %v5552_v7 = vld [vmem:[#allocation2 + $0x9b0] sm:$0xf0] }
 0x183   :  { %v5678_v39 = vld [vmem:[#allocation2 + $0xa90] sm:$0xf]  ;;  %v5423_v49 = vor.u32 %v6642_v37, %v5422_v36  ;;  %3309 = vmatpush.bf16.msra.mxu2 %v5967_v34  ;;  %v4816_v34 = vld [vmem:[#allocation2 + $0x3f0] sm:$0xf0]  ;;  %3325 = vmatpush.bf16.msra.mxu3 %v4371_v22 }
 0x184   :  { %v6706_v42 = vld [vmem:[#allocation2 + $0xaac] sm:$0xf0]  ;;  %v6550_v36 = vld [vmem:[#allocation2 + $0x5d4] sm:$0xf]  ;;  %v4819_v48 = vor.u32 %v6486_v32, %v4816_v34 }
 0x185   :  { %v5934_v43 = vld [vmem:[#allocation2 + $0xc90] sm:$0xf]  ;;  %v5679_v38 = vor.u32 %v6706_v42, %v5678_v39  ;;  %3282 = vmatpush.bf16.msra.mxu0 %v5423_v49  ;;  %v5072_v39 = vld [vmem:[#allocation2 + $0x5f0] sm:$0xf0] }
 0x186   :  { %v6770_v44 = vld [vmem:[#allocation2 + $0xcac] sm:$0xf0]  ;;  %v5328_v42 = vld [vmem:[#allocation2 + $0x7f0] sm:$0xf0]  ;;  %v5075_v49 = vor.u32 %v6550_v36, %v5072_v39 }
 0x187   :  { %v5935_v51 = vor.u32 %v6770_v44, %v5934_v43  ;;  %v5390_v54 = vld [vmem:[#allocation2 + $0x850] sm:$0xf]  ;;  %3296 = vmatpush.bf16.msra.mxu1 %v5679_v38  ;;  %v5331_v50 = vor.u32 %v6614_v40, %v5328_v42  ;;  %v6478_v38 = vld [vmem:[#allocation2 + $0x394] sm:$0xf]  ;;  %3326 = vmatpush.bf16.msra.mxu3 %v4339_v47 }
 0x188   :  { %v6634_v55 = vld [vmem:[#allocation2 + $0x86c] sm:$0xf0]  ;;  %v6598_v22 = vld [vmem:[#allocation2 + $0x754] sm:$0xf] }
 0x189   :  { %v5646_v56 = vld [vmem:[#allocation2 + $0xa50] sm:$0xf]  ;;  %v5391_v9 = vor.u32 %v6634_v55, %v5390_v54  ;;  %3310 = vmatpush.bf16.msra.mxu2 %v5935_v51  ;;  %v4784_v51 = vld [vmem:[#allocation2 + $0x3b0] sm:$0xf0]  ;;  %v5587_v55 = vor.u32 %v6678_v45, %v5584_v46 }
 0x18a   :  { %v6698_v60 = vld [vmem:[#allocation2 + $0xa6c] sm:$0xf0]  ;;  %v6542_v54 = vld [vmem:[#allocation2 + $0x594] sm:$0xf]  ;;  %v4787_v8 = vor.u32 %v6478_v38, %v4784_v51  ;;  %3327 = vmatmul.bf16.vlgmr.msra.gmra.mxu3 %v7090_v19 }
 0x18b   :  { %v5902_v2 = vld [vmem:[#allocation2 + $0xc50] sm:$0xf]  ;;  %v5647_v13 = vor.u32 %v6698_v60, %v5646_v56  ;;  %3283 = vmatpush.bf16.msra.mxu0 %v5391_v9  ;;  %v5040_v56 = vld [vmem:[#allocation2 + $0x5b0] sm:$0xf0]  ;;  %v7197_v9 = vpop.f32.mrf.mxu1  ;;  %3375 = vmatpush.bf16.msrb.mxu3 %v5587_v55 }
 0x18c   :  { %v6762_v5 = vld [vmem:[#allocation2 + $0xc6c] sm:$0xf0]  ;;  %v5296_v60 = vld [vmem:[#allocation2 + $0x7b0] sm:$0xf0]  ;;  %7394 = vst [vmem:[#allocation18_spill] sm:$0xff] %v7197_v9 }
 0x18d   :  { %v5358_v11 = vld [vmem:[#allocation2 + $0x810] sm:$0xf]  ;;  %v5903_v14 = vor.u32 %v6762_v5, %v5902_v2  ;;  %3297 = vmatpush.bf16.msra.mxu1 %v5647_v13  ;;  %v7195_v2 = vpop.f32.mrf.mxu0  ;;  %v6670_v5 = vld [vmem:[#allocation2 + $0x994] sm:$0xf]  ;;  %v5560_v9 = vld [vmem:[#allocation2 + $0x9b8] sm:$0xf0] }
 0x18e   :  { %v6626_v12 = vld [vmem:[#allocation2 + $0x82c] sm:$0xf0]  ;;  %v6470_v13 = vld [vmem:[#allocation2 + $0x354] sm:$0xf] }
 0x18f   :  { %v5614_v16 = vld [vmem:[#allocation2 + $0xa10] sm:$0xf]  ;;  %v5359_v37 = vor.u32 %v6626_v12, %v5358_v11  ;;  %3311 = vmatpush.bf16.msra.mxu2 %v5903_v14  ;;  %v5043_v11 = vor.u32 %v6542_v54, %v5040_v56  ;;  %v5299_v12 = vor.u32 %v6606_v58, %v5296_v60  ;;  %v4752_v14 = vld [vmem:[#allocation2 + $0x370] sm:$0xf0] }
 0x190   :  { %v6690_v18 = vld [vmem:[#allocation2 + $0xa2c] sm:$0xf0]  ;;  %v5520_v29 = vld [vmem:[#allocation2 + $0x970] sm:$0xf0]  ;;  %v4755_v32 = vor.u32 %v6470_v13, %v4752_v14 }
 0x191   :  { %v5870_v20 = vld [vmem:[#allocation2 + $0xc10] sm:$0xf]  ;;  %v5615_v43 = vor.u32 %v6690_v18, %v5614_v16  ;;  %3284 = vmatpush.bf16.msra.mxu0 %v5359_v37  ;;  %v6534_v16 = vld [vmem:[#allocation2 + $0x554] sm:$0xf]  ;;  %v5555_v18 = vor.u32 %v6670_v5, %v5552_v7  ;;  %v5523_v42 = vor.u32 %v6662_v27, %v5520_v29 }
 0x192   :  { %v6754_v24 = vld [vmem:[#allocation2 + $0xc2c] sm:$0xf0]  ;;  %v6462_v37 = vld [vmem:[#allocation2 + $0x314] sm:$0xf] }
 0x193   :  { %v5871_v44 = vor.u32 %v6754_v24, %v5870_v20  ;;  %3298 = vmatpush.bf16.msra.mxu1 %v5615_v43  ;;  %v5008_v20 = vld [vmem:[#allocation2 + $0x570] sm:$0xf0]  ;;  %3376 = vmatpush.bf16.msrb.mxu3 %v5555_v18  ;;  %v3076_v54 = vpop.f32.mrf.mxu1 }
 0x194   :  { %3285 = vmatmul.bf16.vlgmr.msra.gmra.mxu0 %v7114_v59  ;;  %v5264_v24 = vld [vmem:[#allocation2 + $0x770] sm:$0xf0]  ;;  %v5011_v34 = vor.u32 %v6534_v16, %v5008_v20 }
 0x195   :  { %3312 = vmatpush.bf16.msra.mxu2 %v5871_v44  ;;  %3333 = vmatpush.bf16.msrb.mxu0 %v4819_v48  ;;  %v5267_v36 = vor.u32 %v6598_v22, %v5264_v24  ;;  %v4720_v39 = vld [vmem:[#allocation2 + $0x330] sm:$0xf0]  ;;  %v3062_v46 = vpop.f32.mrf.mxu0 }
 0x196   :  { %3299 = vmatmul.bf16.vlgmr.msra.gmra.mxu1 %v7118_v0  ;;  %v6526_v40 = vld [vmem:[#allocation2 + $0x514] sm:$0xf] }
 0x197   :  { %3347 = vmatpush.bf16.msrb.mxu1 %v5075_v49  ;;  %v4976_v43 = vld [vmem:[#allocation2 + $0x530] sm:$0xf0]  ;;  %v3063_v49 = vadd.f32 %v3062_v46, %v7193_v57  ;;  %3377 = vmatpush.bf16.msrb.mxu3 %v5523_v42 }
 0x198   :  { %3313 = vmatmul.bf16.vlgmr.msra.gmra.mxu2 %v7116_v63  ;;  %v6590_v44 = vld [vmem:[#allocation2 + $0x714] sm:$0xf]  ;;  %v4979_v38 = vor.u32 %v6526_v40, %v4976_v43 }
 0x199   :  { %3361 = vmatpush.bf16.msrb.mxu2 %v5331_v50  ;;  %3334 = vmatpush.bf16.msrb.mxu0 %v4787_v8  ;;  %v5232_v45 = vld [vmem:[#allocation2 + $0x730] sm:$0xf0]  ;;  %v4723_v50 = vor.u32 %v6462_v37, %v4720_v39  ;;  %v7204_v5 = vadd.f32 %v3076_v54, %v3063_v49 }
 0x19a   :  { %v6654_v47 = vld [vmem:[#allocation2 + $0x914] sm:$0xf]  ;;  %v5235_v51 = vor.u32 %v6590_v44, %v5232_v45 }
 0x19b   :  { %3348 = vmatpush.bf16.msrb.mxu1 %v5043_v11  ;;  %v5488_v48 = vld [vmem:[#allocation2 + $0x930] sm:$0xf0] }
 0x19c   :  { %v6454_v55 = vld [vmem:[#allocation2 + $0x2d4] sm:$0xf]  ;;  %v5491_v60 = vor.u32 %v6654_v47, %v5488_v48 }
 0x19d   :  { %3362 = vmatpush.bf16.msrb.mxu2 %v5299_v12  ;;  %3335 = vmatpush.bf16.msrb.mxu0 %v4755_v32  ;;  %v4688_v56 = vld [vmem:[#allocation2 + $0x2f0] sm:$0xf0] }
 0x19e   :  { %v6518_v58 = vld [vmem:[#allocation2 + $0x4d4] sm:$0xf]  ;;  %v4691_v57 = vor.u32 %v6454_v55, %v4688_v56  ;;  %3378 = vmatpush.bf16.msrb.mxu3 %v5491_v60 }
 0x19f   :  { %3349 = vmatpush.bf16.msrb.mxu1 %v5011_v34  ;;  %v4944_v7 = vld [vmem:[#allocation2 + $0x4f0] sm:$0xf0] }
 0x1a0   :  { %v6582_v8 = vld [vmem:[#allocation2 + $0x6d4] sm:$0xf]  ;;  %v4947_v14 = vor.u32 %v6518_v58, %v4944_v7 }
 0x1a1   :  { %3363 = vmatpush.bf16.msrb.mxu2 %v5267_v36  ;;  %v5200_v11 = vld [vmem:[#allocation2 + $0x6f0] sm:$0xf0]  ;;  %3336 = vmatpush.bf16.msrb.mxu0 %v4723_v50 }
 0x1a2   :  { %v6646_v12 = vld [vmem:[#allocation2 + $0x8d4] sm:$0xf]  ;;  %v5203_v16 = vor.u32 %v6582_v8, %v5200_v11 }
 0x1a3   :  { %v5456_v13 = vld [vmem:[#allocation2 + $0x8f0] sm:$0xf0]  ;;  %3350 = vmatpush.bf16.msrb.mxu1 %v4979_v38 }
 0x1a4   :  { %v6446_v18 = vld [vmem:[#allocation2 + $0x294] sm:$0xf]  ;;  %v5459_v24 = vor.u32 %v6646_v12, %v5456_v13 }
 0x1a5   :  { %3364 = vmatpush.bf16.msrb.mxu2 %v5235_v51  ;;  %v4656_v20 = vld [vmem:[#allocation2 + $0x2b0] sm:$0xf0]  ;;  %3337 = vmatpush.bf16.msrb.mxu0 %v4691_v57 }
 0x1a6   :  { %v6510_v22 = vld [vmem:[#allocation2 + $0x494] sm:$0xf]  ;;  %v4659_v37 = vor.u32 %v6446_v18, %v4656_v20  ;;  %3379 = vmatpush.bf16.msrb.mxu3 %v5459_v24  ;;  %v6427_v24 = vld [vmem:[#allocation2 + $0x1f4] sm:$0xf0] }
 0x1a7   :  { %v4912_v27 = vld [vmem:[#allocation2 + $0x4b0] sm:$0xf0]  ;;  %3351 = vmatpush.bf16.msrb.mxu1 %v4947_v14 }
 0x1a8   :  { %v6574_v29 = vld [vmem:[#allocation2 + $0x694] sm:$0xf]  ;;  %v4915_v39 = vor.u32 %v6510_v22, %v4912_v27  ;;  %v4566_v22 = vld [vmem:[#allocation2 + $0x1d8] sm:$0xf] }
 0x1a9   :  { %v5168_v32 = vld [vmem:[#allocation2 + $0x6b0] sm:$0xf0]  ;;  %3365 = vmatpush.bf16.msrb.mxu2 %v5203_v16  ;;  %3338 = vmatpush.bf16.msrb.mxu0 %v4659_v37 }
 0x1aa   :  { %v6638_v34 = vld [vmem:[#allocation2 + $0x894] sm:$0xf]  ;;  %v5171_v40 = vor.u32 %v6574_v29, %v5168_v32  ;;  %v4822_v32 = vld [vmem:[#allocation2 + $0x3d8] sm:$0xf] }
 0x1ab   :  { %v5424_v36 = vld [vmem:[#allocation2 + $0x8b0] sm:$0xf0]  ;;  %3352 = vmatpush.bf16.msrb.mxu1 %v4915_v39 }
 0x1ac   :  { %v6438_v42 = vld [vmem:[#allocation2 + $0x254] sm:$0xf]  ;;  %v5427_v45 = vor.u32 %v6638_v34, %v5424_v36  ;;  %v6491_v34 = vld [vmem:[#allocation2 + $0x3f4] sm:$0xf0] }
 0x1ad   :  { %v4624_v43 = vld [vmem:[#allocation2 + $0x270] sm:$0xf0]  ;;  %3366 = vmatpush.bf16.msrb.mxu2 %v5171_v40  ;;  %v4567_v40 = vor.u32 %v6427_v24, %v4566_v22 }
 0x1ae   :  { %v6502_v44 = vld [vmem:[#allocation2 + $0x454] sm:$0xf]  ;;  %v4627_v38 = vor.u32 %v6438_v42, %v4624_v43  ;;  %3380 = vmatpush.bf16.msrb.mxu3 %v5427_v45  ;;  %v4823_v45 = vor.u32 %v6491_v34, %v4822_v32  ;;  %v6403_v32 = vld [vmem:[#allocation2 + $0x134] sm:$0xf0] }
 0x1af   :  { %v4880_v46 = vld [vmem:[#allocation2 + $0x470] sm:$0xf0]  ;;  %v4726_v34 = vld [vmem:[#allocation2 + $0x318] sm:$0xf] }
 0x1b0   :  { %v6566_v47 = vld [vmem:[#allocation2 + $0x654] sm:$0xf]  ;;  %v4883_v55 = vor.u32 %v6502_v44, %v4880_v46  ;;  %3339 = vmatpush.bf16.msrb.mxu0 %v4627_v38 }
 0x1b1   :  { %v5136_v48 = vld [vmem:[#allocation2 + $0x670] sm:$0xf0] }
 0x1b2   :  { %v6630_v49 = vld [vmem:[#allocation2 + $0x854] sm:$0xf]  ;;  %v5139_v56 = vor.u32 %v6566_v47, %v5136_v48  ;;  %3353 = vmatpush.bf16.msrb.mxu1 %v4883_v55  ;;  %v4534_v47 = vld [vmem:[#allocation2 + $0x198] sm:$0xf] }
 0x1b3   :  { %v5392_v50 = vld [vmem:[#allocation2 + $0x870] sm:$0xf0]  ;;  %v6419_v48 = vld [vmem:[#allocation2 + $0x1b4] sm:$0xf0] }
 0x1b4   :  { %v6430_v51 = vld [vmem:[#allocation2 + $0x214] sm:$0xf]  ;;  %v5395_v8 = vor.u32 %v6630_v49, %v5392_v50  ;;  %3367 = vmatpush.bf16.msrb.mxu2 %v5139_v56  ;;  %v4790_v49 = vld [vmem:[#allocation2 + $0x398] sm:$0xf] }
 0x1b5   :  { %v4592_v54 = vld [vmem:[#allocation2 + $0x230] sm:$0xf0]  ;;  %v6483_v50 = vld [vmem:[#allocation2 + $0x3b4] sm:$0xf0] }
 0x1b6   :  { %v6494_v58 = vld [vmem:[#allocation2 + $0x414] sm:$0xf]  ;;  %v4595_v18 = vor.u32 %v6430_v51, %v4592_v54  ;;  %3381 = vmatpush.bf16.msrb.mxu3 %v5395_v8  ;;  %v4535_v54 = vor.u32 %v6419_v48, %v4534_v47  ;;  %v4502_v8 = vld [vmem:[#allocation2 + $0x158] sm:$0xf] }
 0x1b7   :  { %v4848_v60 = vld [vmem:[#allocation2 + $0x430] sm:$0xf0]  ;;  %v4438_v47 = vld [vmem:[#allocation2 + $0xd8] sm:$0xf] }
 0x1b8   :  { %v6558_v7 = vld [vmem:[#allocation2 + $0x614] sm:$0xf]  ;;  %v4851_v27 = vor.u32 %v6494_v58, %v4848_v60  ;;  %3340 = vmatpush.bf16.msrb.mxu0 %v4595_v18  ;;  %v4791_v60 = vor.u32 %v6483_v50, %v4790_v49  ;;  %v6395_v48 = vld [vmem:[#allocation2 + $0xf4] sm:$0xf0] }
 0x1b9   :  { %v5104_v11 = vld [vmem:[#allocation2 + $0x630] sm:$0xf0]  ;;  %v4694_v49 = vld [vmem:[#allocation2 + $0x2d8] sm:$0xf] }
 0x1ba   :  { %v6622_v12 = vld [vmem:[#allocation2 + $0x814] sm:$0xf]  ;;  %v5107_v29 = vor.u32 %v6558_v7, %v5104_v11  ;;  %3354 = vmatpush.bf16.msrb.mxu1 %v4851_v27  ;;  %v6411_v11 = vld [vmem:[#allocation2 + $0x174] sm:$0xf0] }
 0x1bb   :  { %v5360_v13 = vld [vmem:[#allocation2 + $0x830] sm:$0xf0]  ;;  %3341 = vmatmul.bf16.vlgmr.msrb.gmra.mxu0 %v7095_v31  ;;  %v6459_v50 = vld [vmem:[#allocation2 + $0x2f4] sm:$0xf0] }
 0x1bc   :  { %v6742_v57 = vld [vmem:[#allocation2 + $0xbd4] sm:$0xf]  ;;  %v5363_v36 = vor.u32 %v6622_v12, %v5360_v13  ;;  %3368 = vmatpush.bf16.msrb.mxu2 %v5107_v29  ;;  %v4758_v12 = vld [vmem:[#allocation2 + $0x358] sm:$0xf] }
 0x1bd   :  { %v5840_v14 = vld [vmem:[#allocation2 + $0xbf0] sm:$0xf0]  ;;  %3355 = vmatmul.bf16.vlgmr.msrb.gmra.mxu1 %v7092_v25  ;;  %v6475_v13 = vld [vmem:[#allocation2 + $0x374] sm:$0xf0] }
 0x1be   :  { %v6806_v16 = vld [vmem:[#allocation2 + $0xdd4] sm:$0xf]  ;;  %v5843_v37 = vor.u32 %v6742_v57, %v5840_v14  ;;  %3382 = vmatpush.bf16.msrb.mxu3 %v5363_v36  ;;  %v4759_v24 = vor.u32 %v6475_v13, %v4758_v12  ;;  %v4470_v29 = vld [vmem:[#allocation2 + $0x118] sm:$0xf] }
 0x1bf   :  { %v6096_v20 = vld [vmem:[#allocation2 + $0xdf0] sm:$0xf0]  ;;  %3369 = vmatmul.bf16.vlgmr.msrb.gmra.mxu2 %v7099_v41  ;;  %v6467_v36 = vld [vmem:[#allocation2 + $0x334] sm:$0xf0] }
 0x1c0   :  { %v6099_v39 = vor.u32 %v6806_v16, %v6096_v20  ;;  %v6734_v42 = vld [vmem:[#allocation2 + $0xb94] sm:$0xf]  ;;  %3389 = vmatpush.bf16.msra.mxu0 %v5843_v37  ;;  %3417 = vmatpush.bf16.msra.mxu2 %v4567_v40  ;;  %v4503_v16 = vor.u32 %v6411_v11, %v4502_v8  ;;  %v4471_v40 = vor.u32 %v6403_v32, %v4470_v29  ;;  %v4406_v8 = vld [vmem:[#allocation2 + $0x98] sm:$0xf] }
 0x1c1   :  { %v5808_v43 = vld [vmem:[#allocation2 + $0xbb0] sm:$0xf0]  ;;  %3383 = vmatmul.bf16.vlgmr.msrb.gmra.mxu3 %v7114_v59  ;;  %v6387_v11 = vld [vmem:[#allocation2 + $0xb4] sm:$0xf0] }
 0x1c2   :  { %v6798_v44 = vld [vmem:[#allocation2 + $0xd94] sm:$0xf]  ;;  %v5811_v38 = vor.u32 %v6734_v42, %v5808_v43  ;;  %3403 = vmatpush.bf16.msra.mxu1 %v6099_v39  ;;  %3431 = vmatpush.bf16.msra.mxu3 %v4823_v45  ;;  %v4727_v45 = vor.u32 %v6467_v36, %v4726_v34  ;;  %v4662_v12 = vld [vmem:[#allocation2 + $0x298] sm:$0xf] }
 0x1c3   :  { %v6064_v46 = vld [vmem:[#allocation2 + $0xdb0] sm:$0xf0]  ;;  %v6451_v13 = vld [vmem:[#allocation2 + $0x2b4] sm:$0xf0] }
 0x1c4   :  { %v6067_v51 = vor.u32 %v6798_v44, %v6064_v46  ;;  %v6726_v55 = vld [vmem:[#allocation2 + $0xb54] sm:$0xf]  ;;  %3390 = vmatpush.bf16.msra.mxu0 %v5811_v38  ;;  %3418 = vmatpush.bf16.msra.mxu2 %v4535_v54  ;;  %v4439_v54 = vor.u32 %v6395_v48, %v4438_v47  ;;  %v4374_v29 = vld [vmem:[#allocation2 + $0x58] sm:$0xf] }
 0x1c5   :  { %v5776_v56 = vld [vmem:[#allocation2 + $0xb70] sm:$0xf0]  ;;  %v6379_v32 = vld [vmem:[#allocation2 + $0x74] sm:$0xf0] }
 0x1c6   :  { %v6790_v58 = vld [vmem:[#allocation2 + $0xd54] sm:$0xf]  ;;  %v5779_v57 = vor.u32 %v6726_v55, %v5776_v56  ;;  %3404 = vmatpush.bf16.msra.mxu1 %v6067_v51  ;;  %3432 = vmatpush.bf16.msra.mxu3 %v4791_v60  ;;  %v4695_v60 = vor.u32 %v6459_v50, %v4694_v49  ;;  %v4630_v34 = vld [vmem:[#allocation2 + $0x258] sm:$0xf] }
 0x1c7   :  { %v6032_v7 = vld [vmem:[#allocation2 + $0xd70] sm:$0xf0]  ;;  %v6443_v36 = vld [vmem:[#allocation2 + $0x274] sm:$0xf0] }
 0x1c8   :  { %v6035_v14 = vor.u32 %v6790_v58, %v6032_v7  ;;  %v6718_v18 = vld [vmem:[#allocation2 + $0xb14] sm:$0xf]  ;;  %3391 = vmatpush.bf16.msra.mxu0 %v5779_v57  ;;  %3419 = vmatpush.bf16.msra.mxu2 %v4503_v16  ;;  %v4407_v16 = vor.u32 %v6387_v11, %v4406_v8  ;;  %v4631_v47 = vor.u32 %v6443_v36, %v4630_v34  ;;  %v6371_v48 = vld [vmem:[#allocation2 + $0x34] sm:$0xf0] }
 0x1c9   :  { %v5744_v20 = vld [vmem:[#allocation2 + $0xb30] sm:$0xf0]  ;;  %v4598_v49 = vld [vmem:[#allocation2 + $0x218] sm:$0xf] }
 0x1ca   :  { %v6782_v22 = vld [vmem:[#allocation2 + $0xd14] sm:$0xf]  ;;  %v5747_v37 = vor.u32 %v6718_v18, %v5744_v20  ;;  %3405 = vmatpush.bf16.msra.mxu1 %v6035_v14  ;;  %3433 = vmatpush.bf16.msra.mxu3 %v4759_v24  ;;  %v4663_v24 = vor.u32 %v6451_v13, %v4662_v12  ;;  %v6435_v50 = vld [vmem:[#allocation2 + $0x234] sm:$0xf0] }
 0x1cb   :  { %v6000_v27 = vld [vmem:[#allocation2 + $0xd30] sm:$0xf0]  ;;  %v5846_v11 = vld [vmem:[#allocation2 + $0xbd8] sm:$0xf]  ;;  %v4599_v13 = vor.u32 %v6435_v50, %v4598_v49 }
 0x1cc   :  { %v6003_v39 = vor.u32 %v6782_v22, %v6000_v27  ;;  %v6710_v42 = vld [vmem:[#allocation2 + $0xad4] sm:$0xf]  ;;  %3392 = vmatpush.bf16.msra.mxu0 %v5747_v37  ;;  %3420 = vmatpush.bf16.msra.mxu2 %v4471_v40  ;;  %v6747_v12 = vld [vmem:[#allocation2 + $0xbf4] sm:$0xf0] }
 0x1cd   :  { %v5712_v43 = vld [vmem:[#allocation2 + $0xaf0] sm:$0xf0]  ;;  %v5814_v34 = vld [vmem:[#allocation2 + $0xb98] sm:$0xf] }
 0x1ce   :  { %v6774_v44 = vld [vmem:[#allocation2 + $0xcd4] sm:$0xf]  ;;  %v5715_v38 = vor.u32 %v6710_v42, %v5712_v43  ;;  %3406 = vmatpush.bf16.msra.mxu1 %v6003_v39  ;;  %3434 = vmatpush.bf16.msra.mxu3 %v4727_v45  ;;  %v4375_v43 = vor.u32 %v6379_v32, %v4374_v29  ;;  %v5558_v29 = vld [vmem:[#allocation2 + $0x998] sm:$0xf] }
 0x1cf   :  { %v5968_v46 = vld [vmem:[#allocation2 + $0xcf0] sm:$0xf0]  ;;  %v6675_v32 = vld [vmem:[#allocation2 + $0x9b4] sm:$0xf0] }
 0x1d0   :  { %v5971_v51 = vor.u32 %v6774_v44, %v5968_v46  ;;  %v6702_v55 = vld [vmem:[#allocation2 + $0xa94] sm:$0xf]  ;;  %3393 = vmatpush.bf16.msra.mxu0 %v5715_v38  ;;  %3421 = vmatpush.bf16.msra.mxu2 %v4439_v54  ;;  %v4342_v46 = vld [vmem:[#allocation2 + $0x18] sm:$0xf] }
 0x1d1   :  { %v5680_v56 = vld [vmem:[#allocation2 + $0xab0] sm:$0xf0]  ;;  %v5078_v38 = vld [vmem:[#allocation2 + $0x5d8] sm:$0xf]  ;;  %v4343_v8 = vor.u32 %v6371_v48, %v4342_v46 }
 0x1d2   :  { %v6766_v58 = vld [vmem:[#allocation2 + $0xc94] sm:$0xf]  ;;  %v5683_v57 = vor.u32 %v6702_v55, %v5680_v56  ;;  %3407 = vmatpush.bf16.msra.mxu1 %v5971_v51  ;;  %3435 = vmatpush.bf16.msra.mxu3 %v4695_v60  ;;  %v6555_v51 = vld [vmem:[#allocation2 + $0x5f4] sm:$0xf0] }
 0x1d3   :  { %v5936_v7 = vld [vmem:[#allocation2 + $0xcb0] sm:$0xf0]  ;;  %v5334_v54 = vld [vmem:[#allocation2 + $0x7d8] sm:$0xf] }
 0x1d4   :  { %v5939_v14 = vor.u32 %v6766_v58, %v5936_v7  ;;  %v6694_v18 = vld [vmem:[#allocation2 + $0xa54] sm:$0xf]  ;;  %3394 = vmatpush.bf16.msra.mxu0 %v5683_v57  ;;  %3422 = vmatpush.bf16.msra.mxu2 %v4407_v16  ;;  %v6619_v56 = vld [vmem:[#allocation2 + $0x7f4] sm:$0xf0]  ;;  %v5079_v57 = vor.u32 %v6555_v51, %v5078_v38 }
 0x1d5   :  { %v5648_v20 = vld [vmem:[#allocation2 + $0xa70] sm:$0xf0]  ;;  %v5590_v58 = vld [vmem:[#allocation2 + $0x9d8] sm:$0xf] }
 0x1d6   :  { %v6758_v22 = vld [vmem:[#allocation2 + $0xc54] sm:$0xf]  ;;  %v5651_v37 = vor.u32 %v6694_v18, %v5648_v20  ;;  %3408 = vmatpush.bf16.msra.mxu1 %v5939_v14  ;;  %3436 = vmatpush.bf16.msra.mxu3 %v4663_v24  ;;  %v6683_v60 = vld [vmem:[#allocation2 + $0x9f4] sm:$0xf0]  ;;  %v5335_v14 = vor.u32 %v6619_v56, %v5334_v54  ;;  %v5847_v24 = vor.u32 %v6747_v12, %v5846_v11 }
 0x1d7   :  { %v5904_v27 = vld [vmem:[#allocation2 + $0xc70] sm:$0xf0]  ;;  %v5591_v16 = vor.u32 %v6683_v60, %v5590_v58  ;;  %v5046_v18 = vld [vmem:[#allocation2 + $0x598] sm:$0xf] }
 0x1d8   :  { %v6686_v39 = vld [vmem:[#allocation2 + $0xa14] sm:$0xf]  ;;  %v5907_v42 = vor.u32 %v6758_v22, %v5904_v27  ;;  %3395 = vmatpush.bf16.msra.mxu0 %v5651_v37  ;;  %3423 = vmatpush.bf16.msra.mxu2 %v4375_v43  ;;  %v6547_v20 = vld [vmem:[#allocation2 + $0x5b4] sm:$0xf0] }
 0x1d9   :  { %v5616_v40 = vld [vmem:[#allocation2 + $0xa30] sm:$0xf0]  ;;  %v5302_v22 = vld [vmem:[#allocation2 + $0x798] sm:$0xf]  ;;  %v5047_v37 = vor.u32 %v6547_v20, %v5046_v18 }
 0x1da   :  { %v6750_v44 = vld [vmem:[#allocation2 + $0xc14] sm:$0xf]  ;;  %v5619_v55 = vor.u32 %v6686_v39, %v5616_v40  ;;  %3409 = vmatpush.bf16.msra.mxu1 %v5907_v42  ;;  %3437 = vmatpush.bf16.msra.mxu3 %v4631_v47  ;;  %v6611_v27 = vld [vmem:[#allocation2 + $0x7b4] sm:$0xf0]  ;;  %v5559_v40 = vor.u32 %v6675_v32, %v5558_v29 }
 0x1db   :  { %v5872_v45 = vld [vmem:[#allocation2 + $0xc30] sm:$0xf0]  ;;  %v6739_v36 = vld [vmem:[#allocation2 + $0xbb4] sm:$0xf0]  ;;  %v5303_v39 = vor.u32 %v6611_v27, %v5302_v22 }
 0x1dc   :  { %v5875_v7 = vor.u32 %v6750_v44, %v5872_v45  ;;  %3396 = vmatpush.bf16.msra.mxu0 %v5619_v55  ;;  %3424 = vmatpush.bf16.msra.mxu2 %v4343_v8  ;;  %v5014_v42 = vld [vmem:[#allocation2 + $0x558] sm:$0xf]  ;;  %v5815_v45 = vor.u32 %v6739_v36, %v5814_v34 }
 0x1dd   :  { %v6539_v43 = vld [vmem:[#allocation2 + $0x574] sm:$0xf0] }
 0x1de   :  { %3410 = vmatpush.bf16.msra.mxu1 %v5875_v7  ;;  %3438 = vmatpush.bf16.msra.mxu3 %v4599_v13  ;;  %v5270_v44 = vld [vmem:[#allocation2 + $0x758] sm:$0xf]  ;;  %v5015_v38 = vor.u32 %v6539_v43, %v5014_v42 }
 0x1df   :  { %3397 = vmatmul.bf16.vlgmr.msra.gmra.mxu0 %v7118_v0  ;;  %v6603_v46 = vld [vmem:[#allocation2 + $0x774] sm:$0xf0]  ;;  %3425 = vmatmul.bf16.vlgmr.msra.gmra.mxu2 %v7090_v19 }
 0x1e0   :  { %3445 = vmatpush.bf16.msrb.mxu0 %v5079_v57  ;;  %3473 = vmatpush.bf16.msrb.mxu2 %v5591_v16  ;;  %v5526_v47 = vld [vmem:[#allocation2 + $0x958] sm:$0xf]  ;;  %v5271_v51 = vor.u32 %v6603_v46, %v5270_v44 }
 0x1e1   :  { %v6667_v48 = vld [vmem:[#allocation2 + $0x974] sm:$0xf0]  ;;  %3411 = vmatmul.bf16.vlgmr.msra.gmra.mxu1 %v7116_v63  ;;  %3439 = vmatmul.bf16.vlgmr.msra.gmra.mxu3 %v7095_v31 }
 0x1e2   :  { %3459 = vmatpush.bf16.msrb.mxu1 %v5335_v14  ;;  %3487 = vmatpush.bf16.msrb.mxu3 %v5847_v24  ;;  %v5782_v49 = vld [vmem:[#allocation2 + $0xb58] sm:$0xf]  ;;  %v5527_v54 = vor.u32 %v6667_v48, %v5526_v47 }
 0x1e3   :  { %v6731_v50 = vld [vmem:[#allocation2 + $0xb74] sm:$0xf0] }
 0x1e4   :  { %3446 = vmatpush.bf16.msrb.mxu0 %v5047_v37  ;;  %3474 = vmatpush.bf16.msrb.mxu2 %v5559_v40  ;;  %v4982_v55 = vld [vmem:[#allocation2 + $0x518] sm:$0xf]  ;;  %v5783_v60 = vor.u32 %v6731_v50, %v5782_v49 }
 0x1e5   :  { %v6531_v56 = vld [vmem:[#allocation2 + $0x534] sm:$0xf0] }
 0x1e6   :  { %3460 = vmatpush.bf16.msrb.mxu1 %v5303_v39  ;;  %v5238_v58 = vld [vmem:[#allocation2 + $0x718] sm:$0xf]  ;;  %3488 = vmatpush.bf16.msrb.mxu3 %v5815_v45  ;;  %v4983_v57 = vor.u32 %v6531_v56, %v4982_v55 }
 0x1e7   :  { %v6595_v7 = vld [vmem:[#allocation2 + $0x734] sm:$0xf0] }
 0x1e8   :  { %v5494_v8 = vld [vmem:[#allocation2 + $0x918] sm:$0xf]  ;;  %3447 = vmatpush.bf16.msrb.mxu0 %v5015_v38  ;;  %3475 = vmatpush.bf16.msrb.mxu2 %v5527_v54  ;;  %v5239_v14 = vor.u32 %v6595_v7, %v5238_v58 }
 0x1e9   :  { %v6659_v11 = vld [vmem:[#allocation2 + $0x934] sm:$0xf0] }
 0x1ea   :  { %v5750_v12 = vld [vmem:[#allocation2 + $0xb18] sm:$0xf]  ;;  %3461 = vmatpush.bf16.msrb.mxu1 %v5271_v51  ;;  %v5495_v16 = vor.u32 %v6659_v11, %v5494_v8  ;;  %3489 = vmatpush.bf16.msrb.mxu3 %v5783_v60 }
 0x1eb   :  { %v6723_v13 = vld [vmem:[#allocation2 + $0xb34] sm:$0xf0] }
 0x1ec   :  { %v4950_v18 = vld [vmem:[#allocation2 + $0x4d8] sm:$0xf]  ;;  %v5751_v24 = vor.u32 %v6723_v13, %v5750_v12  ;;  %3448 = vmatpush.bf16.msrb.mxu0 %v4983_v57  ;;  %3476 = vmatpush.bf16.msrb.mxu2 %v5495_v16  ;;  %v7214_v12 = vpop.f32.mrf.mxu2 }
 0x1ed   :  { %v6523_v20 = vld [vmem:[#allocation2 + $0x4f4] sm:$0xf0] }
 0x1ee   :  { %v5206_v22 = vld [vmem:[#allocation2 + $0x6d8] sm:$0xf]  ;;  %v4951_v37 = vor.u32 %v6523_v20, %v4950_v18  ;;  %3462 = vmatpush.bf16.msrb.mxu1 %v5239_v14  ;;  %3490 = vmatpush.bf16.msrb.mxu3 %v5751_v24 }
 0x1ef   :  { %v6587_v27 = vld [vmem:[#allocation2 + $0x6f4] sm:$0xf0] }
 0x1f0   :  { %v5462_v29 = vld [vmem:[#allocation2 + $0x8d8] sm:$0xf]  ;;  %v5207_v39 = vor.u32 %v6587_v27, %v5206_v22  ;;  %3449 = vmatpush.bf16.msrb.mxu0 %v4951_v37 }
 0x1f1   :  { %v6651_v32 = vld [vmem:[#allocation2 + $0x8f4] sm:$0xf0] }
 0x1f2   :  { %v5718_v34 = vld [vmem:[#allocation2 + $0xad8] sm:$0xf]  ;;  %v5463_v40 = vor.u32 %v6651_v32, %v5462_v29  ;;  %3463 = vmatpush.bf16.msrb.mxu1 %v5207_v39  ;;  %v7216_v39 = vpop.f32.mrf.mxu3 }
 0x1f3   :  { %v6715_v36 = vld [vmem:[#allocation2 + $0xaf4] sm:$0xf0] }
 0x1f4   :  { %v4918_v42 = vld [vmem:[#allocation2 + $0x498] sm:$0xf]  ;;  %v5719_v45 = vor.u32 %v6715_v36, %v5718_v34  ;;  %3477 = vmatpush.bf16.msrb.mxu2 %v5463_v40 }
 0x1f5   :  { %v6515_v43 = vld [vmem:[#allocation2 + $0x4b4] sm:$0xf0] }
 0x1f6   :  { %v5174_v44 = vld [vmem:[#allocation2 + $0x698] sm:$0xf]  ;;  %v4919_v38 = vor.u32 %v6515_v43, %v4918_v42  ;;  %3491 = vmatpush.bf16.msrb.mxu3 %v5719_v45  ;;  %v6423_v43 = vld [vmem:[#allocation2 + $0x1dc] sm:$0xf] }
 0x1f7   :  { %v6579_v46 = vld [vmem:[#allocation2 + $0x6b4] sm:$0xf0]  ;;  %v4568_v45 = vld [vmem:[#allocation2 + $0x1f8] sm:$0xf0] }
 0x1f8   :  { %v5430_v47 = vld [vmem:[#allocation2 + $0x898] sm:$0xf]  ;;  %v5175_v51 = vor.u32 %v6579_v46, %v5174_v44  ;;  %3450 = vmatpush.bf16.msrb.mxu0 %v4919_v38  ;;  %v6487_v46 = vld [vmem:[#allocation2 + $0x3dc] sm:$0xf] }
 0x1f9   :  { %v6643_v48 = vld [vmem:[#allocation2 + $0x8b4] sm:$0xf0]  ;;  %v5080_v38 = vld [vmem:[#allocation2 + $0x5f8] sm:$0xf0] }
 0x1fa   :  { %v5686_v49 = vld [vmem:[#allocation2 + $0xa98] sm:$0xf]  ;;  %v5431_v54 = vor.u32 %v6643_v48, %v5430_v47  ;;  %3464 = vmatpush.bf16.msrb.mxu1 %v5175_v51  ;;  %v4824_v47 = vld [vmem:[#allocation2 + $0x3f8] sm:$0xf0] }
 0x1fb   :  { %v6707_v50 = vld [vmem:[#allocation2 + $0xab4] sm:$0xf0] }
 0x1fc   :  { %v4886_v55 = vld [vmem:[#allocation2 + $0x458] sm:$0xf]  ;;  %v5687_v60 = vor.u32 %v6707_v50, %v5686_v49  ;;  %3478 = vmatpush.bf16.msrb.mxu2 %v5431_v54  ;;  %v6551_v50 = vld [vmem:[#allocation2 + $0x5dc] sm:$0xf] }
 0x1fd   :  { %v6507_v56 = vld [vmem:[#allocation2 + $0x474] sm:$0xf0] }
 0x1fe   :  { %v5142_v58 = vld [vmem:[#allocation2 + $0x658] sm:$0xf]  ;;  %v4887_v14 = vor.u32 %v6507_v56, %v4886_v55  ;;  %3492 = vmatpush.bf16.msrb.mxu3 %v5687_v60  ;;  %v4571_v55 = vor.u32 %v6423_v43, %v4568_v45  ;;  %v4827_v56 = vor.u32 %v6487_v46, %v4824_v47  ;;  %v4760_v43 = vld [vmem:[#allocation2 + $0x378] sm:$0xf0] }
 0x1ff   :  { %v6571_v7 = vld [vmem:[#allocation2 + $0x674] sm:$0xf0]  ;;  %v6535_v45 = vld [vmem:[#allocation2 + $0x55c] sm:$0xf] }
 0x200   :  { %v5398_v8 = vld [vmem:[#allocation2 + $0x858] sm:$0xf]  ;;  %v5143_v20 = vor.u32 %v6571_v7, %v5142_v58  ;;  %3451 = vmatpush.bf16.msrb.mxu0 %v4887_v14  ;;  %v6415_v7 = vld [vmem:[#allocation2 + $0x19c] sm:$0xf]  ;;  %v7218_v14 = vpop.f32.mrf.mxu2 }
 0x201   :  { %v6635_v11 = vld [vmem:[#allocation2 + $0x874] sm:$0xf0]  ;;  %v5016_v46 = vld [vmem:[#allocation2 + $0x578] sm:$0xf0] }
 0x202   :  { %v5654_v13 = vld [vmem:[#allocation2 + $0xa58] sm:$0xf]  ;;  %v5399_v22 = vor.u32 %v6635_v11, %v5398_v8  ;;  %3465 = vmatpush.bf16.msrb.mxu1 %v5143_v20  ;;  %v5083_v8 = vor.u32 %v6551_v50, %v5080_v38  ;;  %v4536_v11 = vld [vmem:[#allocation2 + $0x1b8] sm:$0xf0] }
 0x203   :  { %v6699_v57 = vld [vmem:[#allocation2 + $0xa74] sm:$0xf0]  ;;  %v5048_v20 = vld [vmem:[#allocation2 + $0x5b8] sm:$0xf0] }
 0x204   :  { %v4854_v16 = vld [vmem:[#allocation2 + $0x418] sm:$0xf]  ;;  %v5655_v32 = vor.u32 %v6699_v57, %v5654_v13  ;;  %3479 = vmatpush.bf16.msrb.mxu2 %v5399_v22  ;;  %v6479_v13 = vld [vmem:[#allocation2 + $0x39c] sm:$0xf] }
 0x205   :  { %v6499_v18 = vld [vmem:[#allocation2 + $0x434] sm:$0xf0]  ;;  %v4792_v57 = vld [vmem:[#allocation2 + $0x3b8] sm:$0xf0] }
 0x206   :  { %v5110_v24 = vld [vmem:[#allocation2 + $0x618] sm:$0xf]  ;;  %v4855_v44 = vor.u32 %v6499_v18, %v4854_v16  ;;  %3493 = vmatpush.bf16.msrb.mxu3 %v5655_v32  ;;  %v7220_v16 = vpop.f32.mrf.mxu0  ;;  %v6543_v18 = vld [vmem:[#allocation2 + $0x59c] sm:$0xf] }
 0x207   :  { %v6563_v27 = vld [vmem:[#allocation2 + $0x634] sm:$0xf0] }
 0x208   :  { %v5366_v29 = vld [vmem:[#allocation2 + $0x818] sm:$0xf]  ;;  %v5111_v48 = vor.u32 %v6563_v27, %v5110_v24  ;;  %3452 = vmatpush.bf16.msrb.mxu0 %v4855_v44  ;;  %v7222_v24 = vpop.f32.mrf.mxu1  ;;  %v4539_v27 = vor.u32 %v6415_v7, %v4536_v11  ;;  %v7225_v44 = vpop.f32.mrf.mxu3  ;;  %v6527_v7 = vld [vmem:[#allocation2 + $0x51c] sm:$0xf] }
 0x209   :  { %v6627_v34 = vld [vmem:[#allocation2 + $0x834] sm:$0xf0]  ;;  %7395 = vst [vmem:[#allocation19_spill] sm:$0xff] %v7225_v44 }
 0x20a   :  { %v5622_v36 = vld [vmem:[#allocation2 + $0xa18] sm:$0xf]  ;;  %v5367_v49 = vor.u32 %v6627_v34, %v5366_v29  ;;  %3466 = vmatpush.bf16.msrb.mxu1 %v5111_v48  ;;  %v4795_v29 = vor.u32 %v6479_v13, %v4792_v57  ;;  %v7232_v13 = vpop.f32.mrf.mxu2 }
 0x20b   :  { %v6691_v37 = vld [vmem:[#allocation2 + $0xa34] sm:$0xf0]  ;;  %3453 = vmatmul.bf16.vlgmr.msrb.gmra.mxu0 %v7092_v25 }
 0x20c   :  { %v6102_v40 = vld [vmem:[#allocation2 + $0xdd8] sm:$0xf]  ;;  %v5623_v51 = vor.u32 %v6691_v37, %v5622_v36  ;;  %3480 = vmatpush.bf16.msrb.mxu2 %v5367_v49  ;;  %v6407_v36 = vld [vmem:[#allocation2 + $0x15c] sm:$0xf]  ;;  %v5051_v37 = vor.u32 %v6543_v18, %v5048_v20 }
 0x20d   :  { %v6811_v42 = vld [vmem:[#allocation2 + $0xdf4] sm:$0xf0]  ;;  %3467 = vmatmul.bf16.vlgmr.msrb.gmra.mxu1 %v7099_v41 }
 0x20e   :  { %v6103_v54 = vor.u32 %v6811_v42, %v6102_v40  ;;  %v6070_v58 = vld [vmem:[#allocation2 + $0xd98] sm:$0xf]  ;;  %3494 = vmatpush.bf16.msrb.mxu3 %v5623_v51  ;;  %3515 = vmatpush.bf16.msra.mxu1 %v4571_v55  ;;  %v4504_v40 = vld [vmem:[#allocation2 + $0x178] sm:$0xf0] }
 0x20f   :  { %v6803_v60 = vld [vmem:[#allocation2 + $0xdb4] sm:$0xf0]  ;;  %v6471_v42 = vld [vmem:[#allocation2 + $0x35c] sm:$0xf]  ;;  %3481 = vmatmul.bf16.vlgmr.msrb.gmra.mxu2 %v7114_v59  ;;  %v4507_v48 = vor.u32 %v6407_v36, %v4504_v40 }
 0x210   :  { %3501 = vmatpush.bf16.msra.mxu0 %v6103_v54  ;;  %v6071_v22 = vor.u32 %v6803_v60, %v6070_v58  ;;  %3529 = vmatpush.bf16.msra.mxu2 %v4827_v56  ;;  %v6038_v32 = vld [vmem:[#allocation2 + $0xd58] sm:$0xf]  ;;  %v4763_v49 = vor.u32 %v6471_v42, %v4760_v43  ;;  %v6399_v51 = vld [vmem:[#allocation2 + $0x11c] sm:$0xf]  ;;  %v5019_v54 = vor.u32 %v6535_v45, %v5016_v46  ;;  %v7230_v60 = vpop.f32.mrf.mxu0  ;;  %v7234_v57 = vpop.f32.mrf.mxu1 }
 0x211   :  { %v6795_v34 = vld [vmem:[#allocation2 + $0xd74] sm:$0xf0]  ;;  %3495 = vmatmul.bf16.vlgmr.msrb.gmra.mxu3 %v7118_v0  ;;  %v4472_v55 = vld [vmem:[#allocation2 + $0x138] sm:$0xf0]  ;;  %7396 = vst [vmem:[#allocation20_spill] sm:$0xff] %v7230_v60  ;;  %v7236_v45 = vpop.f32.mrf.mxu3 }
 0x212   :  { %3543 = vmatpush.bf16.msra.mxu3 %v5083_v8  ;;  %v6039_v47 = vor.u32 %v6795_v34, %v6038_v32  ;;  %3516 = vmatpush.bf16.msra.mxu1 %v4539_v27  ;;  %v6006_v50 = vld [vmem:[#allocation2 + $0xd18] sm:$0xf]  ;;  %v6463_v56 = vld [vmem:[#allocation2 + $0x31c] sm:$0xf]  ;;  %v4475_v18 = vor.u32 %v6399_v51, %v4472_v55 }
 0x213   :  { %v6787_v38 = vld [vmem:[#allocation2 + $0xd34] sm:$0xf0]  ;;  %v4728_v58 = vld [vmem:[#allocation2 + $0x338] sm:$0xf0] }
 0x214   :  { %3502 = vmatpush.bf16.msra.mxu0 %v6071_v22  ;;  %3530 = vmatpush.bf16.msra.mxu2 %v4795_v29  ;;  %v4984_v8 = vld [vmem:[#allocation2 + $0x538] sm:$0xf0]  ;;  %v6007_v11 = vor.u32 %v6787_v38, %v6006_v50  ;;  %v4731_v20 = vor.u32 %v6463_v56, %v4728_v58  ;;  %v5974_v22 = vld [vmem:[#allocation2 + $0xcd8] sm:$0xf] }
 0x215   :  { %v6779_v27 = vld [vmem:[#allocation2 + $0xcf4] sm:$0xf0]  ;;  %v6391_v29 = vld [vmem:[#allocation2 + $0xdc] sm:$0xf]  ;;  %v4987_v32 = vor.u32 %v6527_v7, %v4984_v8 }
 0x216   :  { %3544 = vmatpush.bf16.msra.mxu3 %v5051_v37  ;;  %3517 = vmatpush.bf16.msra.mxu1 %v4507_v48  ;;  %v4440_v34 = vld [vmem:[#allocation2 + $0xf8] sm:$0xf0]  ;;  %v5975_v43 = vor.u32 %v6779_v27, %v5974_v22  ;;  %v5942_v48 = vld [vmem:[#allocation2 + $0xc98] sm:$0xf] }
 0x217   :  { %v6455_v36 = vld [vmem:[#allocation2 + $0x2dc] sm:$0xf]  ;;  %v4443_v46 = vor.u32 %v6391_v29, %v4440_v34  ;;  %v5910_v22 = vld [vmem:[#allocation2 + $0xc58] sm:$0xf] }
 0x218   :  { %3503 = vmatpush.bf16.msra.mxu0 %v6039_v47  ;;  %3531 = vmatpush.bf16.msra.mxu2 %v4763_v49  ;;  %v4696_v37 = vld [vmem:[#allocation2 + $0x2f8] sm:$0xf0]  ;;  %v6771_v49 = vld [vmem:[#allocation2 + $0xcb4] sm:$0xf0]  ;;  %v7238_v8 = vpop.f32.mrf.mxu0 }
 0x219   :  { %v6519_v40 = vld [vmem:[#allocation2 + $0x4dc] sm:$0xf]  ;;  %v4699_v47 = vor.u32 %v6455_v36, %v4696_v37  ;;  %v5943_v7 = vor.u32 %v6771_v49, %v5942_v48  ;;  %7397 = vst [vmem:[#allocation21_spill] sm:$0xff] %v7238_v8  ;;  %v6763_v27 = vld [vmem:[#allocation2 + $0xc74] sm:$0xf0] }
 0x21a   :  { %3545 = vmatpush.bf16.msra.mxu3 %v5019_v54  ;;  %v4952_v42 = vld [vmem:[#allocation2 + $0x4f8] sm:$0xf0]  ;;  %3518 = vmatpush.bf16.msra.mxu1 %v4475_v18  ;;  %v5911_v48 = vor.u32 %v6763_v27, %v5910_v22  ;;  %v5878_v49 = vld [vmem:[#allocation2 + $0xc18] sm:$0xf] }
 0x21b   :  { %v6383_v50 = vld [vmem:[#allocation2 + $0x9c] sm:$0xf]  ;;  %v4955_v38 = vor.u32 %v6519_v40, %v4952_v42  ;;  %v7242_v40 = vpop.f32.mrf.mxu1  ;;  %v5879_v22 = vor.u32 %v6755_v21, %v5878_v49 }
 0x21c   :  { %3504 = vmatpush.bf16.msra.mxu0 %v6007_v11  ;;  %3532 = vmatpush.bf16.msra.mxu2 %v4731_v20  ;;  %v4408_v51 = vld [vmem:[#allocation2 + $0xb8] sm:$0xf0]  ;;  %v7240_v11 = vpop.f32.mrf.mxu2 }
 0x21d   :  { %v6447_v54 = vld [vmem:[#allocation2 + $0x29c] sm:$0xf]  ;;  %v4411_v18 = vor.u32 %v6383_v50, %v4408_v51 }
 0x21e   :  { %3546 = vmatpush.bf16.msra.mxu3 %v4987_v32  ;;  %v4664_v55 = vld [vmem:[#allocation2 + $0x2b8] sm:$0xf0]  ;;  %3519 = vmatpush.bf16.msra.mxu1 %v4443_v46  ;;  %v7244_v46 = vpop.f32.mrf.mxu3 }
 0x21f   :  { %v6511_v56 = vld [vmem:[#allocation2 + $0x49c] sm:$0xf]  ;;  %v4667_v20 = vor.u32 %v6447_v54, %v4664_v55 }
 0x220   :  { %v4920_v58 = vld [vmem:[#allocation2 + $0x4b8] sm:$0xf0]  ;;  %3505 = vmatpush.bf16.msra.mxu0 %v5975_v43  ;;  %3533 = vmatpush.bf16.msra.mxu2 %v4699_v47 }
 0x221   :  { %v6375_v29 = vld [vmem:[#allocation2 + $0x5c] sm:$0xf]  ;;  %v4923_v32 = vor.u32 %v6511_v56, %v4920_v58 }
 0x222   :  { %3547 = vmatpush.bf16.msra.mxu3 %v4955_v38  ;;  %v4376_v34 = vld [vmem:[#allocation2 + $0x78] sm:$0xf0]  ;;  %3520 = vmatpush.bf16.msra.mxu1 %v4411_v18  ;;  %v7246_v18 = vpop.f32.mrf.mxu0 }
 0x223   :  { %v6439_v36 = vld [vmem:[#allocation2 + $0x25c] sm:$0xf]  ;;  %v4379_v47 = vor.u32 %v6375_v29, %v4376_v34 }
 0x224   :  { %v4632_v37 = vld [vmem:[#allocation2 + $0x278] sm:$0xf0]  ;;  %3506 = vmatpush.bf16.msra.mxu0 %v5943_v7  ;;  %3534 = vmatpush.bf16.msra.mxu2 %v4667_v20 }
 0x225   :  { %v6503_v42 = vld [vmem:[#allocation2 + $0x45c] sm:$0xf]  ;;  %v4635_v50 = vor.u32 %v6439_v36, %v4632_v37  ;;  %v5339_v37 = vor.u32 %v6615_v35, %v5336_v17 }
 0x226   :  { %v4888_v43 = vld [vmem:[#allocation2 + $0x478] sm:$0xf0]  ;;  %3548 = vmatpush.bf16.msra.mxu3 %v4923_v32  ;;  %3521 = vmatpush.bf16.msra.mxu1 %v4379_v47 }
 0x227   :  { %v6367_v51 = vld [vmem:[#allocation2 + $0x1c] sm:$0xf]  ;;  %v4891_v55 = vor.u32 %v6503_v42, %v4888_v43  ;;  %v7248_v42 = vpop.f32.mrf.mxu2 }
 0x228   :  { %v4344_v38 = vld [vmem:[#allocation2 + $0x38] sm:$0xf0]  ;;  %3507 = vmatpush.bf16.msra.mxu0 %v5911_v48  ;;  %3535 = vmatpush.bf16.msra.mxu2 %v4635_v50  ;;  %v7250_v50 = vpop.f32.mrf.mxu1 }
 0x229   :  { %v6431_v54 = vld [vmem:[#allocation2 + $0x21c] sm:$0xf]  ;;  %v4347_v20 = vor.u32 %v6367_v51, %v4344_v38 }
 0x22a   :  { %v4600_v56 = vld [vmem:[#allocation2 + $0x238] sm:$0xf0]  ;;  %3549 = vmatpush.bf16.msra.mxu3 %v4891_v55 }
 0x22b   :  { %v6495_v58 = vld [vmem:[#allocation2 + $0x41c] sm:$0xf]  ;;  %v4603_v29 = vor.u32 %v6431_v54, %v4600_v56  ;;  %3522 = vmatpush.bf16.msra.mxu1 %v4347_v20 }
 0x22c   :  { %v6679_v7 = vld [vmem:[#allocation2 + $0x9dc] sm:$0xf]  ;;  %v4859_v36 = vor.u32 %v6495_v58, %v4856_v4  ;;  %3508 = vmatpush.bf16.msra.mxu0 %v5879_v22  ;;  %v7252_v4 = vpop.f32.mrf.mxu3 }
 0x22d   :  { %v5592_v27 = vld [vmem:[#allocation2 + $0x9f8] sm:$0xf0]  ;;  %3536 = vmatpush.bf16.msra.mxu2 %v4603_v29 }
 0x22e   :  { %v5848_v60 = vld [vmem:[#allocation2 + $0xbf8] sm:$0xf0]  ;;  %v5595_v43 = vor.u32 %v6679_v7, %v5592_v27  ;;  %3550 = vmatpush.bf16.msra.mxu3 %v4859_v36  ;;  %3523 = vmatmul.bf16.vlgmr.msra.gmra.mxu1 %v7090_v19 }
 0x22f   :  { %v6807_v34 = vld [vmem:[#allocation2 + $0xddc] sm:$0xf]  ;;  %v5851_v8 = vor.u32 %v6743_v62, %v5848_v60  ;;  %3509 = vmatmul.bf16.vlgmr.msra.gmra.mxu0 %v7116_v63 }
 0x230   :  { %v6104_v32 = vld [vmem:[#allocation2 + $0xdf8] sm:$0xf0]  ;;  %3557 = vmatpush.bf16.msrb.mxu0 %v5339_v37  ;;  %3571 = vmatpush.bf16.msrb.mxu1 %v5595_v43 }
 0x231   :  { %v6607_v48 = vld [vmem:[#allocation2 + $0x79c] sm:$0xf]  ;;  %v6107_v44 = vor.u32 %v6807_v34, %v6104_v32  ;;  %3585 = vmatpush.bf16.msrb.mxu2 %v5851_v8  ;;  %3551 = vmatmul.bf16.vlgmr.msra.gmra.mxu3 %v7092_v25 }
 0x232   :  { %v5304_v21 = vld [vmem:[#allocation2 + $0x7b8] sm:$0xf0]  ;;  %3537 = vmatmul.bf16.vlgmr.msra.gmra.mxu2 %v7095_v31 }
 0x233   :  { %v6671_v49 = vld [vmem:[#allocation2 + $0x99c] sm:$0xf]  ;;  %v5307_v35 = vor.u32 %v6607_v48, %v5304_v21  ;;  %3599 = vmatpush.bf16.msrb.mxu3 %v6107_v44  ;;  %v7260_v48 = vpop.f32.mrf.mxu2 }
 0x234   :  { %v5816_v47 = vld [vmem:[#allocation2 + $0xbb8] sm:$0xf0]  ;;  %v5563_v62 = vor.u32 %v6671_v49, %v5560_v9  ;;  %v7262_v49 = vpop.f32.mrf.mxu1 }
 0x235   :  { %v6799_v51 = vld [vmem:[#allocation2 + $0xd9c] sm:$0xf]  ;;  %v5819_v17 = vor.u32 %v6735_v30, %v5816_v47  ;;  %3558 = vmatpush.bf16.msrb.mxu0 %v5307_v35  ;;  %v7258_v30 = vpop.f32.mrf.mxu0 }
 0x236   :  { %v6072_v38 = vld [vmem:[#allocation2 + $0xdb8] sm:$0xf0]  ;;  %3572 = vmatpush.bf16.msrb.mxu1 %v5563_v62 }
 0x237   :  { %v6599_v60 = vld [vmem:[#allocation2 + $0x75c] sm:$0xf]  ;;  %v6075_v56 = vor.u32 %v6799_v51, %v6072_v38  ;;  %3586 = vmatpush.bf16.msrb.mxu2 %v5819_v17 }
 0x238   :  { %v5272_v54 = vld [vmem:[#allocation2 + $0x778] sm:$0xf0] }
 0x239   :  { %v6663_v55 = vld [vmem:[#allocation2 + $0x95c] sm:$0xf]  ;;  %v5275_v8 = vor.u32 %v6599_v60, %v5272_v54  ;;  %3600 = vmatpush.bf16.msrb.mxu3 %v6075_v56  ;;  %v7264_v56 = vpop.f32.mrf.mxu3 }
 0x23a   :  { %v5528_v58 = vld [vmem:[#allocation2 + $0x978] sm:$0xf0] }
 0x23b   :  { %v6727_v7 = vld [vmem:[#allocation2 + $0xb5c] sm:$0xf]  ;;  %v5531_v9 = vor.u32 %v6663_v55, %v5528_v58  ;;  %3559 = vmatpush.bf16.msrb.mxu0 %v5275_v8 }
 0x23c   :  { %v5784_v22 = vld [vmem:[#allocation2 + $0xb78] sm:$0xf0] }
 0x23d   :  { %v6791_v27 = vld [vmem:[#allocation2 + $0xd5c] sm:$0xf]  ;;  %v5787_v44 = vor.u32 %v6727_v7, %v5784_v22  ;;  %3573 = vmatpush.bf16.msrb.mxu1 %v5531_v9 }
 0x23e   :  { %v6040_v20 = vld [vmem:[#allocation2 + $0xd78] sm:$0xf0] }
 0x23f   :  { %v6591_v29 = vld [vmem:[#allocation2 + $0x71c] sm:$0xf]  ;;  %v6043_v36 = vor.u32 %v6791_v27, %v6040_v20  ;;  %3587 = vmatpush.bf16.msrb.mxu2 %v5787_v44  ;;  %v7266_v27 = vpop.f32.mrf.mxu0 }
 0x240   :  { %v5240_v34 = vld [vmem:[#allocation2 + $0x738] sm:$0xf0]  ;;  %7398 = vst [vmem:[#allocation22_spill] sm:$0xff] %v7266_v27 }
 0x241   :  { %v6655_v32 = vld [vmem:[#allocation2 + $0x91c] sm:$0xf]  ;;  %v5243_v19 = vor.u32 %v6591_v29, %v5240_v34  ;;  %3601 = vmatpush.bf16.msrb.mxu3 %v6043_v36 }
 0x242   :  { %v5496_v31 = vld [vmem:[#allocation2 + $0x938] sm:$0xf0] }
 0x243   :  { %v6719_v37 = vld [vmem:[#allocation2 + $0xb1c] sm:$0xf]  ;;  %v5499_v47 = vor.u32 %v6655_v32, %v5496_v31  ;;  %3560 = vmatpush.bf16.msrb.mxu0 %v5243_v19  ;;  %v7270_v19 = vpop.f32.mrf.mxu1 }
 0x244   :  { %v5752_v43 = vld [vmem:[#allocation2 + $0xb38] sm:$0xf0]  ;;  %7399 = vst [vmem:[#allocation23_spill] sm:$0xff] %v7270_v19 }
 0x245   :  { %v6783_v25 = vld [vmem:[#allocation2 + $0xd1c] sm:$0xf]  ;;  %v5755_v51 = vor.u32 %v6719_v37, %v5752_v43  ;;  %3574 = vmatpush.bf16.msrb.mxu1 %v5499_v47 }
 0x246   :  { %v6008_v21 = vld [vmem:[#allocation2 + $0xd38] sm:$0xf0] }
 0x247   :  { %v6583_v38 = vld [vmem:[#allocation2 + $0x6dc] sm:$0xf]  ;;  %v6011_v17 = vor.u32 %v6783_v25, %v6008_v21  ;;  %3588 = vmatpush.bf16.msrb.mxu2 %v5755_v51  ;;  %v7268_v21 = vpop.f32.mrf.mxu2 }
 0x248   :  { %v5208_v35 = vld [vmem:[#allocation2 + $0x6f8] sm:$0xf0] }
 0x249   :  { %v6647_v62 = vld [vmem:[#allocation2 + $0x8dc] sm:$0xf]  ;;  %v5211_v22 = vor.u32 %v6583_v38, %v5208_v35  ;;  %3602 = vmatpush.bf16.msrb.mxu3 %v6011_v17 }
 0x24a   :  { %v5464_v60 = vld [vmem:[#allocation2 + $0x8f8] sm:$0xf0] }
 0x24b   :  { %v6711_v54 = vld [vmem:[#allocation2 + $0xadc] sm:$0xf]  ;;  %v5467_v20 = vor.u32 %v6647_v62, %v5464_v60  ;;  %3561 = vmatpush.bf16.msrb.mxu0 %v5211_v22 }
 0x24c   :  { %v5720_v55 = vld [vmem:[#allocation2 + $0xaf8] sm:$0xf0] }
 0x24d   :  { %v6775_v58 = vld [vmem:[#allocation2 + $0xcdc] sm:$0xf]  ;;  %v5723_v8 = vor.u32 %v6711_v54, %v5720_v55  ;;  %3575 = vmatpush.bf16.msrb.mxu1 %v5467_v20 }
 0x24e   :  { %v5976_v7 = vld [vmem:[#allocation2 + $0xcf8] sm:$0xf0] }
 0x24f   :  { %v6575_v9 = vld [vmem:[#allocation2 + $0x69c] sm:$0xf]  ;;  %v5979_v34 = vor.u32 %v6775_v58, %v5976_v7  ;;  %3589 = vmatpush.bf16.msrb.mxu2 %v5723_v8 }
 0x250   :  { %v5176_v44 = vld [vmem:[#allocation2 + $0x6b8] sm:$0xf0] }
 0x251   :  { %v6639_v29 = vld [vmem:[#allocation2 + $0x89c] sm:$0xf]  ;;  %v5179_v25 = vor.u32 %v6575_v9, %v5176_v44  ;;  %3603 = vmatpush.bf16.msrb.mxu3 %v5979_v34  ;;  %v7272_v9 = vpop.f32.mrf.mxu3 }
 0x252   :  { %v5432_v32 = vld [vmem:[#allocation2 + $0x8b8] sm:$0xf0] }
 0x253   :  { %v6703_v36 = vld [vmem:[#allocation2 + $0xa9c] sm:$0xf]  ;;  %v5435_v47 = vor.u32 %v6639_v29, %v5432_v32  ;;  %3562 = vmatpush.bf16.msrb.mxu0 %v5179_v25 }
 0x254   :  { %v5688_v31 = vld [vmem:[#allocation2 + $0xab8] sm:$0xf0] }
 0x255   :  { %v6767_v37 = vld [vmem:[#allocation2 + $0xc9c] sm:$0xf]  ;;  %v5691_v51 = vor.u32 %v6703_v36, %v5688_v31  ;;  %3576 = vmatpush.bf16.msrb.mxu1 %v5435_v47 }
 0x256   :  { %v5944_v43 = vld [vmem:[#allocation2 + $0xcb8] sm:$0xf0] }
 0x257   :  { %v6567_v38 = vld [vmem:[#allocation2 + $0x65c] sm:$0xf]  ;;  %v5947_v17 = vor.u32 %v6767_v37, %v5944_v43  ;;  %3590 = vmatpush.bf16.msrb.mxu2 %v5691_v51  ;;  %v7274_v43 = vpop.f32.mrf.mxu0 }
 0x258   :  { %v5144_v35 = vld [vmem:[#allocation2 + $0x678] sm:$0xf0] }
 0x259   :  { %v6631_v62 = vld [vmem:[#allocation2 + $0x85c] sm:$0xf]  ;;  %v5147_v22 = vor.u32 %v6567_v38, %v5144_v35  ;;  %3604 = vmatpush.bf16.msrb.mxu3 %v5947_v17  ;;  %v7276_v38 = vpop.f32.mrf.mxu2  ;;  %v7278_v17 = vpop.f32.mrf.mxu1 }
 0x25a   :  { %v5400_v60 = vld [vmem:[#allocation2 + $0x878] sm:$0xf0] }
 0x25b   :  { %v6695_v54 = vld [vmem:[#allocation2 + $0xa5c] sm:$0xf]  ;;  %v5403_v20 = vor.u32 %v6631_v62, %v5400_v60  ;;  %3563 = vmatpush.bf16.msrb.mxu0 %v5147_v22  ;;  %v6819_v62 = vld [vmem:[#allocation7 + $0x38] sm:$0xff] }
 0x25c   :  { %v5656_v55 = vld [vmem:[#allocation2 + $0xa78] sm:$0xf0]  ;;  %v6827_v60 = vld [vmem:[#allocation7 + $0x78] sm:$0xff] }
 0x25d   :  { %v6759_v58 = vld [vmem:[#allocation2 + $0xc5c] sm:$0xf]  ;;  %v5659_v8 = vor.u32 %v6695_v54, %v5656_v55  ;;  %3577 = vmatpush.bf16.msrb.mxu1 %v5403_v20  ;;  %v6835_v54 = vld [vmem:[#allocation7 + $0xb8] sm:$0xff] }
 0x25e   :  { %v5912_v7 = vld [vmem:[#allocation2 + $0xc78] sm:$0xf0]  ;;  %v6843_v55 = vld [vmem:[#allocation7 + $0xf8] sm:$0xff] }
 0x25f   :  { %v6559_v44 = vld [vmem:[#allocation2 + $0x61c] sm:$0xf]  ;;  %v5915_v36 = vor.u32 %v6759_v58, %v5912_v7  ;;  %3591 = vmatpush.bf16.msrb.mxu2 %v5659_v8  ;;  %v7280_v58 = vpop.f32.mrf.mxu3  ;;  %v7282_v22 = vld [vmem:[#allocation5] sm:$0xff] }
 0x260   :  { %v5112_v29 = vld [vmem:[#allocation2 + $0x638] sm:$0xf0]  ;;  %v576_v20 = vperm.slane %v7282_v22, 3 }
 0x261   :  { %v6623_v32 = vld [vmem:[#allocation2 + $0x81c] sm:$0xf]  ;;  %v5115_v25 = vor.u32 %v6559_v44, %v5112_v29  ;;  %3605 = vmatpush.bf16.msrb.mxu3 %v5915_v36  ;;  %v7400_v44 = vperm.slane %v7136_v26, 0  ;;  %v6817_v36 = vld [vmem:[#allocation7 + $0x28] sm:$0xff] }
 0x262   :  { %v5368_v34 = vld [vmem:[#allocation2 + $0x838] sm:$0xf0] }
 0x263   :  { %v6687_v31 = vld [vmem:[#allocation2 + $0xa1c] sm:$0xf]  ;;  %v5371_v47 = vor.u32 %v6623_v32, %v5368_v34  ;;  %3564 = vmatpush.bf16.msrb.mxu0 %v5115_v25  ;;  %v2841_v29 = vadd.f32 %v7143_v52, %v7400_v44  ;;  %v7289_v32 = vpop.f32.mrf.mxu0  ;;  %v3133_v34 = vadd.f32 %v7234_v57, %v576_v20  ;;  %v6833_v52 = vld [vmem:[#allocation7 + $0xa8] sm:$0xff]  ;;  %v7401_v25 = vperm.slane %v7136_v26, 1 }
 0x264   :  { %v5624_v37 = vld [vmem:[#allocation2 + $0xa38] sm:$0xf0] }
 0x265   :  { %v6751_v19 = vld [vmem:[#allocation2 + $0xc1c] sm:$0xf]  ;;  %v5627_v51 = vor.u32 %v6687_v31, %v5624_v37  ;;  %3578 = vmatpush.bf16.msrb.mxu1 %v5371_v47  ;;  %v3135_v31 = vadd.f32 %v7242_v40, %v576_v20  ;;  %v6825_v37 = vld [vmem:[#allocation7 + $0x68] sm:$0xff]  ;;  %v2855_v57 = vadd.f32 %v7145_v1, %v2841_v29  ;;  %v6816_v40 = vld [vmem:[#allocation7 + $0x20] sm:$0xff] }
 0x266   :  { %v5880_v27 = vld [vmem:[#allocation2 + $0xc38] sm:$0xf0]  ;;  %3565 = vmatmul.bf16.vlgmr.msrb.gmra.mxu0 %v7099_v41  ;;  %v7296_v41 = vpop.f32.mrf.mxu2  ;;  %v6841_v47 = vld [vmem:[#allocation7 + $0xe8] sm:$0xff]  ;;  %v6840_v1 = vld [vmem:[#allocation7 + $0xe0] sm:$0xff] }
 0x267   :  { %v5883_v35 = vor.u32 %v6751_v19, %v5880_v27  ;;  %3592 = vmatpush.bf16.msrb.mxu2 %v5627_v51  ;;  %4137 = vmatpush.bf16.msra.mxu0 %v6819_v62  ;;  %v6818_v7 = vld [vmem:[#allocation7 + $0x30] sm:$0xff]  ;;  %v7305_v51 = vpop.f32.mrf.mxu1  ;;  %v3149_v62 = vadd.f32 %v7248_v42, %v3135_v31 }
 0x268   :  { %v6826_v27 = vld [vmem:[#allocation7 + $0x70] sm:$0xff]  ;;  %3579 = vmatmul.bf16.vlgmr.msrb.gmra.mxu1 %v7114_v59  ;;  %v2939_v59 = vadd.f32 %v7171_v33, %v7401_v25  ;;  %v6824_v33 = vld [vmem:[#allocation7 + $0x60] sm:$0xff] }
 0x269   :  { %3606 = vmatpush.bf16.msrb.mxu3 %v5883_v35  ;;  %4151 = vmatpush.bf16.msra.mxu1 %v6827_v60  ;;  %v6834_v19 = vld [vmem:[#allocation7 + $0xb0] sm:$0xff]  ;;  %v3147_v35 = vadd.f32 %v7240_v11, %v3133_v34  ;;  %v7309_v60 = vpop.f32.mrf.mxu3  ;;  %v3163_v42 = vadd.f32 %v7252_v4, %v3149_v62 }
 0x26a   :  { %v6842_v8 = vld [vmem:[#allocation7 + $0xf0] sm:$0xff]  ;;  %3593 = vmatmul.bf16.vlgmr.msrb.gmra.mxu2 %v7118_v0  ;;  %v7402_v0 = vperm.slane %v7136_v26, 2  ;;  %v6832_v26 = vld [vmem:[#allocation7 + $0xa0] sm:$0xff] }
 0x26b   :  { %4165 = vmatpush.bf16.msra.mxu2 %v6835_v54  ;;  %4138 = vmatpush.bf16.msra.mxu0 %v6818_v7  ;;  %v6815_v7 = vld [vmem:[#allocation7 + $0x18] sm:$0xff]  ;;  %v3161_v11 = vadd.f32 %v7244_v46, %v3147_v35  ;;  %v7316_v20 = vpop.f32.mrf.mxu0  ;;  %v6814_v4 = vld [vmem:[#allocation7 + $0x10] sm:$0xff] }
 0x26c   :  { %3607 = vmatmul.bf16.vlgmr.msrb.gmra.mxu3 %v7116_v63  ;;  %v3037_v63 = vadd.f32 %v7214_v12, %v7402_v0  ;;  %v2953_v12 = vadd.f32 %v7175_v23, %v2939_v59 }
 0x26d   :  { %4179 = vmatpush.bf16.msra.mxu3 %v6843_v55  ;;  %4152 = vmatpush.bf16.msra.mxu1 %v6826_v27  ;;  %v2869_v55 = vadd.f32 %v7150_v15, %v2855_v57  ;;  %v6823_v27 = vld [vmem:[#allocation7 + $0x58] sm:$0xff]  ;;  %v3175_v29 = vadd.f32 %v7246_v18, %v3161_v11 }
 0x26e   :  { %v3051_v54 = vadd.f32 %v7216_v39, %v3037_v63  ;;  %v2967_v23 = vadd.f32 %v7177_v28, %v2953_v12  ;;  %v7321_v44 = vpop.f32.mrf.mxu2  ;;  %v6822_v28 = vld [vmem:[#allocation7 + $0x50] sm:$0xff]  ;;  %v6821_v63 = vld [vmem:[#allocation7 + $0x48] sm:$0xff]  ;;  %v6859_v11 = vld [vmem:[#allocation7 + $0x178] sm:$0xff] }
 0x26f   :  { %4166 = vmatpush.bf16.msra.mxu2 %v6834_v19  ;;  %4139 = vmatpush.bf16.msra.mxu0 %v6817_v36  ;;  %v6831_v19 = vld [vmem:[#allocation7 + $0x98] sm:$0xff]  ;;  %v2883_v15 = vadd.f32 %v7156_v10, %v2869_v55  ;;  %v3177_v36 = vadd.f32 %v7258_v30, %v3163_v42  ;;  %v7326_v34 = vpop.f32.mrf.mxu1  ;;  %v6813_v30 = vld [vmem:[#allocation7 + $0x8] sm:$0xff]  ;;  %v3189_v25 = vadd.f32 %v7250_v50, %v3175_v29  ;;  %v6850_v29 = vld [vmem:[#allocation7 + $0x130] sm:$0xff] }
 0x270   :  { %v3065_v39 = vadd.f32 %v7220_v16, %v3051_v54  ;;  %v2981_v46 = vadd.f32 %v7183_v53, %v2967_v23  ;;  %v6830_v16 = vld [vmem:[#allocation7 + $0x90] sm:$0xff]  ;;  %v7406_v54 = vld [vmem:[#allocation21_spill] sm:$0xff]  ;;  %v6851_v55 = vld [vmem:[#allocation7 + $0x138] sm:$0xff] }
 0x271   :  { %4180 = vmatpush.bf16.msra.mxu3 %v6842_v8  ;;  %4153 = vmatpush.bf16.msra.mxu1 %v6825_v37  ;;  %v6839_v8 = vld [vmem:[#allocation7 + $0xd8] sm:$0xff]  ;;  %v7328_v31 = vpop.f32.mrf.mxu3  ;;  %v6838_v37 = vld [vmem:[#allocation7 + $0xd0] sm:$0xff]  ;;  %v2897_v53 = vadd.f32 %v7158_v61, %v2883_v15  ;;  %v3191_v59 = vadd.f32 %v7262_v49, %v3177_v36  ;;  %v3091_v61 = vadd.f32 %v7218_v14, %v7204_v5  ;;  %v6812_v49 = vld [vmem:[#allocation7] sm:$0xff] }
 0x272   :  { %v3079_v10 = vadd.f32 %v7222_v24, %v3065_v39  ;;  %v6829_v24 = vld [vmem:[#allocation7 + $0x88] sm:$0xff]  ;;  %v3203_v62 = vadd.f32 %v7260_v48, %v3189_v25  ;;  %v6820_v5 = vld [vmem:[#allocation7 + $0x40] sm:$0xff]  ;;  %v7405_v12 = vld [vmem:[#allocation19_spill] sm:$0xff] }
 0x273   :  { %4167 = vmatpush.bf16.msra.mxu2 %v6833_v52  ;;  %4140 = vmatpush.bf16.msra.mxu0 %v6816_v40  ;;  %v2995_v52 = vadd.f32 %v7185_v3, %v2981_v46  ;;  %v7336_v0 = vpop.f32.mrf.mxu0  ;;  %v6837_v3 = vld [vmem:[#allocation7 + $0xc8] sm:$0xff]  ;;  %v3205_v57 = vadd.f32 %v7268_v21, %v3191_v59  ;;  %v7403_v40 = vld [vmem:[#allocation16_spill] sm:$0xff]  ;;  %v3105_v21 = vadd.f32 %v7405_v12, %v3091_v61 }
 0x274   :  { %v3093_v18 = vadd.f32 %v7232_v13, %v3079_v10  ;;  %v2911_v13 = vadd.f32 %v7161_v6, %v2897_v53  ;;  %v6828_v14 = vld [vmem:[#allocation7 + $0x80] sm:$0xff]  ;;  %v3217_v39 = vadd.f32 %v7264_v56, %v3203_v62  ;;  %v7410_v56 = vld [vmem:[#allocation22_spill] sm:$0xff] }
 0x275   :  { %4181 = vmatpush.bf16.msra.mxu3 %v6841_v47  ;;  %4154 = vmatpush.bf16.msra.mxu1 %v6824_v33  ;;  %v3009_v47 = vadd.f32 %v7195_v2, %v2995_v52  ;;  %v7407_v42 = vld [vmem:[#allocation20_spill] sm:$0xff]  ;;  %v7409_v15 = vld [vmem:[#allocation17_spill] sm:$0xff] }
 0x276   :  { %v3107_v50 = vadd.f32 %v7236_v45, %v3093_v18  ;;  %v2925_v35 = vadd.f32 %v7403_v40, %v2911_v13  ;;  %v7346_v33 = vpop.f32.mrf.mxu2  ;;  %v6849_v52 = vld [vmem:[#allocation7 + $0x128] sm:$0xff] }
 0x277   :  { %4168 = vmatpush.bf16.msra.mxu2 %v6832_v26  ;;  %4141 = vmatpush.bf16.msra.mxu0 %v6815_v7  ;;  %v7348_v2 = vpop.f32.mrf.mxu1  ;;  %v7404_v26 = vld [vmem:[#allocation18_spill] sm:$0xff]  ;;  %v3219_v7 = vadd.f32 %v7272_v9, %v3205_v57 }
 0x278   :  { %v3023_v6 = vadd.f32 %v7404_v26, %v3009_v47  ;;  %v3121_v45 = vadd.f32 %v7406_v54, %v3107_v50 }
 0x279   :  { %4182 = vmatpush.bf16.msra.mxu3 %v6840_v1  ;;  %4155 = vmatpush.bf16.msra.mxu1 %v6823_v27  ;;  %v6836_v1 = vld [vmem:[#allocation7 + $0xc0] sm:$0xff]  ;;  %v3330_v48 = vpop.f32.mrf.mxu3  ;;  %v3119_v27 = vadd.f32 %v7407_v42, %v3105_v21  ;;  %v3616_v9 = vpack.c.bf16 %v3219_v7, %v3217_v39  ;;  %v6867_v21 = vld [vmem:[#allocation7 + $0x1b8] sm:$0xff]  ;;  %v6845_v7 = vld [vmem:[#allocation7 + $0x108] sm:$0xff] }
 0x27a   :  { %v3614_v46 = vpack.c.bf16 %v3023_v6, %v7409_v15 }
 0x27b   :  { %4169 = vmatpush.bf16.msra.mxu2 %v6831_v19  ;;  %4142 = vmatpush.bf16.msra.mxu0 %v6814_v4  ;;  %v7408_v19 = vld [vmem:[#allocation15_spill] sm:$0xff]  ;;  %v3615_v4 = vpack.c.bf16 %v3121_v45, %v3119_v27  ;;  %v3344_v36 = vpop.f32.mrf.mxu0 }
 0x27c   :  { %v3613_v23 = vpack.c.bf16 %v2925_v35, %v7408_v19 }
 0x27d   :  { %4183 = vmatpush.bf16.msra.mxu3 %v6839_v8  ;;  %4156 = vmatpush.bf16.msra.mxu1 %v6822_v28  ;;  %v577_v8 = vperm.slane %v7282_v22, 4  ;;  %v6858_v28 = vld [vmem:[#allocation7 + $0x170] sm:$0xff] }
 0x27e   :  { %v3370_v53 = vpop.f32.mrf.mxu2 }
 0x27f   :  { %4170 = vmatpush.bf16.msra.mxu2 %v6830_v16  ;;  %4143 = vmatpush.bf16.msra.mxu0 %v6813_v30  ;;  %v578_v16 = vperm.slane %v7282_v22, 5  ;;  %v3231_v10 = vadd.f32 %v7410_v56, %v577_v8  ;;  %v3358_v18 = vpop.f32.mrf.mxu1  ;;  %v6857_v30 = vld [vmem:[#allocation7 + $0x168] sm:$0xff]  ;;  %v6860_v56 = vld [vmem:[#allocation7 + $0x180] sm:$0xff] }
 0x281   :  { %4184 = vmatpush.bf16.msra.mxu3 %v6838_v37  ;;  %4157 = vmatpush.bf16.msra.mxu1 %v6821_v63  ;;  %v3233_v37 = vadd.f32 %v7274_v43, %v577_v8  ;;  %v3329_v25 = vadd.f32 %v7328_v31, %v578_v16  ;;  %v3331_v59 = vadd.f32 %v3330_v48, %v578_v16  ;;  %v7411_v63 = vld [vmem:[#allocation23_spill] sm:$0xff]  ;;  %v3384_v61 = vpop.f32.mrf.mxu3  ;;  %v6856_v43 = vld [vmem:[#allocation7 + $0x160] sm:$0xff] }
 0x282   :  { %v6847_v31 = vld [vmem:[#allocation7 + $0x118] sm:$0xff]  ;;  %v6852_v8 = vld [vmem:[#allocation7 + $0x140] sm:$0xff] }
 0x283   :  { %4171 = vmatpush.bf16.msra.mxu2 %v6829_v24  ;;  %4144 = vmatpush.bf16.msra.mxu0 %v6812_v49  ;;  %v3245_v24 = vadd.f32 %v7411_v63, %v3231_v10  ;;  %v3247_v47 = vadd.f32 %v7278_v17, %v3233_v37  ;;  %v3398_v13 = vpop.f32.mrf.mxu0  ;;  %v3343_v57 = vadd.f32 %v7336_v0, %v3329_v25  ;;  %v6846_v0 = vld [vmem:[#allocation7 + $0x110] sm:$0xff]  ;;  %v579_v37 = vperm.slane %v7282_v22, 6 }
 0x284   :  { %v3345_v50 = vadd.f32 %v3344_v36, %v3331_v59  ;;  %v6862_v36 = vld [vmem:[#allocation7 + $0x190] sm:$0xff] }
 0x285   :  { %4185 = vmatpush.bf16.msra.mxu3 %v6837_v3  ;;  %4158 = vmatpush.bf16.msra.mxu1 %v6820_v5  ;;  %v6848_v3 = vld [vmem:[#allocation7 + $0x120] sm:$0xff]  ;;  %v3259_v49 = vadd.f32 %v7276_v38, %v3245_v24  ;;  %v3261_v40 = vadd.f32 %v7296_v41, %v3247_v47  ;;  %v6855_v5 = vld [vmem:[#allocation7 + $0x158] sm:$0xff]  ;;  %v3357_v17 = vadd.f32 %v7348_v2, %v3343_v57  ;;  %v6854_v41 = vld [vmem:[#allocation7 + $0x150] sm:$0xff] }
 0x286   :  { %4145 = vmatmul.bf16.vlgmr.msra.gmra.mxu0 %v3613_v23  ;;  %v3372_v35 = vpop.f32.mrf.mxu2  ;;  %v6865_v23 = vld [vmem:[#allocation7 + $0x1a8] sm:$0xff] }
 0x287   :  { %4172 = vmatpush.bf16.msra.mxu2 %v6828_v14  ;;  %4193 = vmatpush.bf16.msrb.mxu0 %v6851_v55  ;;  %v3412_v62 = vpop.f32.mrf.mxu1  ;;  %v3359_v14 = vadd.f32 %v3358_v18, %v3345_v50  ;;  %v3273_v26 = vadd.f32 %v7280_v58, %v3259_v49  ;;  %v3275_v6 = vadd.f32 %v7309_v60, %v3261_v40  ;;  %v6853_v58 = vld [vmem:[#allocation7 + $0x148] sm:$0xff]  ;;  %v6866_v60 = vld [vmem:[#allocation7 + $0x1b0] sm:$0xff] }
 0x288   :  { %4159 = vmatmul.bf16.vlgmr.msra.gmra.mxu1 %v3614_v46  ;;  %v3371_v54 = vadd.f32 %v3370_v53, %v3357_v17  ;;  %v6874_v18 = vld [vmem:[#allocation7 + $0x1f0] sm:$0xff]  ;;  %v6873_v24 = vld [vmem:[#allocation7 + $0x1e8] sm:$0xff] }
 0x289   :  { %4186 = vmatpush.bf16.msra.mxu3 %v6836_v1  ;;  %4207 = vmatpush.bf16.msrb.mxu1 %v6859_v11  ;;  %v3373_v12 = vadd.f32 %v3372_v35, %v3359_v14  ;;  %v3386_v38 = vpop.f32.mrf.mxu3  ;;  %v3287_v45 = vadd.f32 %v7289_v32, %v3273_v26  ;;  %v3289_v1 = vadd.f32 %v7316_v20, %v3275_v6  ;;  %v6844_v32 = vld [vmem:[#allocation7 + $0x100] sm:$0xff]  ;;  %v6871_v26 = vld [vmem:[#allocation7 + $0x1d8] sm:$0xff] }
 0x28a   :  { %4173 = vmatmul.bf16.vlgmr.msra.gmra.mxu2 %v3615_v4  ;;  %v3385_v48 = vadd.f32 %v3384_v61, %v3371_v54  ;;  %v6864_v4 = vld [vmem:[#allocation7 + $0x1a0] sm:$0xff] }
 0x28b   :  { %4194 = vmatpush.bf16.msrb.mxu0 %v6850_v29  ;;  %4221 = vmatpush.bf16.msrb.mxu2 %v6867_v21  ;;  %v3400_v55 = vpop.f32.mrf.mxu0  ;;  %v3387_v2 = vadd.f32 %v3386_v38, %v3373_v12  ;;  %v3301_v42 = vadd.f32 %v7305_v51, %v3287_v45  ;;  %v3303_v27 = vadd.f32 %v7326_v34, %v3289_v1  ;;  %v6872_v35 = vld [vmem:[#allocation7 + $0x1e0] sm:$0xff]  ;;  %v6870_v21 = vld [vmem:[#allocation7 + $0x1d0] sm:$0xff]  ;;  %v6869_v45 = vld [vmem:[#allocation7 + $0x1c8] sm:$0xff] }
 0x28c   :  { %4187 = vmatmul.bf16.vlgmr.msra.gmra.mxu3 %v3616_v9  ;;  %v3399_v39 = vadd.f32 %v3398_v13, %v3385_v48  ;;  %v6863_v9 = vld [vmem:[#allocation7 + $0x198] sm:$0xff] }
 0x28d   :  { %4208 = vmatpush.bf16.msrb.mxu1 %v6858_v28  ;;  %v3401_v11 = vadd.f32 %v3400_v55, %v3387_v2  ;;  %v3317_v20 = vadd.f32 %v7346_v33, %v3303_v27  ;;  %v3315_v46 = vadd.f32 %v7321_v44, %v3301_v42  ;;  %v6861_v33 = vld [vmem:[#allocation7 + $0x188] sm:$0xff]  ;;  %v6868_v55 = vld [vmem:[#allocation7 + $0x1c0] sm:$0xff] }
 0x28e   :  { %v3413_v29 = vadd.f32 %v3412_v62, %v3399_v39  ;;  %v3426_v28 = vpop.f32.mrf.mxu2 }
 0x28f   :  { %4195 = vmatpush.bf16.msrb.mxu0 %v6849_v52  ;;  %v3414_v19 = vpop.f32.mrf.mxu1  ;;  %4222 = vmatpush.bf16.msrb.mxu2 %v6866_v60  ;;  %v3617_v51 = vpack.c.bf16 %v3317_v20, %v3315_v46  ;;  %v6875_v52 = vld [vmem:[#allocation7 + $0x1f8] sm:$0xff] }
 0x290   :  { %v3415_v15 = vadd.f32 %v3414_v19, %v3401_v11  ;;  %4235 = vmatpush.bf16.msrb.mxu3 %v6875_v52 }
 0x291   :  { %4209 = vmatpush.bf16.msrb.mxu1 %v6857_v30  ;;  %v3440_v16 = vpop.f32.mrf.mxu3  ;;  %v3427_v30 = vadd.f32 %v3426_v28, %v579_v37 }
 0x292   :  { %v3618_v34 = vpack.c.bf16 %v3415_v15, %v3413_v29 }
 0x293   :  { %4196 = vmatpush.bf16.msrb.mxu0 %v6848_v3  ;;  %4223 = vmatpush.bf16.msrb.mxu2 %v6865_v23  ;;  %v3454_v10 = vpop.f32.mrf.mxu0  ;;  %v3441_v47 = vadd.f32 %v3440_v16, %v3427_v30 }
 0x294   :  { %4236 = vmatpush.bf16.msrb.mxu3 %v6874_v18  ;;  %v6887_v18 = vld [vmem:[#allocation8] ss:$0 sm:$0xff] }
 0x295   :  { %4210 = vmatpush.bf16.msrb.mxu1 %v6856_v43  ;;  %v3455_v43 = vadd.f32 %v3454_v10, %v3441_v47 }
 0x296   :  { %v3428_v44 = vpop.f32.mrf.mxu2 }
 0x297   :  { %4197 = vmatpush.bf16.msrb.mxu0 %v6847_v31  ;;  %4224 = vmatpush.bf16.msrb.mxu2 %v6864_v4  ;;  %v3468_v25 = vpop.f32.mrf.mxu1  ;;  %v3429_v59 = vadd.f32 %v3428_v44, %v579_v37 }
 0x298   :  { %4237 = vmatpush.bf16.msrb.mxu3 %v6873_v24  ;;  %v3469_v49 = vadd.f32 %v3468_v25, %v3455_v43 }
 0x299   :  { %4211 = vmatpush.bf16.msrb.mxu1 %v6855_v5  ;;  %v3442_v53 = vpop.f32.mrf.mxu3 }
 0x29a   :  { %v3443_v3 = vadd.f32 %v3442_v53, %v3429_v59 }
 0x29b   :  { %4198 = vmatpush.bf16.msrb.mxu0 %v6846_v0  ;;  %4225 = vmatpush.bf16.msrb.mxu2 %v6863_v9  ;;  %v3456_v61 = vpop.f32.mrf.mxu0 }
 0x29c   :  { %v3457_v57 = vadd.f32 %v3456_v61, %v3443_v3  ;;  %4238 = vmatpush.bf16.msrb.mxu3 %v6872_v35 }
 0x29d   :  { %4212 = vmatpush.bf16.msrb.mxu1 %v6854_v41 }
 0x29e   :  { %v3482_v63 = vpop.f32.mrf.mxu2 }
 0x29f   :  { %4199 = vmatpush.bf16.msrb.mxu0 %v6845_v7  ;;  %4226 = vmatpush.bf16.msrb.mxu2 %v6862_v36  ;;  %v3470_v50 = vpop.f32.mrf.mxu1  ;;  %v3483_v5 = vadd.f32 %v3482_v63, %v3469_v49 }
 0x2a0   :  { %v3471_v62 = vadd.f32 %v3470_v50, %v3457_v57  ;;  %4239 = vmatpush.bf16.msrb.mxu3 %v6871_v26 }
 0x2a1   :  { %4213 = vmatpush.bf16.msrb.mxu1 %v6853_v58  ;;  %v3496_v13 = vpop.f32.mrf.mxu3  ;;  %v580_v58 = vperm.slane %v7282_v22, 7 }
 0x2a2   :  { %v3497_v6 = vadd.f32 %v3496_v13, %v3483_v5 }
 0x2a3   :  { %4200 = vmatpush.bf16.msrb.mxu0 %v6844_v32  ;;  %4227 = vmatpush.bf16.msrb.mxu2 %v6861_v33 }
 0x2a4   :  { %4240 = vmatpush.bf16.msrb.mxu3 %v6870_v21 }
 0x2a5   :  { %4214 = vmatpush.bf16.msrb.mxu1 %v6852_v8 }
 0x2a6   :  { %4201 = vmatmul.bf16.vlgmr.msrb.gmra.mxu0 %v3617_v51  ;;  %v3484_v40 = vpop.f32.mrf.mxu2 }
 0x2a7   :  { %4228 = vmatpush.bf16.msrb.mxu2 %v6860_v56  ;;  %v3485_v17 = vadd.f32 %v3484_v40, %v3471_v62 }
 0x2a8   :  { %4215 = vmatmul.bf16.vlgmr.msrb.gmra.mxu1 %v3618_v34  ;;  %4241 = vmatpush.bf16.msrb.mxu3 %v6869_v45 }
 0x2a9   :  { %v3498_v14 = vpop.f32.mrf.mxu3 }
 0x2aa   :  { %v3499_v12 = vadd.f32 %v3498_v14, %v3485_v17 }
 0x2ab   :  { %v3524_v1 = vpop.f32.mrf.mxu1 }
 0x2ac   :  { %v3510_v31 = vpop.f32.mrf.mxu0  ;;  %4242 = vmatpush.bf16.msrb.mxu3 %v6868_v55  ;;  %v3525_v48 = vadd.f32 %v3524_v1, %v580_v58 }
 0x2ad   :  { %v3511_v38 = vadd.f32 %v3510_v31, %v3497_v6 }
 0x2b3   :  { %v3526_v60 = vpop.f32.mrf.mxu1 }
 0x2b4   :  { %v3512_v0 = vpop.f32.mrf.mxu0  ;;  %v3552_v7 = vpop.f32.mrf.mxu3  ;;  %v3527_v42 = vadd.f32 %v3526_v60, %v580_v58 }
 0x2b5   :  { %v3513_v41 = vadd.f32 %v3512_v0, %v3499_v12  ;;  %v3538_v2 = vpop.f32.mrf.mxu2 }
 0x2b6   :  { %v3539_v23 = vadd.f32 %v3538_v2, %v3525_v48 }
 0x2b7   :  { %v3619_v54 = vpack.c.bf16 %v3513_v41, %v3511_v38 }
 0x2b8   :  { %v3553_v20 = vadd.f32 %v3552_v7, %v3539_v23 }
 0x2b9   :  { %4229 = vmatmul.bf16.vlgmr.msrb.gmra.mxu2 %v3619_v54 }
 0x2bc   :  { %v3554_v27 = vpop.f32.mrf.mxu3 }
 0x2bd   :  { %v3540_v11 = vpop.f32.mrf.mxu2 }
 0x2be   :  { %v3541_v32 = vadd.f32 %v3540_v11, %v3527_v42 }
 0x2c0   :  { %v3555_v15 = vadd.f32 %v3554_v27, %v3541_v32 }
 0x2e3   :  { %v3566_v19 = vpop.f32.mrf.mxu0 }
 0x2e4   :  { %v3567_v46 = vadd.f32 %v3566_v19, %v3553_v20 }
 0x2e5   :  { %v3580_v39 = vpop.f32.mrf.mxu1 }
 0x2e6   :  { %v3581_v34 = vadd.f32 %v3580_v39, %v3567_v46 }
 0x2eb   :  { %v3568_v29 = vpop.f32.mrf.mxu0 }
 0x2ec   :  { %v3569_v51 = vadd.f32 %v3568_v29, %v3555_v15 }
 0x2ed   :  { %v3594_v8 = vpop.f32.mrf.mxu2  ;;  %v3582_v9 = vpop.f32.mrf.mxu1 }
 0x2ee   :  { %v3595_v36 = vadd.f32 %v3594_v8, %v3581_v34  ;;  %v3583_v22 = vadd.f32 %v3582_v9, %v3569_v51 }
 0x2ef   :  { %v3608_v4 = vpop.f32.mrf.mxu3 }
 0x2f0   :  { %v3609_v56 = vadd.f32 %v3608_v4, %v3595_v36 }
 0x2f5   :  { %v3596_v28 = vpop.f32.mrf.mxu2 }
 0x2f6   :  { %v3597_v33 = vadd.f32 %v3596_v28, %v3583_v22 }
 0x2f7   :  { %v3610_v16 = vpop.f32.mrf.mxu3 }
 0x2f8   :  { %v3611_v44 = vadd.f32 %v3610_v16, %v3597_v33 }
 0x2fa   :  { %v3620_v10 = vpack.c.bf16 %v3611_v44, %v3609_v56 }
 0x2fc   :  { %4243 = vmatmul.bf16.vlgmr.msrb.gmra.mxu3 %v3620_v10 }
 0x303   :  { %v4146_v37 = vpop.f32.mrf.mxu0 }
 0x304   :  { %v4147_v25 = vadd.f32 %v6887_v18, %v4146_v37 }
 0x305   :  { %v4160_v53 = vpop.f32.mrf.mxu1 }
 0x306   :  { %v4161_v63 = vadd.f32 %v4160_v53, %v4147_v25 }
 0x30b   :  { %v4148_v30 = vpop.f32.mrf.mxu0 }
 0x30c   :  { %v4149_v13 = vadd.f32 %v6887_v18, %v4148_v30 }
 0x30d   :  { %v4174_v52 = vpop.f32.mrf.mxu2  ;;  %v4162_v24 = vpop.f32.mrf.mxu1 }
 0x30e   :  { %v4175_v61 = vadd.f32 %v4174_v52, %v4161_v63  ;;  %v4163_v50 = vadd.f32 %v4162_v24, %v4149_v13 }
 0x30f   :  { %v4188_v59 = vpop.f32.mrf.mxu3 }
 0x310   :  { %v4189_v43 = vadd.f32 %v4188_v59, %v4175_v61 }
 0x315   :  { %v4176_v47 = vpop.f32.mrf.mxu2 }
 0x316   :  { %v4177_v35 = vadd.f32 %v4176_v47, %v4163_v50 }
 0x317   :  { %v4190_v57 = vpop.f32.mrf.mxu3 }
 0x318   :  { %v4191_v17 = vadd.f32 %v4190_v57, %v4177_v35 }
 0x323   :  { %v4202_v3 = vpop.f32.mrf.mxu0 }
 0x324   :  { %v4203_v49 = vadd.f32 %v4202_v3, %v4189_v43 }
 0x325   :  { %v4216_v40 = vpop.f32.mrf.mxu1 }
 0x326   :  { %v4217_v62 = vadd.f32 %v4216_v40, %v4203_v49 }
 0x32b   :  { %v4204_v5 = vpop.f32.mrf.mxu0 }
 0x32c   :  { %v4205_v6 = vadd.f32 %v4204_v5, %v4191_v17 }
 0x32d   :  { %v4218_v0 = vpop.f32.mrf.mxu1 }
 0x32e   :  { %v4219_v38 = vadd.f32 %v4218_v0, %v4205_v6 }
 0x33c   :  { %v4230_v31 = vpop.f32.mrf.mxu2 }
 0x33d   :  { %v4231_v14 = vadd.f32 %v4230_v31, %v4217_v62 }
 0x344   :  { %v4232_v21 = vpop.f32.mrf.mxu2 }
 0x345   :  { %v4233_v41 = vadd.f32 %v4232_v21, %v4219_v38 }
 0x37f   :  { %v4244_v26 = vpop.f32.mrf.mxu3 }
 0x380   :  { %v4245_v12 = vadd.f32 %v4244_v26, %v4231_v14 }
 0x382   :  { %4249 = vmax.xlane.f32.xlu0 %v4245_v12 }
 0x387   :  { %v4246_v54 = vpop.f32.mrf.mxu3 }
 0x388   :  { %v4247_v45 = vadd.f32 %v4246_v54, %v4233_v41 }
 0x38a   :  { %4251 = vmax.xlane.f32.xlu0 %v4247_v45 }
 0x3f5   :  { %v4250_v1 = vpop.xlane.xlu0 %4249 }
 0x3f6   :  { %v4253_v55 = vsub.f32 %v4245_v12, %v4250_v1 }
 0x3f8   :  { %v4255_v2 = vmul.f32 1.442695, %v4253_v55 }
 0x3fa   :  { %6888 = vpow2.f32 %v4255_v2 }
 0x3fd   :  { %v4252_v7 = vpop.xlane.xlu0 %4251 }
 0x3fe   :  { %v4254_v58 = vsub.f32 %v4247_v45, %v4252_v7 }
 0x400   :  { %v6889_v60 = vpop.eup %6888  ;;  %v4257_v48 = vmul.f32 1.442695, %v4254_v58 }
 0x401   :  { %4259 = vadd.xlane.f32.xlu1 %v6889_v60 }
 0x402   :  { %6890 = vpow2.f32 %v4257_v48 }
 0x408   :  { %v6891_v11 = vpop.eup %6890 }
 0x409   :  { %4261 = vadd.xlane.f32.xlu1 %v6891_v11 }
 0x474   :  { %v4260_v42 = vpop.xlane.xlu1 %4259 }
 0x475   :  { %6892 = vrcp.f32 %v4260_v42  ;;  %v4274_v32 = vand.u32 2147483648, %v4260_v42  ;;  %v4272_v8 = vand.u32 2147483647, %v4260_v42  ;;  %vm4268_vm1 = vweird.f32 %v4260_v42 }
 0x477   :  { %v4275_v4 = vor.u32 1.1754944e-38, %v4274_v32  ;;  %vm4273_vm3 = vcmp.eq.f32.partialorder %v4272_v8, 8.507059e+37 }
 0x47b   :  { %v6893_v27 = vpop.eup %6892 }
 0x47c   :  { %v4264_v19 = vmul.f32 %v6893_v27, %v4260_v42  ;;  %v4262_v23 = vpop.xlane.xlu1 %4261  ;;  %vm4269_vm0 = vweird.f32 %v6893_v27 }
 0x47d   :  { %6894 = vrcp.f32 %v4262_v23  ;;  %vm4270_vm2 = vmor %vm4268_vm1, %vm4269_vm0  ;;  %v4289_v22 = vand.u32 2147483648, %v4262_v23  ;;  %v4287_v33 = vand.u32 2147483647, %v4262_v23  ;;  %vm4283_vm5 = vweird.f32 %v4262_v23 }
 0x47e   :  { %v4265_v39 = vsub.f32 1.0, %v4264_v19 }
 0x47f   :  { %v4290_v56 = vor.u32 1.1754944e-38, %v4289_v22  ;;  %vm4288_vm7 = vcmp.eq.f32.partialorder %v4287_v33, 8.507059e+37 }
 0x480   :  { %v4266_v20 = vmul.f32 %v6893_v27, %v4265_v39 }
 0x482   :  { %v4267_v15 = vadd.f32 %v6893_v27, %v4266_v20 }
 0x483   :  { %v6895_v46 = vpop.eup %6894 }
 0x484   :  { %v4271_v29 = vsel %vm4270_vm2, %v6893_v27, %v4267_v15  ;;  %v4279_v51 = vmul.f32 %v6895_v46, %v4262_v23  ;;  %vm4284_vm4 = vweird.f32 %v6895_v46 }
 0x485   :  { %v4276_v34 = vsel %vm4273_vm3, %v4275_v4, %v4271_v29  ;;  %vm4285_vm6 = vmor %vm4283_vm5, %vm4284_vm4 }
 0x486   :  { %v4277_v9 = vmul.f32 %v6889_v60, %v4276_v34  ;;  %v4280_v36 = vsub.f32 1.0, %v4279_v51 }
 0x488   :  { %4293 = vst [vmem:[#allocation10] sm:$0xff] %v4277_v9  ;;  %v4281_v28 = vmul.f32 %v6895_v46, %v4280_v36 }
 0x48a   :  { %v4282_v16 = vadd.f32 %v6895_v46, %v4281_v28 }
 0x48c   :  { %v4286_v44 = vsel %vm4285_vm6, %v6895_v46, %v4282_v16 }
 0x48d   :  { %v4291_v10 = vsel %vm4288_vm7, %v4290_v56, %v4286_v44 }
 0x48e   :  { %v4292_v37 = vmul.f32 %v6891_v11, %v4291_v10 }
 0x490   :  { %4294 = vst [vmem:[#allocation10 + $0x8] sm:$0xff] %v4292_v37 }
 0x491   :  { %4307 = dma.vmem_to_hbm [thread:$0]  %s4300_s29, 256, %s4302_s2, [#allocation4], %s7034_s7, %s7034_s7, %s7035_s8  }
 0x492   :  { %7023 = dma.done.wait [#allocation4], 256  }
 0x493   :  { %7024 = vsyncadd [#allocation4], 4294967040 }
 0x494   :  { %4312 = vsyncpa [#allocation3], 1 }
 0x495   :  { %4313 = vsyncpa [#allocation6], 1 }
 0x496   :  { %4314 = vsyncpa [#allocation9], 1 }
 0x497   :  { %4315 = vsyncpa [#allocation4], 1 }

</bundles_post_ra>
